<compile_context>
chip_gen: v5e
topology: v5e:2x2
jax: 0.10.0
libtpu: 0.0.40
codegen_flags: <defaults>
</compile_context>

<pallas_src>
import functools

import jax
import jax.numpy as jnp
from jax import lax
from jax.experimental import pallas as pl
from jax.experimental.pallas import tpu as pltpu


# ----------------------------------------------------------------------------
# Fused kernel: attention + expert aggregation + padded conv2d + bias
# ----------------------------------------------------------------------------
def _condconv_kernel(x_ref, aw_ref, w_ref, b_ref, o_ref, xpad_ref, *,
                     num_experts, ksize, stride, padding, dilation,
                     h_out, w_out):
    # x_ref:    (1, H, W, C)   VMEM  unpadded input for this batch element
    # aw_ref:   (C, K)         VMEM  attention 1x1-conv weight
    # w_ref:    (K, k*k*C, O)  VMEM  expert conv weights, rows = (kh, kw, cin)
    # b_ref:    (K, O)         VMEM  expert biases
    # o_ref:    (1, Ho*Wo, O)  VMEM  flat output slab
    # xpad_ref: (Hp, Wp, C)    VMEM  scratch for the zero-padded input
    x = x_ref[0]                                            # (H, W, C)
    H, W, C = x.shape
    _, kkC, O = w_ref.shape

    # ---- fused attention: avg-pool -> 1x1 conv (no bias) -> sigmoid --------
    pooled = jnp.mean(x.reshape(H * W, C), axis=0, keepdims=True)       # (1, C)
    att = jax.nn.sigmoid(
        jnp.dot(pooled, aw_ref[...],
                preferred_element_type=jnp.float32))                    # (1, K)

    # ---- aggregate expert weights / bias with per-sample attention ---------
    w_all = w_ref[...]                                      # (K, k*k*C, O)
    agg_w = att[0:1, 0:1] * w_all[0]                        # (k*k*C, O)
    for e in range(1, num_experts):
        agg_w = agg_w + att[0:1, e:e + 1] * w_all[e]
    agg_b = jnp.dot(att, b_ref[...],
                    preferred_element_type=jnp.float32)     # (1, O)

    # ---- zero padding folded into the kernel (no jnp.pad in the wrapper) ---
    if padding > 0:
        xpad_ref[...] = jnp.zeros_like(xpad_ref)
        xpad_ref[padding:padding + H, padding:padding + W, :] = x
        xp = xpad_ref[...]                                  # (Hp, Wp, C)
    else:
        xp = x

    # ---- convolution --------------------------------------------------------
    span_h = (h_out - 1) * stride + 1
    span_w = (w_out - 1) * stride + 1
    taps = []
    for kh in range(ksize):
        for kw in range(ksize):
            hs = kh * dilation
            ws = kw * dilation
            patch = xp[hs:hs + span_h:stride, ws:ws + span_w:stride, :]
            taps.append(patch.reshape(h_out * w_out, C))    # (Ho*Wo, C)

    if C < 128:
        # im2col: one fat matmul with contraction dim k*k*C (MXU-friendly for
        # thin channels).
        patches = jnp.concatenate(taps, axis=-1)            # (Ho*Wo, k*k*C)
        out = jnp.dot(patches, agg_w, preferred_element_type=jnp.float32)
    else:
        # wide channels: per-tap accumulation keeps the im2col buffer out of
        # VMEM; each tap already feeds the MXU a >=128-deep contraction.
        out = jnp.zeros((h_out * w_out, O), jnp.float32)
        for t, patch in enumerate(taps):
            out = out + jnp.dot(patch, agg_w[t * C:(t + 1) * C, :],
                                preferred_element_type=jnp.float32)

    o_ref[0] = (out + agg_b).astype(o_ref.dtype)            # (Ho*Wo, O)


# ----------------------------------------------------------------------------
# Wrapper (layout plumbing only; jit the whole thing so transposes/casts fuse)
# ----------------------------------------------------------------------------
def cond_conv_forward(x_nchw, params, *, stride=1, padding=0, dilation=1):
    weight = params["weight"]        # (K, O, C, k, k)  -- expert conv weights
    bias = params["bias"]            # (K, O)
    attn_w = params["attn_weight"]   # (K, C, 1, 1)     -- attention 1x1 conv

    bs, C, H, W = x_nchw.shape
    K, O, Cw, k, _ = weight.shape
    h_out = (H + 2 * padding - dilation * (k - 1) - 1) // stride + 1
    w_out = (W + 2 * padding - dilation * (k - 1) - 1) // stride + 1
    Hp, Wp = H + 2 * padding, W + 2 * padding

    x_nhwc = jnp.transpose(x_nchw, (0, 2, 3, 1)).astype(jnp.float32)
    # attention weight as (C, K)
    aw = jnp.transpose(attn_w.reshape(K, C), (1, 0)).astype(jnp.float32)
    # expert weights re-packed as (K, k*k*C, O): rows ordered (kh, kw, cin)
    w3 = jnp.transpose(weight, (0, 3, 4, 2, 1)).reshape(K, k * k * Cw, O)
    w3 = w3.astype(jnp.float32)
    bias_f = bias.astype(jnp.float32)

    kernel = functools.partial(
        _condconv_kernel, num_experts=K, ksize=k, stride=stride,
        padding=padding, dilation=dilation, h_out=h_out, w_out=w_out)

    out_flat = pl.pallas_call(
        kernel,
        out_shape=jax.ShapeDtypeStruct((bs, h_out * w_out, O), jnp.float32),
        grid=(bs,),
        in_specs=[
            pl.BlockSpec((1, H, W, C), lambda b: (b, 0, 0, 0)),        # x
            pl.BlockSpec((C, K), lambda b: (0, 0)),                    # attn W
            pl.BlockSpec((K, k * k * Cw, O), lambda b: (0, 0, 0)),     # expert W
            pl.BlockSpec((K, O), lambda b: (0, 0)),                    # expert b
        ],
        out_specs=pl.BlockSpec((1, h_out * w_out, O), lambda b: (b, 0, 0)),
        scratch_shapes=[pltpu.VMEM((Hp, Wp, Cw), jnp.float32)],        # padded x
        compiler_params=pltpu.CompilerParams(
            dimension_semantics=("parallel",)),
    )(x_nhwc, aw, w3, bias_f)

    # reshape (free) + single output transpose back to NCHW, matching
    # PyTorch's output.view(bs, O, h//stride, w//stride)
    out_nhwc = out_flat.reshape(bs, h_out, w_out, O)
    return jnp.transpose(out_nhwc, (0, 3, 1, 2))


# ----------------------------------------------------------------------------
# Deterministic parameter init (mirrors module __init__ shapes)
# ----------------------------------------------------------------------------
def init_params(key, in_planes, out_planes, ksize, K):
    k1, k2, k3 = jax.random.split(key, 3)
    # kaiming_uniform-ish for expert conv weights: bound = sqrt(6/fan_in)
    fan_in = in_planes * ksize * ksize
    bound = float(jnp.sqrt(6.0 / fan_in))
    weight = jax.random.uniform(
        k1, (K, out_planes, in_planes, ksize, ksize), jnp.float32,
        minval=-bound, maxval=bound)
    # bias: torch.randn(K, out_planes)
    bias = jax.random.normal(k2, (K, out_planes), jnp.float32)
    # attention 1x1 conv: kaiming_normal_(fan_out, relu) -> std = sqrt(2/K)
    attn_weight = (jax.random.normal(k3, (K, in_planes, 1, 1), jnp.float32)
                   * float(jnp.sqrt(2.0 / K)))
    return {"weight": weight, "bias": bias, "attn_weight": attn_weight}


# ----------------------------------------------------------------------------
# Pure-JAX reference (matches the PyTorch forward semantics)
# ----------------------------------------------------------------------------
def ref_forward(x, params, *, stride=1, padding=0, dilation=1):
    weight = params["weight"]
    bias = params["bias"]
    attn_w = params["attn_weight"]
    bs, C, H, W = x.shape
    K, O = bias.shape
    pooled = x.mean(axis=(2, 3))                                 # (bs, C)
    att = jax.nn.sigmoid(pooled @ attn_w.reshape(K, C).T)        # (bs, K)
    agg_w = (att @ weight.reshape(K, -1)).reshape(bs, O, C,
                                                  weight.shape[3],
                                                  weight.shape[4])
    agg_b = att @ bias                                           # (bs, O)
    outs = []
    for b in range(bs):
        o = lax.conv_general_dilated(
            x[b:b + 1], agg_w[b], window_strides=(stride, stride),
            padding=[(padding, padding), (padding, padding)],
            rhs_dilation=(dilation, dilation),
            dimension_numbers=("NCHW", "OIHW", "NCHW"))
        outs.append(o + agg_b[b][None, :, None, None])
    return jnp.concatenate(outs, axis=0)


if __name__ == "__main__":
    key = jax.random.PRNGKey(0)
    kx, kp = jax.random.split(key)

    bs, C, H, W = 2, 4, 16, 16
    O, ksize, K = 8, 3, 4
    stride, padding, dilation = 1, 1, 1

    x = jax.random.normal(kx, (bs, C, H, W), jnp.float32)
    params = init_params(kp, C, O, ksize, K)

    fwd = jax.jit(functools.partial(cond_conv_forward, stride=stride,
                                    padding=padding, dilation=dilation))
    out = jax.block_until_ready(fwd(x, params))

    assert out.shape == (bs, O, H // stride, W // stride), out.shape

    ref = ref_forward(x, params, stride=stride, padding=padding,
                      dilation=dilation)
    err = float(jnp.max(jnp.abs(out - ref)))
    if err > 1e-3:
        raise AssertionError(f"Pallas CondConv mismatch vs reference: {err}")

    print("KERNEL_OK")
</pallas_src>

<mosaic_0001>
module attributes {stable_mosaic.version = 11 : i64} {
  func.func @_condconv_kernel(%arg0: i32, %arg1: memref<1x16x16x4xf32, #tpu.memory_space<vmem>>, %arg2: memref<4x4xf32, #tpu.memory_space<vmem>>, %arg3: memref<4x36x8xf32, #tpu.memory_space<vmem>>, %arg4: memref<4x8xf32, #tpu.memory_space<vmem>>, %arg5: memref<1x256x8xf32, #tpu.memory_space<vmem>>, %arg6: memref<18x18x4xf32, #tpu.memory_space<vmem>>) attributes {dimension_semantics = [#tpu.dimension_semantics<parallel>], iteration_bounds = array<i64: 2>, scalar_prefetch = 0 : i64, scratch_operands = 1 : i64, tpu.core_type = #tpu.core_type<tc>, window_params = [{transform_indices = @transform_0, window_bounds = array<i64: 1, 16, 16, 4>}, {pipeline_mode = #tpu.pipeline_mode<synchronous>, transform_indices = @transform_1, window_bounds = array<i64: 4, 4>}, {pipeline_mode = #tpu.pipeline_mode<synchronous>, transform_indices = @transform_2, window_bounds = array<i64: 4, 36, 8>}, {pipeline_mode = #tpu.pipeline_mode<synchronous>, transform_indices = @transform_3, window_bounds = array<i64: 4, 8>}, {transform_indices = @transform_4, window_bounds = array<i64: 1, 256, 8>}]} {
    %c0 = arith.constant 0 : index
    %c0_0 = arith.constant 0 : index
    %c0_1 = arith.constant 0 : index
    %c0_2 = arith.constant 0 : index
    %0 = vector.load %arg1[%c0, %c0_0, %c0_1, %c0_2] : memref<1x16x16x4xf32, #tpu.memory_space<vmem>>, vector<1x16x16x4xf32>
    %1 = vector.shape_cast %0 : vector<1x16x16x4xf32> to vector<16x16x4xf32>
    %2 = vector.shape_cast %1 : vector<16x16x4xf32> to vector<256x4xf32>
    %cst = arith.constant dense<0.000000e+00> : vector<4xf32>
    %3 = vector.multi_reduction <add>, %2, %cst [0] : vector<256x4xf32> to vector<4xf32>
    %4 = vector.shape_cast %3 : vector<4xf32> to vector<1x4xf32>
    %cst_3 = arith.constant 2.560000e+02 : f32
    %5 = vector.broadcast %cst_3 : f32 to vector<1x4xf32>
    %6 = arith.divf %4, %5 : vector<1x4xf32>
    %c0_4 = arith.constant 0 : index
    %c0_5 = arith.constant 0 : index
    %7 = vector.load %arg2[%c0_4, %c0_5] : memref<4x4xf32, #tpu.memory_space<vmem>>, vector<4x4xf32>
    %cst_6 = arith.constant dense<0.000000e+00> : vector<1x4xf32>
    %8 = tpu.matmul %6, %7, %cst_6 {dimension_numbers = #tpu.dot_dimension_numbers<[1], [0], [0], [1], [0, 0, 1, 1], [], []>} : vector<1x4xf32>, vector<4x4xf32>, vector<1x4xf32> -> vector<1x4xf32>
    %9 = arith.negf %8 : vector<1x4xf32>
    %10 = math.exp %9 : vector<1x4xf32>
    %cst_7 = arith.constant 1.000000e+00 : f32
    %11 = vector.broadcast %cst_7 : f32 to vector<1x4xf32>
    %12 = arith.addf %11, %10 : vector<1x4xf32>
    %13 = arith.divf %11, %12 : vector<1x4xf32>
    %c0_8 = arith.constant 0 : index
    %c0_9 = arith.constant 0 : index
    %c0_10 = arith.constant 0 : index
    %14 = vector.load %arg3[%c0_8, %c0_9, %c0_10] : memref<4x36x8xf32, #tpu.memory_space<vmem>>, vector<4x36x8xf32>
    %15 = vector.extract_strided_slice %13 {offsets = [0, 0], sizes = [1, 1], strides = [1, 1]} : vector<1x4xf32> to vector<1x1xf32>
    %16 = vector.extract_strided_slice %14 {offsets = [0, 0, 0], sizes = [1, 36, 8], strides = [1, 1, 1]} : vector<4x36x8xf32> to vector<1x36x8xf32>
    %17 = vector.shape_cast %16 : vector<1x36x8xf32> to vector<36x8xf32>
    %18 = vector.broadcast %15 : vector<1x1xf32> to vector<36x8xf32>
    %19 = arith.mulf %18, %17 : vector<36x8xf32>
    %20 = vector.extract_strided_slice %13 {offsets = [0, 1], sizes = [1, 1], strides = [1, 1]} : vector<1x4xf32> to vector<1x1xf32>
    %21 = vector.extract_strided_slice %14 {offsets = [1, 0, 0], sizes = [1, 36, 8], strides = [1, 1, 1]} : vector<4x36x8xf32> to vector<1x36x8xf32>
    %22 = vector.shape_cast %21 : vector<1x36x8xf32> to vector<36x8xf32>
    %23 = vector.broadcast %20 : vector<1x1xf32> to vector<36x8xf32>
    %24 = arith.mulf %23, %22 : vector<36x8xf32>
    %25 = arith.addf %19, %24 : vector<36x8xf32>
    %26 = vector.extract_strided_slice %13 {offsets = [0, 2], sizes = [1, 1], strides = [1, 1]} : vector<1x4xf32> to vector<1x1xf32>
    %27 = vector.extract_strided_slice %14 {offsets = [2, 0, 0], sizes = [1, 36, 8], strides = [1, 1, 1]} : vector<4x36x8xf32> to vector<1x36x8xf32>
    %28 = vector.shape_cast %27 : vector<1x36x8xf32> to vector<36x8xf32>
    %29 = vector.broadcast %26 : vector<1x1xf32> to vector<36x8xf32>
    %30 = arith.mulf %29, %28 : vector<36x8xf32>
    %31 = arith.addf %25, %30 : vector<36x8xf32>
    %32 = vector.extract_strided_slice %13 {offsets = [0, 3], sizes = [1, 1], strides = [1, 1]} : vector<1x4xf32> to vector<1x1xf32>
    %33 = vector.extract_strided_slice %14 {offsets = [3, 0, 0], sizes = [1, 36, 8], strides = [1, 1, 1]} : vector<4x36x8xf32> to vector<1x36x8xf32>
    %34 = vector.shape_cast %33 : vector<1x36x8xf32> to vector<36x8xf32>
    %35 = vector.broadcast %32 : vector<1x1xf32> to vector<36x8xf32>
    %36 = arith.mulf %35, %34 : vector<36x8xf32>
    %37 = arith.addf %31, %36 : vector<36x8xf32>
    %c0_11 = arith.constant 0 : index
    %c0_12 = arith.constant 0 : index
    %38 = vector.load %arg4[%c0_11, %c0_12] : memref<4x8xf32, #tpu.memory_space<vmem>>, vector<4x8xf32>
    %cst_13 = arith.constant dense<0.000000e+00> : vector<1x8xf32>
    %39 = tpu.matmul %13, %38, %cst_13 {dimension_numbers = #tpu.dot_dimension_numbers<[1], [0], [0], [1], [0, 0, 1, 1], [], []>} : vector<1x4xf32>, vector<4x8xf32>, vector<1x8xf32> -> vector<1x8xf32>
    %cst_14 = arith.constant 0.000000e+00 : f32
    %40 = vector.broadcast %cst_14 : f32 to vector<18x18x4xf32>
    %c0_15 = arith.constant 0 : index
    %c0_16 = arith.constant 0 : index
    %c0_17 = arith.constant 0 : index
    %41 = vector.load %arg6[%c0_15, %c0_16, %c0_17] : memref<18x18x4xf32, #tpu.memory_space<vmem>>, vector<18x18x4xf32>
    tpu.vector_store %arg6[%c0_15, %c0_16, %c0_17], %40 {strides = array<i32>} : memref<18x18x4xf32, #tpu.memory_space<vmem>>, vector<18x18x4xf32>,
    %c1 = arith.constant 1 : index
    %c1_18 = arith.constant 1 : index
    %c0_19 = arith.constant 0 : index
    %42 = vector.load %arg6[%c1, %c1_18, %c0_19] : memref<18x18x4xf32, #tpu.memory_space<vmem>>, vector<16x16x4xf32>
    tpu.vector_store %arg6[%c1, %c1_18, %c0_19], %1 {strides = array<i32>} : memref<18x18x4xf32, #tpu.memory_space<vmem>>, vector<16x16x4xf32>,
    %c0_20 = arith.constant 0 : index
    %c0_21 = arith.constant 0 : index
    %c0_22 = arith.constant 0 : index
    %43 = vector.load %arg6[%c0_20, %c0_21, %c0_22] : memref<18x18x4xf32, #tpu.memory_space<vmem>>, vector<18x18x4xf32>
    %44 = vector.extract_strided_slice %43 {offsets = [0, 0, 0], sizes = [16, 16, 4], strides = [1, 1, 1]} : vector<18x18x4xf32> to vector<16x16x4xf32>
    %45 = vector.shape_cast %44 : vector<16x16x4xf32> to vector<256x4xf32>
    %46 = vector.extract_strided_slice %43 {offsets = [0, 1, 0], sizes = [16, 16, 4], strides = [1, 1, 1]} : vector<18x18x4xf32> to vector<16x16x4xf32>
    %47 = vector.shape_cast %46 : vector<16x16x4xf32> to vector<256x4xf32>
    %48 = vector.extract_strided_slice %43 {offsets = [0, 2, 0], sizes = [16, 16, 4], strides = [1, 1, 1]} : vector<18x18x4xf32> to vector<16x16x4xf32>
    %49 = vector.shape_cast %48 : vector<16x16x4xf32> to vector<256x4xf32>
    %50 = vector.extract_strided_slice %43 {offsets = [1, 0, 0], sizes = [16, 16, 4], strides = [1, 1, 1]} : vector<18x18x4xf32> to vector<16x16x4xf32>
    %51 = vector.shape_cast %50 : vector<16x16x4xf32> to vector<256x4xf32>
    %52 = vector.extract_strided_slice %43 {offsets = [1, 1, 0], sizes = [16, 16, 4], strides = [1, 1, 1]} : vector<18x18x4xf32> to vector<16x16x4xf32>
    %53 = vector.shape_cast %52 : vector<16x16x4xf32> to vector<256x4xf32>
    %54 = vector.extract_strided_slice %43 {offsets = [1, 2, 0], sizes = [16, 16, 4], strides = [1, 1, 1]} : vector<18x18x4xf32> to vector<16x16x4xf32>
    %55 = vector.shape_cast %54 : vector<16x16x4xf32> to vector<256x4xf32>
    %56 = vector.extract_strided_slice %43 {offsets = [2, 0, 0], sizes = [16, 16, 4], strides = [1, 1, 1]} : vector<18x18x4xf32> to vector<16x16x4xf32>
    %57 = vector.shape_cast %56 : vector<16x16x4xf32> to vector<256x4xf32>
    %58 = vector.extract_strided_slice %43 {offsets = [2, 1, 0], sizes = [16, 16, 4], strides = [1, 1, 1]} : vector<18x18x4xf32> to vector<16x16x4xf32>
    %59 = vector.shape_cast %58 : vector<16x16x4xf32> to vector<256x4xf32>
    %60 = vector.extract_strided_slice %43 {offsets = [2, 2, 0], sizes = [16, 16, 4], strides = [1, 1, 1]} : vector<18x18x4xf32> to vector<16x16x4xf32>
    %61 = vector.shape_cast %60 : vector<16x16x4xf32> to vector<256x4xf32>
    %62 = tpu.concatenate %45, %47, %49, %51, %53, %55, %57, %59, %61 in 1 : vector<256x4xf32>, vector<256x4xf32>, vector<256x4xf32>, vector<256x4xf32>, vector<256x4xf32>, vector<256x4xf32>, vector<256x4xf32>, vector<256x4xf32>, vector<256x4xf32> -> vector<256x36xf32>
    %cst_23 = arith.constant dense<0.000000e+00> : vector<256x8xf32>
    %63 = tpu.matmul %62, %37, %cst_23 {dimension_numbers = #tpu.dot_dimension_numbers<[1], [0], [0], [1], [0, 0, 1, 1], [], []>} : vector<256x36xf32>, vector<36x8xf32>, vector<256x8xf32> -> vector<256x8xf32>
    %64 = vector.broadcast %39 : vector<1x8xf32> to vector<256x8xf32>
    %65 = arith.addf %63, %64 : vector<256x8xf32>
    %c0_24 = arith.constant 0 : index
    %c0_25 = arith.constant 0 : index
    %c0_26 = arith.constant 0 : index
    %66 = vector.load %arg5[%c0_24, %c0_25, %c0_26] : memref<1x256x8xf32, #tpu.memory_space<vmem>>, vector<1x256x8xf32>
    %67 = vector.shape_cast %66 : vector<1x256x8xf32> to vector<256x8xf32>
    %68 = vector.shape_cast %65 : vector<256x8xf32> to vector<1x256x8xf32>
    tpu.vector_store %arg5[%c0_24, %c0_25, %c0_26], %68 {strides = array<i32>} : memref<1x256x8xf32, #tpu.memory_space<vmem>>, vector<1x256x8xf32>,
    return
  }
  func.func @transform_0(%arg0: i32) -> (i32, i32, i32, i32) {
    %c0_i32 = arith.constant 0 : i32
    %c0_i32_0 = arith.constant 0 : i32
    %c0_i32_1 = arith.constant 0 : i32
    %c0_i32_2 = arith.constant 0 : i32
    return %arg0, %c0_i32, %c0_i32_0, %c0_i32_1 : i32, i32, i32, i32
  }
  func.func @transform_1(%arg0: i32) -> (i32, i32) {
    %c0_i32 = arith.constant 0 : i32
    %c0_i32_0 = arith.constant 0 : i32
    %c0_i32_1 = arith.constant 0 : i32
    return %c0_i32, %c0_i32_0 : i32, i32
  }
  func.func @transform_2(%arg0: i32) -> (i32, i32, i32) {
    %c0_i32 = arith.constant 0 : i32
    %c0_i32_0 = arith.constant 0 : i32
    %c0_i32_1 = arith.constant 0 : i32
    %c0_i32_2 = arith.constant 0 : i32
    return %c0_i32, %c0_i32_0, %c0_i32_1 : i32, i32, i32
  }
  func.func @transform_3(%arg0: i32) -> (i32, i32) {
    %c0_i32 = arith.constant 0 : i32
    %c0_i32_0 = arith.constant 0 : i32
    %c0_i32_1 = arith.constant 0 : i32
    return %c0_i32, %c0_i32_0 : i32, i32
  }
  func.func @transform_4(%arg0: i32) -> (i32, i32, i32) {
    %c0_i32 = arith.constant 0 : i32
    %c0_i32_0 = arith.constant 0 : i32
    %c0_i32_1 = arith.constant 0 : i32
    return %arg0, %c0_i32, %c0_i32_0 : i32, i32, i32
  }
}

</mosaic_0001>

<bundles_post_ra>
// kernel: cond_conv_forward.1
= control target key start
LH: loop header
LB: loop body
LE: loop exit
PB: predicated region body
PF: predicated region fallthrough
CT: control target
= control target key end

     0   :  { %s2345_s15 = smov 0   ;;  %s4578_s0 = inlined_call_operand.vmem [shape: f32[2,16,16,4], index: 0, kind: input, shape index: {}]   ;;  %s4579_s1 = inlined_call_operand.vmem [shape: f32[4,4], index: 1, kind: input, shape index: {}]   ;;  %s4580_s2 = inlined_call_operand.vmem [shape: f32[4,36,8], index: 2, kind: input, shape index: {}]   ;;  %s4581_s3 = inlined_call_operand.vmem [shape: f32[4,8], index: 3, kind: input, shape index: {}]   ;;  %s4582_s4 = inlined_call_operand.vmem [shape: f32[2,256,8], index: 4, kind: output, shape index: {}]  }
   0x1 LB: > { %s2165_s16 = sadd.s32 4294967295, %s2305_s15   ;;  %p2169_p0 = scmp.ge.s32.totalorder %s2305_s15, 1  ;;  %s2305_s15 = sphi %s2345_s15, %s14_s15  }
   0x2   : > { %p162_p1 = scmp.lt.s32.totalorder %s2305_s15, 3 }
   0x4   : > { %p163_p2 = pnand %p2169_p0, %p162_p1 }
   0x6   : > { %166 = sbr.rel (%p163_p2) target bundleno = 1012 (0x3f4), region = 36 }
   0xb   : > { %vm230_vm0 = vcmask 31744   ;;  %vm457_vm1 = vcmask 25600   ;;  %v2307_v0 = vmov 0.0   ;;  %p188_p3 = scmp.lt.s32.totalorder %s2165_s16, 1  ;;  %vm645_vm2 = vcmask 1046528   ;;  %s2308_s17 = smov 4  }
   0xc   : > { %456 = vst.msk [vmem:[#allocation2 + $0x8] sm:$0xff] %vm230_vm0, %v2307_v0  ;;  %vm312_vm3 = vcmask 1043456   ;;  %vm726_vm5 = vcmask 1045504   ;;  %s2310_s24 = smov 8   ;;  %s2311_s25 = smov 12   ;;  %vm1633_vm10 = vcmask 64512  }
   0xd   : > { %458 = vst.msk [vmem:[#allocation2 + $0x10] sm:$0x3] %vm457_vm1, %v2307_v0  ;;  %s5026_s16 = smov (!%p188_p3, %s2165_s16), 1  ;;  %s2312_s28 = smov 127   ;;  %vm1666_vm11 = vcmask 97280   ;;  %vm1699_vm12 = vcmask 130048  }
   0xe   : > { %455 = vst.msk [vmem:[#allocation2] sm:$0xff] %vm230_vm0, %v2307_v0  ;;  %s2214_s18 = sshll.u32 %s5026_s16, 8  ;;  %s2313_s29 = smov 125   ;;  %vm1732_vm13 = vcmask 162816   ;;  %vm1765_vm14 = vcmask 195584   ;;  %vm1798_vm15 = vcmask 228352  }
   0xf   : > { %459 = vst.msk [vmem:[#allocation2 + $0x18] sm:$0xff] %vm230_vm0, %v2307_v0  ;;  %s2406_s21 = scalar_lea.vmem %s4578_s0, %s2214_s18  ;;  %s2314_s30 = smov 126  }
  0x10   : > { %460 = vst.msk [vmem:[#allocation2 + $0x20] sm:$0xff] %vm230_vm0, %v2307_v0  ;;  %v2415_v9 = vld [vmem:[%s2406_s21 + $0x8] sm:$0xff]  ;;  %v2422_v10 = vld [vmem:[%s2406_s21] sm:$0xff]  ;;  %v2425_v11 = vld [vmem:[%s2406_s21 + $0x10] sm:$0xff]  ;;  %s2315_s5 = smov 16   ;;  %s2316_s6 = smov 20  }
  0x11   : > { %461 = vst.msk [vmem:[#allocation2 + $0x28] sm:$0x3] %vm457_vm1, %v2307_v0  ;;  %v232_v12 = vsel %vm230_vm0, %v2415_v9, 0.0  ;;  %v234_v13 = vsel %vm230_vm0, %v2425_v11, 0.0  ;;  %v231_v14 = vsel %vm230_vm0, %v2422_v10, 0.0  ;;  %v2442_v15 = vld [vmem:[%s2406_s21 + $0x18] sm:$0xff]  ;;  %s4421_s11 = scalar_lea.vmem %s4582_s4, %s2214_s18 }
  0x12   : > { %462 = vst.msk [vmem:[#allocation2 + $0x30] sm:$0xff] %vm230_vm0, %v2307_v0  ;;  %v233_v16 = vadd.f32 %v232_v12, %v231_v14  ;;  %v236_v17 = vsel %vm230_vm0, %v2442_v15, 0.0  ;;  %v2455_v20 = vld [vmem:[%s2406_s21 + $0x20] sm:$0xff]  ;;  %v2464_v22 = vld [vmem:[%s2406_s21 + $0x28] sm:$0xff]  ;;  %v2473_v25 = vld [vmem:[%s2406_s21 + $0x30] sm:$0xff] }
  0x13   : > { %v2367_v1 = vld [vmem:[#allocation2 + $0x8] sm:$0xff]  ;;  %463 = vst.msk [vmem:[#allocation2 + $0x38] sm:$0xff] %vm230_vm0, %v2307_v0  ;;  %v238_v21 = vsel %vm230_vm0, %v2455_v20, 0.0  ;;  %v240_v24 = vsel %vm230_vm0, %v2464_v22, 0.0  ;;  %v242_v27 = vsel %vm230_vm0, %v2473_v25, 0.0  ;;  %v205_v28 = vld [vmem:[%s2406_s21 + $0x38] sm:$0xff] }
  0x14   : > { %v2371_v2 = vld [vmem:[#allocation2 + $0x10] sm:$0x3]  ;;  %v647_v3 = vrot.slane %v2367_v1, 1  ;;  %464 = vst.msk [vmem:[#allocation2 + $0x40] sm:$0x3] %vm457_vm1, %v2307_v0  ;;  %v235_v18 = vadd.f32 %v234_v13, %v233_v16  ;;  %v244_v30 = vsel %vm230_vm0, %v205_v28, 0.0 }
  0x15   : > { %v649_v4 = vrot.slane %v2371_v2, 1  ;;  %465 = vst.msk [vmem:[#allocation2 + $0x48] sm:$0xff] %vm230_vm0, %v2307_v0  ;;  %v2381_v5 = vld [vmem:[#allocation2] sm:$0xff]  ;;  %v207_v35 = vld [vmem:[%s2406_s21 + $0x48] sm:$0xff]  ;;  %v208_v38 = vld [vmem:[%s2406_s21 + $0x50] sm:$0xff] }
  0x16   : > { %466 = vst.msk [vmem:[#allocation2 + $0x50] sm:$0xff] %vm230_vm0, %v2307_v0  ;;  %v646_v6 = vrot.slane %v2381_v5, 1  ;;  %v237_v19 = vadd.f32 %v236_v17, %v235_v18  ;;  %v206_v31 = vld [vmem:[%s2406_s21 + $0x40] sm:$0xff]  ;;  %v248_v36 = vsel %vm230_vm0, %v207_v35, 0.0  ;;  %v250_v39 = vsel %vm230_vm0, %v208_v38, 0.0  ;;  %v209_v40 = vld [vmem:[%s2406_s21 + $0x58] sm:$0xff] }
  0x17   : > { %v650_v7 = vsel %vm645_vm2, %v647_v3, %v649_v4  ;;  %467 = vst.msk [vmem:[#allocation2 + $0x58] sm:$0x3] %vm457_vm1, %v2307_v0  ;;  %v246_v33 = vsel %vm230_vm0, %v206_v31, 0.0  ;;  %v252_v42 = vsel %vm230_vm0, %v209_v40, 0.0  ;;  %v210_v43 = vld [vmem:[%s2406_s21 + $0x60] sm:$0xff]  ;;  %v2518_v46 = vld [vmem:[%s2406_s21 + $0x68] sm:$0xff] }
  0x18   : > { %835 = vrot.lane.b32.xlu2 %v650_v7, %s2308_s17  ;;  %468 = vst.msk [vmem:[#allocation2 + $0x60] sm:$0xff] %vm230_vm0, %v2307_v0  ;;  %v648_v8 = vsel %vm645_vm2, %v646_v6, %v647_v3  ;;  %v239_v23 = vadd.f32 %v238_v21, %v237_v19  ;;  %v254_v45 = vsel %vm230_vm0, %v210_v43, 0.0  ;;  %v256_v48 = vsel %vm230_vm0, %v2518_v46, 0.0  ;;  %v212_v50 = vld [vmem:[%s2406_s21 + $0x70] sm:$0xff]  ;;  %v213_v52 = vld [vmem:[%s2406_s21 + $0x78] sm:$0xff]  ;;  %v214_v55 = vld [vmem:[%s2406_s21 + $0x80] sm:$0xff] }
  0x19   : > { %469 = vst.msk [vmem:[#allocation2 + $0x68] sm:$0xff] %vm230_vm0, %v2307_v0  ;;  %833 = vrot.lane.b32.xlu1 %v648_v8, %s2308_s17  ;;  %v258_v51 = vsel %vm230_vm0, %v212_v50, 0.0  ;;  %v260_v54 = vsel %vm230_vm0, %v213_v52, 0.0  ;;  %v262_v57 = vsel %vm230_vm0, %v214_v55, 0.0  ;;  %v215_v58 = vld [vmem:[%s2406_s21 + $0x88] sm:$0xff]  ;;  %v216_v61 = vld [vmem:[%s2406_s21 + $0x90] sm:$0xff] }
  0x1a   : > { %470 = vst.msk [vmem:[#allocation2 + $0x70] sm:$0x3] %vm457_vm1, %v2307_v0  ;;  %v241_v26 = vadd.f32 %v240_v24, %v239_v23  ;;  %v264_v60 = vsel %vm230_vm0, %v215_v58, 0.0 }
  0x1b   : > { %471 = vst.msk [vmem:[#allocation2 + $0x78] sm:$0xff] %vm230_vm0, %v2307_v0 }
  0x1c   : > { %472 = vst.msk [vmem:[#allocation2 + $0x80] sm:$0xff] %vm230_vm0, %v2307_v0  ;;  %v243_v29 = vadd.f32 %v242_v27, %v241_v26  ;;  %v218_v26 = vld [vmem:[%s2406_s21 + $0xa0] sm:$0xff] }
  0x1d   : > { %473 = vst.msk [vmem:[#allocation2 + $0x88] sm:$0x3] %vm457_vm1, %v2307_v0 }
  0x1e   : > { %474 = vst.msk [vmem:[#allocation2 + $0x90] sm:$0xff] %vm230_vm0, %v2307_v0  ;;  %v245_v32 = vadd.f32 %v244_v30, %v243_v29 }
  0x1f   : > { %475 = vst.msk [vmem:[#allocation2 + $0x98] sm:$0xff] %vm230_vm0, %v2307_v0 }
  0x20   : > { %476 = vst.msk [vmem:[#allocation2 + $0xa0] sm:$0x3] %vm457_vm1, %v2307_v0  ;;  %v247_v34 = vadd.f32 %v246_v33, %v245_v32  ;;  %v270_v32 = vsel %vm230_vm0, %v218_v26, 0.0 }
  0x21   : > { %477 = vst.msk [vmem:[#allocation2 + $0xa8] sm:$0xff] %vm230_vm0, %v2307_v0 }
  0x22   : > { %478 = vst.msk [vmem:[#allocation2 + $0xb0] sm:$0xff] %vm230_vm0, %v2307_v0  ;;  %v249_v37 = vadd.f32 %v248_v36, %v247_v34 }
  0x23   : > { %479 = vst.msk [vmem:[#allocation2 + $0xb8] sm:$0x3] %vm457_vm1, %v2307_v0 }
  0x24   : > { %480 = vst.msk [vmem:[#allocation2 + $0xc0] sm:$0xff] %vm230_vm0, %v2307_v0  ;;  %v251_v41 = vadd.f32 %v250_v39, %v249_v37 }
  0x25   : > { %481 = vst.msk [vmem:[#allocation2 + $0xc8] sm:$0xff] %vm230_vm0, %v2307_v0 }
  0x26   : > { %482 = vst.msk [vmem:[#allocation2 + $0xd0] sm:$0x3] %vm457_vm1, %v2307_v0  ;;  %v253_v44 = vadd.f32 %v252_v42, %v251_v41 }
  0x27   : > { %483 = vst.msk [vmem:[#allocation2 + $0xd8] sm:$0xff] %vm230_vm0, %v2307_v0 }
  0x28   : > { %484 = vst.msk [vmem:[#allocation2 + $0xe0] sm:$0xff] %vm230_vm0, %v2307_v0  ;;  %v255_v47 = vadd.f32 %v254_v45, %v253_v44  ;;  %v221_v45 = vld [vmem:[%s2406_s21 + $0xb8] sm:$0xff] }
  0x29   : > { %485 = vst.msk [vmem:[#allocation2 + $0xe8] sm:$0x3] %vm457_vm1, %v2307_v0 }
  0x2a   : > { %486 = vst.msk [vmem:[#allocation2 + $0xf0] sm:$0xff] %vm230_vm0, %v2307_v0  ;;  %v257_v49 = vadd.f32 %v256_v48, %v255_v47  ;;  %v222_v48 = vld [vmem:[%s2406_s21 + $0xc0] sm:$0xff] }
  0x2b   : > { %487 = vst.msk [vmem:[#allocation2 + $0xf8] sm:$0xff] %vm230_vm0, %v2307_v0 }
  0x2c   : > { %488 = vst.msk [vmem:[#allocation2 + $0x100] sm:$0x3] %vm457_vm1, %v2307_v0  ;;  %v259_v53 = vadd.f32 %v258_v51, %v257_v49  ;;  %v223_v49 = vld [vmem:[%s2406_s21 + $0xc8] sm:$0xff] }
  0x2d   : > { %489 = vst.msk [vmem:[#allocation2 + $0x108] sm:$0xff] %vm230_vm0, %v2307_v0 }
  0x2e   : > { %490 = vst.msk [vmem:[#allocation2 + $0x110] sm:$0xff] %vm230_vm0, %v2307_v0  ;;  %v261_v56 = vadd.f32 %v260_v54, %v259_v53  ;;  %v224_v54 = vld [vmem:[%s2406_s21 + $0xd0] sm:$0xff] }
  0x2f   : > { %491 = vst.msk [vmem:[#allocation2 + $0x118] sm:$0x3] %vm457_vm1, %v2307_v0 }
  0x30   : > { %492 = vst.msk [vmem:[#allocation2 + $0x120] sm:$0xff] %vm230_vm0, %v2307_v0  ;;  %v263_v59 = vadd.f32 %v262_v57, %v261_v56  ;;  %v225_v57 = vld [vmem:[%s2406_s21 + $0xd8] sm:$0xff] }
  0x31   : > { %493 = vst.msk [vmem:[#allocation2 + $0x128] sm:$0xff] %vm230_vm0, %v2307_v0 }
  0x32   : > { %494 = vst.msk [vmem:[#allocation2 + $0x130] sm:$0x3] %vm457_vm1, %v2307_v0  ;;  %v265_v4 = vadd.f32 %v264_v60, %v263_v59  ;;  %v226_v60 = vld [vmem:[%s2406_s21 + $0xe0] sm:$0xff] }
  0x33   : > { %495 = vst.msk [vmem:[#allocation2 + $0x138] sm:$0xff] %vm230_vm0, %v2307_v0 }
  0x34   : > { %496 = vst.msk [vmem:[#allocation2 + $0x140] sm:$0xff] %vm230_vm0, %v2307_v0 }
  0x35   : > { %497 = vst.msk [vmem:[#allocation2 + $0x148] sm:$0x3] %vm457_vm1, %v2307_v0 }
  0x36   : > { %498 = vst.msk [vmem:[#allocation2 + $0x150] sm:$0xff] %vm230_vm0, %v2307_v0 }
  0x37   : > { %499 = vst.msk [vmem:[#allocation2 + $0x158] sm:$0xff] %vm230_vm0, %v2307_v0 }
  0x38   : > { %500 = vst.msk [vmem:[#allocation2 + $0x160] sm:$0x3] %vm457_vm1, %v2307_v0 }
  0x39   : > { %501 = vst.msk [vmem:[#allocation2 + $0x168] sm:$0xff] %vm230_vm0, %v2307_v0 }
  0x3a   : > { %502 = vst.msk [vmem:[#allocation2 + $0x170] sm:$0xff] %vm230_vm0, %v2307_v0 }
  0x3b   : > { %503 = vst.msk [vmem:[#allocation2 + $0x178] sm:$0x3] %vm457_vm1, %v2307_v0 }
  0x3c   : > { %504 = vst.msk [vmem:[#allocation2 + $0x180] sm:$0xff] %vm230_vm0, %v2307_v0 }
  0x3d   : > { %505 = vst.msk [vmem:[#allocation2 + $0x188] sm:$0xff] %vm230_vm0, %v2307_v0 }
  0x3e   : > { %506 = vst.msk [vmem:[#allocation2 + $0x190] sm:$0x3] %vm457_vm1, %v2307_v0 }
  0x3f   : > { %507 = vst.msk [vmem:[#allocation2 + $0x198] sm:$0xff] %vm230_vm0, %v2307_v0 }
  0x40   : > { %508 = vst.msk [vmem:[#allocation2 + $0x1a0] sm:$0xff] %vm230_vm0, %v2307_v0 }
  0x41   : > { %509 = vst.msk [vmem:[#allocation2 + $0x1a8] sm:$0x3] %vm457_vm1, %v2307_v0  ;;  %vm1831_vm1 = vcmask 261120  }
  0x42   : > { %511 = vst.msk [vmem:[#allocation2 + $0x19] sm:$0xff] %vm230_vm0, %v2422_v10  ;;  %v266_v10 = vsel %vm230_vm0, %v216_v61, 0.0 }
  0x43   : > { %512 = vst.msk [vmem:[#allocation2 + $0x21] sm:$0xff] %vm230_vm0, %v2415_v9  ;;  %v217_v9 = vld [vmem:[%s2406_s21 + $0x98] sm:$0xff] }
  0x44   : > { %513 = vst.msk [vmem:[#allocation2 + $0x31] sm:$0xff] %vm230_vm0, %v2425_v11  ;;  %v268_v21 = vsel %vm230_vm0, %v217_v9, 0.0 }
  0x45   : > { %514 = vst.msk [vmem:[#allocation2 + $0x39] sm:$0xff] %vm230_vm0, %v2442_v15 }
  0x46   : > { %515 = vst.msk [vmem:[#allocation2 + $0x49] sm:$0xff] %vm230_vm0, %v2455_v20  ;;  %v267_v20 = vadd.f32 %v266_v10, %v265_v4 }
  0x47   : > { %516 = vst.msk [vmem:[#allocation2 + $0x51] sm:$0xff] %vm230_vm0, %v2464_v22 }
  0x48   : > { %517 = vst.msk [vmem:[#allocation2 + $0x61] sm:$0xff] %vm230_vm0, %v2473_v25 }
  0x49   : > { %v2559_v62 = vld [vmem:[#allocation2 + $0x18] sm:$0xff]  ;;  %518 = vst.msk [vmem:[#allocation2 + $0x69] sm:$0xff] %vm230_vm0, %v205_v28  ;;  %v269_v28 = vadd.f32 %v268_v21, %v267_v20 }
  0x4a   : > { %v2562_v63 = vld [vmem:[#allocation2 + $0x20] sm:$0xff]  ;;  %v2564_v0 = vld [vmem:[#allocation2 + $0x28] sm:$0x3]  ;;  %v651_v3 = vrot.slane %v2559_v62, 1  ;;  %519 = vst.msk [vmem:[#allocation2 + $0x79] sm:$0xff] %vm230_vm0, %v206_v31  ;;  %v229_v20 = vld [vmem:[%s2406_s21 + $0xf8] sm:$0xff] }
  0x4b   : > { %v652_v6 = vrot.slane %v2562_v63, 1  ;;  %v654_v7 = vrot.slane %v2564_v0, 1  ;;  %v2570_v8 = vld [vmem:[#allocation2 + $0x30] sm:$0xff]  ;;  %520 = vst.msk [vmem:[#allocation2 + $0x81] sm:$0xff] %vm230_vm0, %v207_v35  ;;  %v219_v31 = vld [vmem:[%s2406_s21 + $0xa8] sm:$0xff]  ;;  %v271_v39 = vadd.f32 %v270_v32, %v269_v28  ;;  %v282_v28 = vsel %vm230_vm0, %v224_v54, 0.0 }
  0x4c   : > { %v2575_v11 = vld [vmem:[#allocation2 + $0x38] sm:$0xff]  ;;  %v656_v12 = vrot.slane %v2570_v8, 1  ;;  %v2578_v13 = vld [vmem:[#allocation2 + $0x40] sm:$0x3]  ;;  %521 = vst.msk [vmem:[#allocation2 + $0x91] sm:$0xff] %vm230_vm0, %v208_v38  ;;  %v272_v44 = vsel %vm230_vm0, %v219_v31, 0.0 }
  0x4d   : > { %v2582_v14 = vsel %vm645_vm2, %v652_v6, %v654_v7  ;;  %v657_v15 = vrot.slane %v2575_v11, 1  ;;  %v2586_v16 = vsel %vm645_vm2, %v651_v3, %v652_v6  ;;  %v2588_v17 = vld [vmem:[#allocation2 + $0x48] sm:$0xff]  ;;  %522 = vst.msk [vmem:[#allocation2 + $0x99] sm:$0xff] %vm230_vm0, %v209_v40  ;;  %v659_v25 = vrot.slane %v2578_v13, 1 }
  0x4e   : > { %839 = vrot.lane.b32.xlu0 %v2582_v14, %s2308_s17  ;;  %837 = vrot.lane.b32.xlu2 %v2586_v16, %s2308_s17  ;;  %v2595_v18 = vld [vmem:[#allocation2 + $0x50] sm:$0xff]  ;;  %v2597_v19 = vld [vmem:[#allocation2 + $0x58] sm:$0x3]  ;;  %523 = vst.msk [vmem:[#allocation2 + $0xa9] sm:$0xff] %vm230_vm0, %v210_v43  ;;  %v661_v23 = vrot.slane %v2588_v17, 1  ;;  %v227_v3 = vld [vmem:[%s2406_s21 + $0xe8] sm:$0xff] }
  0x4f   : > { %v2602_v22 = vsel %vm645_vm2, %v656_v12, %v657_v15  ;;  %v662_v24 = vrot.slane %v2595_v18, 1  ;;  %524 = vst.msk [vmem:[#allocation2 + $0xb1] sm:$0xff] %vm230_vm0, %v2518_v46  ;;  %v664_v27 = vrot.slane %v2597_v19, 1  ;;  %v2620_v30 = vsel %vm645_vm2, %v657_v15, %v659_v25  ;;  %v2629_v35 = vld [vmem:[#allocation2 + $0x60] sm:$0xff]  ;;  %v220_v43 = vld [vmem:[%s2406_s21 + $0xb0] sm:$0xff] }
  0x50   : > { %841 = vrot.lane.b32.xlu1 %v2602_v22, %s2308_s17  ;;  %525 = vst.msk [vmem:[#allocation2 + $0xc1] sm:$0xff] %vm230_vm0, %v212_v50  ;;  %v2625_v33 = vld [vmem:[#allocation2 + $0x68] sm:$0xff]  ;;  %v2627_v34 = vld [vmem:[#allocation2 + $0x70] sm:$0x3]  ;;  %v666_v42 = vrot.slane %v2629_v35, 1  ;;  %v273_v50 = vadd.f32 %v272_v44, %v271_v39  ;;  %v276_v6 = vsel %vm230_vm0, %v221_v45, 0.0 }
  0x51   : > { %526 = vst.msk [vmem:[#allocation2 + $0xc9] sm:$0xff] %vm230_vm0, %v213_v52  ;;  %v2617_v29 = vsel %vm645_vm2, %v661_v23, %v662_v24  ;;  %v2633_v36 = vsel %vm645_vm2, %v662_v24, %v664_v27  ;;  %v2640_v37 = vld [vmem:[#allocation2 + $0x78] sm:$0xff]  ;;  %v667_v40 = vrot.slane %v2625_v33, 1  ;;  %v669_v41 = vrot.slane %v2627_v34, 1  ;;  %v228_v12 = vld [vmem:[%s2406_s21 + $0xf0] sm:$0xff] }
  0x52   : > { %527 = vst.msk [vmem:[#allocation2 + $0xd9] sm:$0xff] %vm230_vm0, %v214_v55  ;;  %v2642_v38 = vld [vmem:[#allocation2 + $0x80] sm:$0xff]  ;;  %v671_v46 = vrot.slane %v2640_v37, 1  ;;  %v2667_v53 = vld [vmem:[#allocation2 + $0x88] sm:$0x3]  ;;  %v278_v15 = vsel %vm230_vm0, %v222_v48, 0.0 }
  0x53   : > { %4679 = vst [vmem:[#allocation3_spill] sm:$0xff] %v2617_v29  ;;  %v672_v47 = vrot.slane %v2642_v38, 1  ;;  %v2662_v51 = vsel %vm645_vm2, %v667_v40, %v669_v41  ;;  %v2665_v52 = vsel %vm645_vm2, %v666_v42, %v667_v40  ;;  %v2671_v55 = vld [vmem:[#allocation2 + $0x90] sm:$0xff]  ;;  %v674_v10 = vrot.slane %v2667_v53, 1 }
  0x54   : > { %4680 = vst [vmem:[#allocation4_spill] sm:$0xff] %v2620_v30  ;;  %v2673_v56 = vld [vmem:[#allocation2 + $0x98] sm:$0xff]  ;;  %v676_v7 = vrot.slane %v2671_v55, 1  ;;  %v280_v24 = vsel %vm230_vm0, %v223_v49, 0.0  ;;  %v2309_v41 = vmov 256.0  }
  0x55   : > { %528 = vst.msk [vmem:[#allocation2 + $0xe1] sm:$0xff] %vm230_vm0, %v215_v58  ;;  %v274_v58 = vsel %vm230_vm0, %v220_v43, 0.0  ;;  %v2679_v59 = vsel %vm645_vm2, %v671_v46, %v672_v47  ;;  %v2709_v27 = vsel %vm645_vm2, %v672_v47, %v674_v10  ;;  %v2716_v39 = vld [vmem:[#allocation2 + $0xa8] sm:$0xff]  ;;  %2260 = vrcp.f32 %v2309_v41 }
  0x56   : > { %529 = vst.msk [vmem:[#allocation2 + $0xf1] sm:$0xff] %vm230_vm0, %v216_v61  ;;  %845 = vrot.lane.b32.xlu0 %v2617_v29, %s2308_s17  ;;  %843 = vrot.lane.b32.xlu2 %v2620_v30, %s2308_s17  ;;  %v2687_v61 = vld [vmem:[#allocation2 + $0xa0] sm:$0x3]  ;;  %v275_v4 = vadd.f32 %v274_v58, %v273_v50  ;;  %v2714_v32 = vld [vmem:[#allocation2 + $0xb8] sm:$0x3]  ;;  %v286_v50 = vsel %vm230_vm0, %v226_v60, 0.0 }
  0x57   : > { %4681 = vst [vmem:[#allocation5_spill] sm:$0xff] %v2633_v36  ;;  %v679_v23 = vrot.slane %v2687_v61, 1  ;;  %v2726_v44 = vld [vmem:[#allocation2 + $0xc0] sm:$0xff]  ;;  %v727_v30 = vrot.slane %v2381_v5, 2  ;;  %v738_v5 = vrot.slane %v2575_v11, 2 }
  0x58   : > { %530 = vst.msk [vmem:[#allocation2 + $0xf9] sm:$0xff] %vm230_vm0, %v217_v9  ;;  %847 = vrot.lane.b32.xlu1 %v2633_v36, %s2308_s17  ;;  %v677_v9 = vrot.slane %v2673_v56, 1  ;;  %v277_v21 = vadd.f32 %v276_v6, %v275_v4  ;;  %v288_v4 = vsel %vm230_vm0, %v227_v3, 0.0 }
  0x59   : > { %531 = vst.msk [vmem:[#allocation2 + $0x109] sm:$0xff] %vm230_vm0, %v218_v26 }
  0x5a   : > { %532 = vst.msk [vmem:[#allocation2 + $0x111] sm:$0xff] %vm230_vm0, %v219_v31  ;;  %v279_v25 = vadd.f32 %v278_v15, %v277_v21  ;;  %v2706_v26 = vsel %vm645_vm2, %v676_v7, %v677_v9  ;;  %v2712_v31 = vld [vmem:[#allocation2 + $0xb0] sm:$0xff]  ;;  %v2719_v42 = vsel %vm645_vm2, %v677_v9, %v679_v23  ;;  %v2746_v21 = vld [vmem:[#allocation2 + $0xd8] sm:$0xff] }
  0x5b   : > { %533 = vst.msk [vmem:[#allocation2 + $0x121] sm:$0xff] %vm230_vm0, %v220_v43  ;;  %v284_v43 = vsel %vm230_vm0, %v225_v57, 0.0  ;;  %v682_v47 = vrot.slane %v2712_v31, 1  ;;  %v2261_v6 = vpop.eup %2260 }
  0x5c   : > { %534 = vst.msk [vmem:[#allocation2 + $0x129] sm:$0xff] %vm230_vm0, %v221_v45  ;;  %v281_v40 = vadd.f32 %v280_v24, %v279_v25  ;;  %v2728_v45 = vld [vmem:[#allocation2 + $0xc8] sm:$0xff]  ;;  %v301_v15 = vmul.f32 256.0, %v2261_v6  ;;  %v2748_v23 = vld [vmem:[#allocation2 + $0xe0] sm:$0xff]  ;;  %v2750_v24 = vld [vmem:[#allocation2 + $0xd0] sm:$0x3]  ;;  %vm305_vm4 = vweird.f32 %v2261_v6 }
  0x5d   : > { %535 = vst.msk [vmem:[#allocation2 + $0x139] sm:$0xff] %vm230_vm0, %v222_v48  ;;  %v684_v48 = vrot.slane %v2714_v32, 1  ;;  %v687_v58 = vrot.slane %v2728_v45, 1 }
  0x5e   : > { %4682 = vst [vmem:[#allocation6_spill] sm:$0xff] %v2662_v51  ;;  %851 = vrot.lane.b32.xlu0 %v2662_v51, %s2308_s17  ;;  %849 = vrot.lane.b32.xlu2 %v2665_v52, %s2308_s17  ;;  %v283_v46 = vadd.f32 %v282_v28, %v281_v40  ;;  %v292_v28 = vsel %vm230_vm0, %v229_v20, 0.0  ;;  %v308_v40 = vld [vmem:[%s4579_s1] sm:$0xf] }
  0x5f   : > { %4683 = vst [vmem:[#allocation7_spill] sm:$0xff] %v2665_v52  ;;  %v2740_v9 = vsel %vm645_vm2, %v682_v47, %v684_v48  ;;  %2174 = vmatpush.msk.msra.mxu0 %vm312_vm3, %v308_v40 }
  0x60   : > { %536 = vst.msk [vmem:[#allocation2 + $0x141] sm:$0xff] %vm230_vm0, %v223_v49  ;;  %853 = vrot.lane.b32.xlu1 %v2679_v59, %s2308_s17  ;;  %v681_v49 = vrot.slane %v2716_v39, 1 }
  0x61   : > { %537 = vst.msk [vmem:[#allocation2 + $0x151] sm:$0xff] %vm230_vm0, %v224_v54  ;;  %v285_v54 = vadd.f32 %v284_v43, %v283_v46  ;;  %v691_v43 = vrot.slane %v2746_v21, 1  ;;  %v692_v46 = vrot.slane %v2748_v23, 1 }
  0x62   : > { %4684 = vst [vmem:[#allocation8_spill] sm:$0xff] %v2679_v59  ;;  %v2743_v10 = vsel %vm645_vm2, %v681_v49, %v682_v47  ;;  %v302_v47 = vsub.f32 1.0, %v301_v15  ;;  %v728_v59 = vrot.slane %v2367_v1, 2 }
  0x63   : > { %538 = vst.msk [vmem:[#allocation2 + $0x159] sm:$0xff] %vm230_vm0, %v225_v57  ;;  %v686_v57 = vrot.slane %v2726_v44, 1  ;;  %v287_v7 = vadd.f32 %v286_v50, %v285_v54  ;;  %v2773_v54 = vsel %vm645_vm2, %v691_v43, %v692_v46 }
  0x64   : > { %539 = vst.msk [vmem:[#allocation2 + $0x169] sm:$0xff] %vm230_vm0, %v226_v60  ;;  %v290_v60 = vsel %vm230_vm0, %v228_v12, 0.0 }
  0x65   : > { %540 = vst.msk [vmem:[#allocation2 + $0x171] sm:$0xff] %vm230_vm0, %v227_v3  ;;  %v289_v25 = vadd.f32 %v288_v4, %v287_v7  ;;  %v2753_v3 = vsel %vm645_vm2, %v686_v57, %v687_v58  ;;  %v303_v4 = vmul.f32 %v2261_v6, %v302_v47  ;;  %v2778_v7 = vld [vmem:[#allocation2 + $0xf8] sm:$0xff] }
  0x66   : > { %541 = vst.msk [vmem:[#allocation2 + $0x181] sm:$0xff] %vm230_vm0, %v228_v12  ;;  %857 = vrot.lane.b32.xlu0 %v2706_v26, %s2308_s17  ;;  %855 = vrot.lane.b32.xlu2 %v2709_v27, %s2308_s17  ;;  %v2760_v12 = vld [vmem:[#allocation2 + $0xe8] sm:$0x3]  ;;  %v697_v43 = vrot.slane %v2778_v7, 1 }
  0x67   : > { %542 = vst.msk [vmem:[#allocation2 + $0x189] sm:$0xff] %vm230_vm0, %v229_v20  ;;  %v291_v41 = vadd.f32 %v290_v60, %v289_v25  ;;  %v689_v20 = vrot.slane %v2750_v24, 1  ;;  %v694_v49 = vrot.slane %v2760_v12, 1  ;;  %v2780_v60 = vld [vmem:[#allocation2 + $0x100] sm:$0x3]  ;;  %v2782_v25 = vld [vmem:[#allocation2 + $0xf0] sm:$0xff] }
  0x68   : > { %4685 = vst [vmem:[#allocation9_spill] sm:$0xff] %v2706_v26  ;;  %859 = vrot.lane.b32.xlu1 %v2719_v42, %s2308_s17  ;;  %v696_v47 = vrot.slane %v2782_v25, 1 }
  0x69   : > { %4686 = vst [vmem:[#allocation10_spill] sm:$0xff] %v2709_v27  ;;  %v293_v48 = vadd.f32 %v292_v28, %v291_v41  ;;  %v2776_v57 = vsel %vm645_vm2, %v687_v58, %v689_v20  ;;  %v2785_v40 = vsel %vm645_vm2, %v692_v46, %v694_v49  ;;  %v2791_v28 = vld [vmem:[#allocation2 + $0x108] sm:$0xff]  ;;  %v2793_v58 = vld [vmem:[#allocation2 + $0x110] sm:$0xff]  ;;  %v699_v20 = vrot.slane %v2780_v60, 1  ;;  %v2812_v27 = vld [vmem:[#allocation2 + $0x118] sm:$0x3] }
  0x6a   : > { %4687 = vst [vmem:[#allocation11_spill] sm:$0xff] %v2719_v42  ;;  %v701_v49 = vrot.slane %v2791_v28, 1  ;;  %v2870_v42 = vld [vmem:[#allocation2 + $0x160] sm:$0x3] }
  0x6b   : > { %4688 = vst [vmem:[#allocation12_spill] sm:$0xff] %v2740_v9  ;;  %v294_v50 = vrot.slane %v293_v48, 4 }
  0x6c   : > { %4689 = vst [vmem:[#allocation13_spill] sm:$0xff] %v2743_v10  ;;  %v2868_v26 = vld [vmem:[#allocation2 + $0x170] sm:$0xff] }
  0x6d   : > { %4690 = vst [vmem:[#allocation14_spill] sm:$0xff] %v2753_v3  ;;  %v295_v15 = vadd.f32 %v294_v50, %v293_v48  ;;  %v304_v48 = vadd.f32 %v2261_v6, %v303_v4  ;;  %v702_v50 = vrot.slane %v2793_v58, 1  ;;  %v2810_v4 = vld [vmem:[#allocation2 + $0x128] sm:$0xff] }
  0x6e   : > { %863 = vrot.lane.b32.xlu0 %v2740_v9, %s2308_s17  ;;  %861 = vrot.lane.b32.xlu2 %v2743_v10, %s2308_s17  ;;  %4691 = vst [vmem:[#allocation15_spill] sm:$0xff] %v2773_v54  ;;  %v2806_v10 = vsel %vm645_vm2, %v696_v47, %v697_v43  ;;  %v707_v47 = vrot.slane %v2810_v4, 1 }
  0x6f   : > { %4692 = vst [vmem:[#allocation16_spill] sm:$0xff] %v2776_v57  ;;  %v296_v41 = vrot.slane %v295_v15, 2  ;;  %v306_v9 = vsel %vm305_vm4, %v2261_v6, %v304_v48  ;;  %v704_v48 = vrot.slane %v2812_v27, 1 }
  0x70   : > { %865 = vrot.lane.b32.xlu1 %v2753_v3, %s2308_s17  ;;  %4693 = vst [vmem:[#allocation17_spill] sm:$0xff] %v2785_v40  ;;  %v2808_v3 = vld [vmem:[#allocation2 + $0x120] sm:$0xff] }
  0x71   : > { %v297_v46 = vadd.f32 %v296_v41, %v295_v15  ;;  %4695 = vst [vmem:[#allocation19_spill] sm:$0xff] %v2806_v10  ;;  %v2815_v41 = vsel %vm645_vm2, %v701_v49, %v702_v50  ;;  %v706_v6 = vrot.slane %v2808_v3, 1  ;;  %v2834_v49 = vsel %vm645_vm2, %v702_v50, %v704_v48 }
  0x72   : > { %4696 = vst [vmem:[#allocation20_spill] sm:$0xff] %v2815_v41  ;;  %v2914_v1 = vpop.permute.xlu2 %835 }
  0x73   : > { %4698 = vst [vmem:[#allocation22_spill] sm:$0xff] %v2834_v49 }
  0x74   : > { %4706 = vst [vmem:[#allocation30_spill] sm:$0xff] %v2914_v1  ;;  %v750_v1 = vrot.slane %v2627_v34, 2  ;;  %v758_v34 = vrot.slane %v2673_v56, 2 }
  0x76   : > { %869 = vrot.lane.b32.xlu0 %v2773_v54, %s2308_s17  ;;  %867 = vrot.lane.b32.xlu2 %v2776_v57, %s2308_s17  ;;  %v298_v57 = vrot.slane %v297_v46, 1  ;;  %v2803_v54 = vsel %vm645_vm2, %v697_v43, %v699_v20  ;;  %v2821_v20 = vld [vmem:[#allocation2 + $0x130] sm:$0x3] }
  0x77   : > { %4694 = vst [vmem:[#allocation18_spill] sm:$0xff] %v2803_v54 }
  0x78   : > { %871 = vrot.lane.b32.xlu1 %v2785_v40, %s2308_s17  ;;  %v299_v15 = vadd.f32 %v298_v57, %v297_v46  ;;  %v709_v57 = vrot.slane %v2821_v20, 1  ;;  %v2831_v46 = vsel %vm645_vm2, %v706_v6, %v707_v47  ;;  %v2851_v6 = vld [vmem:[#allocation2 + $0x158] sm:$0xff]  ;;  %v2866_v40 = vld [vmem:[#allocation2 + $0x168] sm:$0xff] }
  0x79   : > { %4697 = vst [vmem:[#allocation21_spill] sm:$0xff] %v2831_v46 }
  0x7a   : > { %v307_v43 = vmul.f32 %v306_v9, %v299_v15  ;;  %v2836_v9 = vld [vmem:[#allocation2 + $0x140] sm:$0xff]  ;;  %v2838_v15 = vld [vmem:[#allocation2 + $0x148] sm:$0x3] }
  0x7b   : > { %v712_v50 = vrot.slane %v2836_v9, 1  ;;  %v714_v48 = vrot.slane %v2838_v15, 1 }
  0x7c   : > { %2175 = vmatmul.msk.f32.vlgmr.msra.gmra.mxu0 %vm230_vm0, %v307_v43  ;;  %v2849_v43 = vld [vmem:[#allocation2 + $0x150] sm:$0xff] }
  0x7e   : > { %875 = vrot.lane.b32.xlu0 %v2803_v54, %s2308_s17  ;;  %873 = vrot.lane.b32.xlu2 %v2806_v10, %s2308_s17  ;;  %v2840_v10 = vld [vmem:[#allocation2 + $0x138] sm:$0xff]  ;;  %v2843_v54 = vsel %vm645_vm2, %v707_v47, %v709_v57  ;;  %v716_v47 = vrot.slane %v2849_v43, 1  ;;  %v717_v57 = vrot.slane %v2851_v6, 1 }
  0x7f   : > { %4699 = vst [vmem:[#allocation23_spill] sm:$0xff] %v2843_v54 }
  0x80   : > { %877 = vrot.lane.b32.xlu1 %v2815_v41, %s2308_s17  ;;  %v711_v41 = vrot.slane %v2840_v10, 1  ;;  %v2873_v52 = vsel %vm645_vm2, %v716_v47, %v717_v57 }
  0x81   : > { %4702 = vst [vmem:[#allocation26_spill] sm:$0xff] %v2873_v52 }
  0x86   : > { %881 = vrot.lane.b32.xlu0 %v2831_v46, %s2308_s17  ;;  %879 = vrot.lane.b32.xlu2 %v2834_v49, %s2308_s17  ;;  %v2861_v46 = vsel %vm645_vm2, %v712_v50, %v714_v48  ;;  %v2864_v49 = vsel %vm645_vm2, %v711_v41, %v712_v50  ;;  %v2879_v48 = vld [vmem:[#allocation2 + $0x178] sm:$0x3]  ;;  %v721_v41 = vrot.slane %v2866_v40, 1  ;;  %v722_v50 = vrot.slane %v2868_v26, 1 }
  0x87   : > { %4700 = vst [vmem:[#allocation24_spill] sm:$0xff] %v2861_v46  ;;  %v724_v47 = vrot.slane %v2879_v48, 1 }
  0x88   : > { %883 = vrot.lane.b32.xlu1 %v2843_v54, %s2308_s17  ;;  %4701 = vst [vmem:[#allocation25_spill] sm:$0xff] %v2864_v49  ;;  %v719_v54 = vrot.slane %v2870_v42, 1  ;;  %v2888_v51 = vsel %vm645_vm2, %v721_v41, %v722_v50 }
  0x89   : > { %4703 = vst [vmem:[#allocation27_spill] sm:$0xff] %v2888_v51 }
  0x8e   : > { %887 = vrot.lane.b32.xlu0 %v2861_v46, %s2308_s17  ;;  %885 = vrot.lane.b32.xlu2 %v2864_v49, %s2308_s17  ;;  %v2891_v46 = vsel %vm645_vm2, %v717_v57, %v719_v54  ;;  %v2894_v49 = vsel %vm645_vm2, %v722_v50, %v724_v47  ;;  %v732_v54 = vrot.slane %v2559_v62, 2  ;;  %v733_v57 = vrot.slane %v2562_v63, 2 }
  0x8f   : > { %4704 = vst [vmem:[#allocation28_spill] sm:$0xff] %v2891_v46  ;;  %v729_v50 = vsel %vm726_vm5, %v727_v30, %v728_v59  ;;  %v740_v30 = vrot.slane %v2578_v13, 2  ;;  %v742_v13 = vrot.slane %v2588_v17, 2 }
  0x90   : > { %889 = vrot.lane.b32.xlu1 %v2873_v52, %s2308_s17  ;;  %4705 = vst [vmem:[#allocation29_spill] sm:$0xff] %v2894_v49  ;;  %v730_v52 = vrot.slane %v2371_v2, 2  ;;  %v2910_v47 = vsel %vm726_vm5, %v732_v54, %v733_v57  ;;  %v737_v2 = vrot.slane %v2570_v8, 2 }
  0x91   : > { %v2929_v54 = vsel %vm726_vm5, %v738_v5, %v740_v30 }
  0x92   : > { %v731_v41 = vsel %vm726_vm5, %v728_v59, %v730_v52  ;;  %v2923_v52 = vsel %vm726_vm5, %v737_v2, %v738_v5  ;;  %4708 = vst [vmem:[#allocation32_spill] sm:$0xff] %v2929_v54 }
  0x93   : > { %4707 = vst [vmem:[#allocation31_spill] sm:$0xff] %v2923_v52 }
  0x96   : > { %893 = vrot.lane.b32.xlu0 %v2888_v51, %s2308_s17  ;;  %891 = vrot.lane.b32.xlu2 %v2891_v46, %s2308_s17  ;;  %v735_v46 = vrot.slane %v2564_v0, 2  ;;  %v743_v0 = vrot.slane %v2595_v18, 2 }
  0x98   : > { %895 = vrot.lane.b32.xlu1 %v2894_v49, %s2308_s17  ;;  %v2926_v59 = vsel %vm726_vm5, %v733_v57, %v735_v46  ;;  %v747_v57 = vrot.slane %v2629_v35, 2  ;;  %v2948_v5 = vsel %vm726_vm5, %v742_v13, %v743_v0 }
  0x99   : > { %4711 = vst [vmem:[#allocation35_spill] sm:$0xff] %v2948_v5 }
  0x9e   : > { %931 = vrot.lane.b32.xlu0 %v731_v41, %s2310_s24  ;;  %929 = vrot.lane.b32.xlu2 %v729_v50, %s2310_s24  ;;  %v745_v41 = vrot.slane %v2597_v19, 2  ;;  %v748_v50 = vrot.slane %v2625_v33, 2  ;;  %v752_v19 = vrot.slane %v2640_v37, 2 }
  0xa0   : > { %933 = vrot.lane.b32.xlu1 %v2910_v47, %s2310_s24  ;;  %v2945_v2 = vsel %vm726_vm5, %v743_v0, %v745_v41  ;;  %v2951_v30 = vsel %vm726_vm5, %v747_v57, %v748_v50  ;;  %v755_v41 = vrot.slane %v2667_v53, 2  ;;  %v2969_v57 = vsel %vm726_vm5, %v748_v50, %v750_v1  ;;  %v2983_v1 = vpop.permute.xlu1 %833 }
  0xa1   : > { %4710 = vst [vmem:[#allocation34_spill] sm:$0xff] %v2945_v2  ;;  %v757_v53 = vrot.slane %v2671_v55, 2 }
  0xa2   : > { %4712 = vst [vmem:[#allocation36_spill] sm:$0xff] %v2951_v30 }
  0xa3   : > { %4715 = vst [vmem:[#allocation39_spill] sm:$0xff] %v2969_v57 }
  0xa4   : > { %4717 = vst [vmem:[#allocation41_spill] sm:$0xff] %v2983_v1  ;;  %v768_v1 = vrot.slane %v2728_v45, 2 }
  0xa6   : > { %937 = vrot.lane.b32.xlu0 %v2923_v52, %s2310_s24  ;;  %935 = vrot.lane.b32.xlu2 %v2926_v59, %s2310_s24 }
  0xa8   : > { %939 = vrot.lane.b32.xlu1 %v2929_v54, %s2310_s24  ;;  %v2940_v46 = vpop.permute.xlu2 %837 }
  0xa9   : > { %4709 = vst [vmem:[#allocation33_spill] sm:$0xff] %v2940_v46  ;;  %v753_v46 = vrot.slane %v2642_v38, 2 }
  0xab   : > { %v2966_v13 = vsel %vm726_vm5, %v752_v19, %v753_v46  ;;  %v763_v19 = vrot.slane %v2712_v31, 2 }
  0xac   : > { %4714 = vst [vmem:[#allocation38_spill] sm:$0xff] %v2966_v13 }
  0xae   : > { %943 = vrot.lane.b32.xlu0 %v2945_v2, %s2310_s24  ;;  %941 = vrot.lane.b32.xlu2 %v2948_v5, %s2310_s24  ;;  %v2972_v5 = vsel %vm726_vm5, %v753_v46, %v755_v41  ;;  %v762_v46 = vrot.slane %v2716_v39, 2 }
  0xaf   : > { %4716 = vst [vmem:[#allocation40_spill] sm:$0xff] %v2972_v5 }
  0xb0   : > { %945 = vrot.lane.b32.xlu1 %v2951_v30, %s2310_s24  ;;  %v2962_v0 = vpop.permute.xlu2 %843 }
  0xb1   : > { %4713 = vst [vmem:[#allocation37_spill] sm:$0xff] %v2962_v0  ;;  %v760_v0 = vrot.slane %v2687_v61, 2  ;;  %v2996_v61 = vsel %vm726_vm5, %v762_v46, %v763_v19 }
  0xb2   : > { %4721 = vst [vmem:[#allocation45_spill] sm:$0xff] %v2996_v61 }
  0xb3   : > { %v2990_v41 = vsel %vm726_vm5, %v758_v34, %v760_v0 }
  0xb4   : > { %4719 = vst [vmem:[#allocation43_spill] sm:$0xff] %v2990_v41 }
  0xb6   : > { %949 = vrot.lane.b32.xlu0 %v2966_v13, %s2310_s24  ;;  %947 = vrot.lane.b32.xlu2 %v2969_v57, %s2310_s24  ;;  %v2993_v57 = vsel %vm726_vm5, %v757_v53, %v758_v34  ;;  %v765_v13 = vrot.slane %v2714_v32, 2  ;;  %v770_v53 = vrot.slane %v2750_v24, 2  ;;  %v773_v32 = vrot.slane %v2748_v23, 2 }
  0xb7   : > { %4720 = vst [vmem:[#allocation44_spill] sm:$0xff] %v2993_v57  ;;  %v775_v24 = vrot.slane %v2760_v12, 2 }
  0xb8   : > { %951 = vrot.lane.b32.xlu1 %v2972_v5, %s2310_s24  ;;  %v2985_v50 = vpop.permute.xlu2 %849  ;;  %v3021_v5 = vsel %vm726_vm5, %v768_v1, %v770_v53 }
  0xb9   : > { %4718 = vst [vmem:[#allocation42_spill] sm:$0xff] %v2985_v50  ;;  %v767_v50 = vrot.slane %v2726_v44, 2 }
  0xba   : > { %4727 = vst [vmem:[#allocation51_spill] sm:$0xff] %v3021_v5 }
  0xbe   : > { %955 = vrot.lane.b32.xlu0 %v2990_v41, %s2310_s24  ;;  %953 = vrot.lane.b32.xlu2 %v2993_v57, %s2310_s24  ;;  %v3015_v41 = vsel %vm726_vm5, %v767_v50, %v768_v1  ;;  %v3018_v57 = vsel %vm726_vm5, %v763_v19, %v765_v13  ;;  %v777_v1 = vrot.slane %v2782_v25, 2  ;;  %v778_v19 = vrot.slane %v2778_v7, 2 }
  0xbf   : > { %4725 = vst [vmem:[#allocation49_spill] sm:$0xff] %v3015_v41 }
  0xc0   : > { %v3005_v0 = vpop.permute.xlu0 %839  ;;  %957 = vrot.lane.b32.xlu1 %v2996_v61, %s2310_s24  ;;  %v3009_v34 = vpop.permute.xlu2 %855  ;;  %4726 = vst [vmem:[#allocation50_spill] sm:$0xff] %v3018_v57 }
  0xc1   : > { %4722 = vst [vmem:[#allocation46_spill] sm:$0xff] %v3005_v0  ;;  %v3041_v0 = vsel %vm726_vm5, %v773_v32, %v775_v24 }
  0xc2   : > { %4723 = vst [vmem:[#allocation47_spill] sm:$0xff] %v3009_v34  ;;  %v3012_v46 = vpop.permute.xlu1 %841  ;;  %v772_v34 = vrot.slane %v2746_v21, 2 }
  0xc3   : > { %4724 = vst [vmem:[#allocation48_spill] sm:$0xff] %v3012_v46  ;;  %v3047_v46 = vsel %vm726_vm5, %v777_v1, %v778_v19 }
  0xc4   : > { %4731 = vst [vmem:[#allocation55_spill] sm:$0xff] %v3041_v0  ;;  %v3044_v12 = vsel %vm726_vm5, %v772_v34, %v773_v32  ;;  %v785_v32 = vrot.slane %v2812_v27, 2  ;;  %v790_v27 = vrot.slane %v2821_v20, 2 }
  0xc5   : > { %4732 = vst [vmem:[#allocation56_spill] sm:$0xff] %v3044_v12 }
  0xc6   : > { %961 = vrot.lane.b32.xlu0 %v3015_v41, %s2310_s24  ;;  %959 = vrot.lane.b32.xlu2 %v3018_v57, %s2310_s24 }
  0xc8   : > { %v3030_v50 = vpop.permute.xlu0 %845  ;;  %963 = vrot.lane.b32.xlu1 %v3021_v5, %s2310_s24  ;;  %v3034_v13 = vpop.permute.xlu2 %861 }
  0xc9   : > { %4728 = vst [vmem:[#allocation52_spill] sm:$0xff] %v3030_v50  ;;  %v782_v50 = vrot.slane %v2791_v28, 2 }
  0xca   : > { %4729 = vst [vmem:[#allocation53_spill] sm:$0xff] %v3034_v13  ;;  %v3038_v53 = vpop.permute.xlu1 %847  ;;  %v783_v13 = vrot.slane %v2793_v58, 2 }
  0xcb   : > { %4730 = vst [vmem:[#allocation54_spill] sm:$0xff] %v3038_v53  ;;  %v780_v53 = vrot.slane %v2780_v60, 2  ;;  %v788_v60 = vrot.slane %v2810_v4, 2 }
  0xcc   : > { %v3072_v57 = vsel %vm726_vm5, %v783_v13, %v785_v32 }
  0xcd   : > { %4738 = vst [vmem:[#allocation62_spill] sm:$0xff] %v3072_v57 }
  0xce   : > { %967 = vrot.lane.b32.xlu0 %v3041_v0, %s2310_s24  ;;  %965 = vrot.lane.b32.xlu2 %v3044_v12, %s2310_s24  ;;  %v3066_v0 = vsel %vm726_vm5, %v782_v50, %v783_v13  ;;  %v3069_v12 = vsel %vm726_vm5, %v778_v19, %v780_v53  ;;  %v792_v13 = vrot.slane %v2840_v10, 2  ;;  %v793_v53 = vrot.slane %v2836_v9, 2 }
  0xcf   : > { %4736 = vst [vmem:[#allocation60_spill] sm:$0xff] %v3066_v0 }
  0xd0   : > { %v3056_v24 = vpop.permute.xlu0 %851  ;;  %969 = vrot.lane.b32.xlu1 %v3047_v46, %s2310_s24  ;;  %v3060_v34 = vpop.permute.xlu2 %867  ;;  %4737 = vst [vmem:[#allocation61_spill] sm:$0xff] %v3069_v12 }
  0xd1   : > { %4733 = vst [vmem:[#allocation57_spill] sm:$0xff] %v3056_v24  ;;  %v787_v24 = vrot.slane %v2808_v3, 2 }
  0xd2   : > { %4734 = vst [vmem:[#allocation58_spill] sm:$0xff] %v3060_v34  ;;  %v3063_v1 = vpop.permute.xlu1 %853  ;;  %v3098_v34 = vsel %vm726_vm5, %v792_v13, %v793_v53 }
  0xd3   : > { %4735 = vst [vmem:[#allocation59_spill] sm:$0xff] %v3063_v1  ;;  %v3092_v1 = vsel %vm726_vm5, %v788_v60, %v790_v27  ;;  %v3095_v20 = vsel %vm726_vm5, %v787_v24, %v788_v60  ;;  %v800_v60 = vrot.slane %v2870_v42, 2  ;;  %v805_v42 = vrot.slane %v2879_v48, 2 }
  0xd4   : > { %4742 = vst [vmem:[#allocation66_spill] sm:$0xff] %v3092_v1 }
  0xd5   : > { %4743 = vst [vmem:[#allocation67_spill] sm:$0xff] %v3095_v20 }
  0xd6   : > { %973 = vrot.lane.b32.xlu0 %v3066_v0, %s2310_s24  ;;  %971 = vrot.lane.b32.xlu2 %v3069_v12, %s2310_s24  ;;  %4744 = vst [vmem:[#allocation68_spill] sm:$0xff] %v3098_v34 }
  0xd8   : > { %v3081_v50 = vpop.permute.xlu0 %857  ;;  %975 = vrot.lane.b32.xlu1 %v3072_v57, %s2310_s24  ;;  %v3085_v19 = vpop.permute.xlu2 %873 }
  0xd9   : > { %4739 = vst [vmem:[#allocation63_spill] sm:$0xff] %v3081_v50  ;;  %v797_v50 = vrot.slane %v2849_v43, 2 }
  0xda   : > { %4740 = vst [vmem:[#allocation64_spill] sm:$0xff] %v3085_v19  ;;  %v3089_v32 = vpop.permute.xlu1 %859  ;;  %v798_v19 = vrot.slane %v2851_v6, 2 }
  0xdb   : > { %4741 = vst [vmem:[#allocation65_spill] sm:$0xff] %v3089_v32  ;;  %v795_v32 = vrot.slane %v2838_v15, 2  ;;  %v803_v15 = vrot.slane %v2868_v26, 2 }
  0xdc   : > { %v3123_v12 = vsel %vm726_vm5, %v798_v19, %v800_v60 }
  0xde   : > { %979 = vrot.lane.b32.xlu0 %v3092_v1, %s2310_s24  ;;  %977 = vrot.lane.b32.xlu2 %v3095_v20, %s2310_s24  ;;  %v3117_v1 = vsel %vm726_vm5, %v797_v50, %v798_v19  ;;  %v3120_v20 = vsel %vm726_vm5, %v793_v53, %v795_v32  ;;  %v3141_v32 = vsel %vm726_vm5, %v803_v15, %v805_v42 }
  0xdf   : > { %4747 = vst [vmem:[#allocation71_spill] sm:$0xff] %v3120_v20 }
  0xe0   : > { %v3107_v27 = vpop.permute.xlu0 %863  ;;  %981 = vrot.lane.b32.xlu1 %v3098_v34, %s2310_s24  ;;  %v3111_v24 = vpop.permute.xlu2 %879  ;;  %4750 = vst [vmem:[#allocation74_spill] sm:$0xff] %v3141_v32 }
  0xe1   : > { %4745 = vst [vmem:[#allocation69_spill] sm:$0xff] %v3111_v24  ;;  %v802_v24 = vrot.slane %v2866_v40, 2 }
  0xe2   : > { %v3114_v13 = vpop.permute.xlu1 %865 }
  0xe3   : > { %4746 = vst [vmem:[#allocation70_spill] sm:$0xff] %v3114_v13  ;;  %v3144_v60 = vsel %vm726_vm5, %v802_v24, %v803_v15 }
  0xe6   : > { %985 = vrot.lane.b32.xlu0 %v3117_v1, %s2310_s24  ;;  %983 = vrot.lane.b32.xlu2 %v3120_v20, %s2310_s24 }
  0xe8   : > { %v3132_v50 = vpop.permute.xlu0 %869  ;;  %987 = vrot.lane.b32.xlu1 %v3123_v12, %s2310_s24  ;;  %v3136_v53 = vpop.permute.xlu2 %885 }
  0xe9   : > { %4748 = vst [vmem:[#allocation72_spill] sm:$0xff] %v3136_v53 }
  0xea   : > { %v3138_v19 = vpop.permute.xlu1 %871 }
  0xeb   : > { %4749 = vst [vmem:[#allocation73_spill] sm:$0xff] %v3138_v19 }
  0xee   : > { %991 = vrot.lane.b32.xlu0 %v3141_v32, %s2310_s24  ;;  %989 = vrot.lane.b32.xlu2 %v3144_v60, %s2310_s24 }
  0xf0   : > { %v3150_v48 = vpop.permute.xlu0 %875  ;;  %1025 = vrot.lane.b32.xlu1 %v2559_v62, %s2311_s25  ;;  %v3154_v53 = vpop.permute.xlu2 %891 }
  0xf1   : > { %4751 = vst [vmem:[#allocation75_spill] sm:$0xff] %v3154_v53 }
  0xf2   : > { %v3156_v19 = vpop.permute.xlu1 %877 }
  0xf3   : > { %4752 = vst [vmem:[#allocation76_spill] sm:$0xff] %v3156_v19 }
  0xf6   : > { %1029 = vrot.lane.b32.xlu0 %v2570_v8, %s2311_s25  ;;  %1027 = vrot.lane.b32.xlu2 %v2562_v63, %s2311_s25 }
  0xf8   : > { %v3162_v24 = vpop.permute.xlu0 %881  ;;  %1031 = vrot.lane.b32.xlu1 %v2575_v11, %s2311_s25  ;;  %v3166_v15 = vpop.permute.xlu2 %929 }
  0xf9   : > { %4753 = vst [vmem:[#allocation77_spill] sm:$0xff] %v3166_v15  ;;  %v333_v62 = vpop.f32.mrf.mxu0 }
  0xfa   : > { %v3168_v42 = vpop.permute.xlu1 %883  ;;  %v2176_v8 = vmul.f32 -1.442695, %v333_v62 }
  0xfb   : > { %4754 = vst [vmem:[#allocation78_spill] sm:$0xff] %v3168_v42 }
  0xfc   : > { %2262 = vpow2.f32 %v2176_v8 }
  0xfe   : > { %1035 = vrot.lane.b32.xlu0 %v2595_v18, %s2311_s25  ;;  %1033 = vrot.lane.b32.xlu2 %v2588_v17, %s2311_s25 }
 0x100   : > { %v3174_v53 = vpop.permute.xlu0 %887  ;;  %1037 = vrot.lane.b32.xlu1 %v2629_v35, %s2311_s25  ;;  %v3178_v63 = vpop.permute.xlu2 %935  ;;  %v429_v35 = vld [vmem:[%s4581_s3] sm:$0xf] }
 0x101   : > { %4755 = vst [vmem:[#allocation79_spill] sm:$0xff] %v3178_v63  ;;  %2177 = vmatpush.msk.msra.mxu1 %vm312_vm3, %v429_v35 }
 0x102   : > { %v3180_v11 = vpop.permute.xlu1 %889  ;;  %v2263_v15 = vpop.eup %2262 }
 0x103   : > { %4756 = vst [vmem:[#allocation80_spill] sm:$0xff] %v3180_v11  ;;  %v339_v18 = vadd.f32 1.0, %v2263_v15 }
 0x105   : > { %2264 = vrcp.f32 %v339_v18  ;;  %v351_v35 = vand.u32 2147483648, %v339_v18  ;;  %v349_v11 = vand.u32 2147483647, %v339_v18  ;;  %vm345_vm7 = vweird.f32 %v339_v18 }
 0x106   : > { %1041 = vrot.lane.b32.xlu0 %v2640_v37, %s2311_s25  ;;  %1039 = vrot.lane.b32.xlu2 %v2625_v33, %s2311_s25 }
 0x107   : > { %vm350_vm9 = vcmp.eq.f32.partialorder %v349_v11, 8.507059e+37 }
 0x108   : > { %v3186_v17 = vpop.permute.xlu0 %893  ;;  %1043 = vrot.lane.b32.xlu1 %v2642_v38, %s2311_s25  ;;  %v3190_v62 = vpop.permute.xlu2 %941 }
 0x109   : > { %4757 = vst [vmem:[#allocation81_spill] sm:$0xff] %v3186_v17  ;;  %v356_v17 = vld [vmem:[%s4580_s2 + $0x8] sm:$0xff] }
 0x10a   : > { %4758 = vst [vmem:[#allocation82_spill] sm:$0xff] %v3190_v62  ;;  %v3196_v8 = vpop.permute.xlu1 %895 }
 0x10b   : > { %4759 = vst [vmem:[#allocation83_spill] sm:$0xff] %v3196_v8  ;;  %v2265_v33 = vpop.eup %2264 }
 0x10c   : > { %v341_v37 = vmul.f32 %v2265_v33, %v339_v18  ;;  %vm346_vm6 = vweird.f32 %v2265_v33 }
 0x10d   : > { %vm347_vm8 = vmor %vm345_vm7, %vm346_vm6 }
 0x10e   : > { %1047 = vrot.lane.b32.xlu0 %v2673_v56, %s2311_s25  ;;  %1045 = vrot.lane.b32.xlu2 %v2671_v55, %s2311_s25  ;;  %v342_v62 = vsub.f32 1.0, %v341_v37  ;;  %v352_v56 = vor.u32 1.1754944e-38, %v351_v35 }
 0x110   : > { %v3202_v38 = vpop.permute.xlu0 %931  ;;  %1049 = vrot.lane.b32.xlu1 %v2716_v39, %s2311_s25  ;;  %v3206_v15 = vpop.permute.xlu2 %947  ;;  %v343_v8 = vmul.f32 %v2265_v33, %v342_v62 }
 0x111   : > { %4760 = vst [vmem:[#allocation84_spill] sm:$0xff] %v3202_v38 }
 0x112   : > { %4761 = vst [vmem:[#allocation85_spill] sm:$0xff] %v3206_v15  ;;  %v3208_v63 = vpop.permute.xlu1 %933  ;;  %v344_v55 = vadd.f32 %v2265_v33, %v343_v8 }
 0x113   : > { %4762 = vst [vmem:[#allocation86_spill] sm:$0xff] %v3208_v63 }
 0x114   : > { %v348_v62 = vsel %vm347_vm8, %v2265_v33, %v344_v55 }
 0x115   : > { %v353_v15 = vsel %vm350_vm9, %v352_v56, %v348_v62 }
 0x116   : > { %1053 = vrot.lane.b32.xlu0 %v2726_v44, %s2311_s25  ;;  %1051 = vrot.lane.b32.xlu2 %v2712_v31, %s2311_s25  ;;  %2231 = vpush %v353_v15 }
 0x117   : > { %2178 = vmatmul.msk.f32.vlgmr.msra.gmra.mxu1 %vm230_vm0, %v353_v15 }
 0x118   : > { %v3214_v39 = vpop.permute.xlu0 %937  ;;  %1055 = vrot.lane.b32.xlu1 %v2728_v45, %s2311_s25  ;;  %v3218_v37 = vpop.permute.xlu2 %953 }
 0x119   : > { %4763 = vst [vmem:[#allocation87_spill] sm:$0xff] %v3214_v39  ;;  %v4818_v39 = vld [vmem:[#allocation24_spill] sm:$0xff] }
 0x11a   : > { %4764 = vst [vmem:[#allocation88_spill] sm:$0xff] %v3218_v37  ;;  %v3220_v63 = vpop.permute.xlu1 %939 }
 0x11b   : > { %4765 = vst [vmem:[#allocation89_spill] sm:$0xff] %v3220_v63  ;;  %v4789_v63 = vld [vmem:[#allocation7_spill] sm:$0xff] }
 0x11e   : > { %1059 = vrot.lane.b32.xlu0 %v2748_v23, %s2311_s25  ;;  %1057 = vrot.lane.b32.xlu2 %v2746_v21, %s2311_s25 }
 0x120   : > { %v3227_v31 = vpop.permute.xlu0 %943  ;;  %1061 = vrot.lane.b32.xlu1 %v2782_v25, %s2311_s25  ;;  %v3231_v44 = vpop.permute.xlu2 %959 }
 0x121   : > { %4766 = vst [vmem:[#allocation90_spill] sm:$0xff] %v3227_v31  ;;  %v4800_v31 = vld [vmem:[#allocation13_spill] sm:$0xff] }
 0x122   : > { %v3233_v45 = vpop.permute.xlu1 %945 }
 0x123   : > { %4767 = vst [vmem:[#allocation91_spill] sm:$0xff] %v3233_v45  ;;  %v4784_v45 = vld [vmem:[#allocation8_spill] sm:$0xff] }
 0x126   : > { %1065 = vrot.lane.b32.xlu0 %v2791_v28, %s2311_s25  ;;  %1063 = vrot.lane.b32.xlu2 %v2778_v7, %s2311_s25 }
 0x128   : > { %v3239_v11 = vpop.permute.xlu0 %949  ;;  %1067 = vrot.lane.b32.xlu1 %v2793_v58, %s2311_s25  ;;  %v3243_v21 = vpop.permute.xlu2 %965 }
 0x129   : > { %4768 = vst [vmem:[#allocation92_spill] sm:$0xff] %v3239_v11 }
 0x12a   : > { %v3245_v23 = vpop.permute.xlu1 %951 }
 0x12b   : > { %4769 = vst [vmem:[#allocation93_spill] sm:$0xff] %v3245_v23 }
 0x12e   : > { %384 = vrot.lane.b32.xlu0 %v353_v15, %s2312_s28  ;;  %1069 = vrot.lane.b32.xlu2 %v2808_v3, %s2311_s25 }
 0x130   : > { %v3249_v25 = vpop.permute.xlu0 %955  ;;  %414 = vrot.lane.b32.xlu1 %v353_v15, %s2313_s29  ;;  %v3251_v28 = vpop.permute.xlu2 %971 }
 0x132   : > { %v3253_v7 = vpop.permute.xlu1 %957 }
 0x136   : > { %399 = vrot.lane.b32.xlu0 %v353_v15, %s2314_s30  ;;  %1075 = vrot.lane.b32.xlu2 %v2836_v9, %s2311_s25  ;;  %v3279_v15 = vld [vmem:[#allocation2 + $0x180] sm:$0xff] }
 0x137   : > { %4773 = vst [vmem:[#allocation97_spill] sm:$0xff] %v3279_v15 }
 0x138   : > { %v3257_v58 = vpop.permute.xlu0 %961  ;;  %1073 = vrot.lane.b32.xlu1 %v2840_v10, %s2311_s25  ;;  %v3261_v18 = vpop.permute.xlu2 %977  ;;  %v3277_v10 = vld [vmem:[#allocation2 + $0x188] sm:$0xff] }
 0x139   : > { %4770 = vst [vmem:[#allocation94_spill] sm:$0xff] %v3257_v58  ;;  %v373_v58 = vld [vmem:[%s4580_s2 + $0x90] sm:$0xff] }
 0x13a   : > { %v3263_v3 = vpop.permute.xlu1 %963 }
 0x13e   : > { %1071 = vrot.lane.b32.xlu0 %v2810_v4, %s2311_s25  ;;  %1081 = vrot.lane.b32.xlu2 %v2866_v40, %s2311_s25 }
 0x140   : > { %v3269_v8 = vpop.permute.xlu0 %967  ;;  %1079 = vrot.lane.b32.xlu1 %v2851_v6, %s2311_s25  ;;  %v3273_v9 = vpop.permute.xlu2 %983 }
 0x141   : > { %4771 = vst [vmem:[#allocation95_spill] sm:$0xff] %v3269_v8 }
 0x142   : > { %v3275_v33 = vpop.permute.xlu1 %969 }
 0x143   : > { %4772 = vst [vmem:[#allocation96_spill] sm:$0xff] %v3275_v33 }
 0x146   : > { %1077 = vrot.lane.b32.xlu0 %v2849_v43, %s2311_s25  ;;  %1087 = vrot.lane.b32.xlu2 %v3277_v10, %s2311_s25 }
 0x147   : > { %s2232_s7 = spop %2231 }
 0x148   : > { %v3285_v40 = vpop.permute.xlu0 %973  ;;  %1085 = vrot.lane.b32.xlu1 %v3279_v15, %s2311_s25  ;;  %v3289_v4 = vpop.permute.xlu2 %989 }
 0x149   : > { %4774 = vst [vmem:[#allocation98_spill] sm:$0xff] %v3285_v40 }
 0x14a   : > { %4775 = vst [vmem:[#allocation99_spill] sm:$0xff] %v3289_v4  ;;  %v3291_v6 = vpop.permute.xlu1 %975 }
 0x14b   : > { %4776 = vst [vmem:[#allocation100_spill] sm:$0xff] %v3291_v6 }
 0x14e   : > { %1083 = vrot.lane.b32.xlu0 %v2868_v26, %s2311_s25  ;;  %1125 = vrot.lane.b32.xlu2 %v2602_v22, %s2315_s5 }
 0x150   : > { %v3297_v43 = vpop.permute.xlu0 %979  ;;  %1123 = vrot.lane.b32.xlu1 %v2582_v14, %s2315_s5  ;;  %v3301_v35 = vpop.permute.xlu2 %1027  ;;  %v4783_v14 = vld [vmem:[#allocation4_spill] sm:$0xff] }
 0x151   : > { %4777 = vst [vmem:[#allocation101_spill] sm:$0xff] %v3297_v43 }
 0x152   : > { %4778 = vst [vmem:[#allocation102_spill] sm:$0xff] %v3301_v35  ;;  %v3303_v55 = vpop.permute.xlu1 %981 }
 0x153   : > { %4779 = vst [vmem:[#allocation103_spill] sm:$0xff] %v3303_v55  ;;  %v4816_v55 = vld [vmem:[#allocation22_spill] sm:$0xff] }
 0x156   : > { %1121 = vrot.lane.b32.xlu0 %v2586_v16, %s2315_s5  ;;  %1131 = vrot.lane.b32.xlu2 %v2633_v36, %s2315_s5  ;;  %v4786_v16 = vld [vmem:[#allocation6_spill] sm:$0xff] }
 0x158   : > { %v3309_v26 = vpop.permute.xlu0 %985  ;;  %1129 = vrot.lane.b32.xlu1 %v2617_v29, %s2315_s5  ;;  %v3313_v56 = vpop.permute.xlu2 %1033  ;;  %v4790_v29 = vld [vmem:[#allocation11_spill] sm:$0xff] }
 0x159   : > { %4780 = vst [vmem:[#allocation104_spill] sm:$0xff] %v3309_v26  ;;  %v4792_v26 = vld [vmem:[#allocation9_spill] sm:$0xff] }
 0x15a   : > { %4781 = vst [vmem:[#allocation105_spill] sm:$0xff] %v3313_v56  ;;  %v3315_v62 = vpop.permute.xlu1 %987 }
 0x15b   : > { %4782 = vst [vmem:[#allocation106_spill] sm:$0xff] %v3315_v62 }
 0x15e   : > { %1127 = vrot.lane.b32.xlu0 %v4783_v14, %s2315_s5  ;;  %1137 = vrot.lane.b32.xlu2 %v4784_v45, %s2315_s5 }
 0x160   : > { %v3321_v23 = vpop.permute.xlu0 %991  ;;  %1135 = vrot.lane.b32.xlu1 %v4786_v16, %s2315_s5  ;;  %v3325_v37 = vpop.permute.xlu2 %1039  ;;  %v4795_v16 = vld [vmem:[#allocation10_spill] sm:$0xff] }
 0x161   : > { %4785 = vst [vmem:[#allocation107_spill] sm:$0xff] %v3321_v23 }
 0x162   : > { %4787 = vst [vmem:[#allocation108_spill] sm:$0xff] %v3325_v37  ;;  %v3327_v36 = vpop.permute.xlu1 %1025 }
 0x163   : > { %4788 = vst [vmem:[#allocation109_spill] sm:$0xff] %v3327_v36  ;;  %v4796_v36 = vld [vmem:[#allocation14_spill] sm:$0xff] }
 0x166   : > { %1133 = vrot.lane.b32.xlu0 %v4789_v63, %s2315_s5  ;;  %1143 = vrot.lane.b32.xlu2 %v4790_v29, %s2315_s5  ;;  %v4798_v63 = vld [vmem:[#allocation12_spill] sm:$0xff] }
 0x168   : > { %v3333_v11 = vpop.permute.xlu0 %1029  ;;  %1141 = vrot.lane.b32.xlu1 %v4792_v26, %s2315_s5  ;;  %v3337_v45 = vpop.permute.xlu2 %1045 }
 0x169   : > { %4791 = vst [vmem:[#allocation110_spill] sm:$0xff] %v3333_v11 }
 0x16a   : > { %4793 = vst [vmem:[#allocation9_spill] sm:$0xff] %v3337_v45  ;;  %v3339_v23 = vpop.permute.xlu1 %1031 }
 0x16b   : > { %4794 = vst [vmem:[#allocation111_spill] sm:$0xff] %v3339_v23  ;;  %v4801_v23 = vld [vmem:[#allocation17_spill] sm:$0xff] }
 0x16e   : > { %1139 = vrot.lane.b32.xlu0 %v4795_v16, %s2315_s5  ;;  %1149 = vrot.lane.b32.xlu2 %v4796_v36, %s2315_s5  ;;  %v4803_v16 = vld [vmem:[#allocation15_spill] sm:$0xff] }
 0x170   : > { %v3345_v62 = vpop.permute.xlu0 %1035  ;;  %1147 = vrot.lane.b32.xlu1 %v4798_v63, %s2315_s5  ;;  %v3349_v37 = vpop.permute.xlu2 %1051  ;;  %v4806_v63 = vld [vmem:[#allocation16_spill] sm:$0xff] }
 0x171   : > { %4797 = vst [vmem:[#allocation112_spill] sm:$0xff] %v3345_v62 }
 0x172   : > { %v3351_v11 = vpop.permute.xlu1 %1037 }
 0x173   : > { %4799 = vst [vmem:[#allocation113_spill] sm:$0xff] %v3351_v11  ;;  %v4807_v11 = vld [vmem:[#allocation20_spill] sm:$0xff] }
 0x176   : > { %1145 = vrot.lane.b32.xlu0 %v4800_v31, %s2315_s5  ;;  %1155 = vrot.lane.b32.xlu2 %v4801_v23, %s2315_s5  ;;  %v4809_v31 = vld [vmem:[#allocation18_spill] sm:$0xff] }
 0x178   : > { %v3357_v45 = vpop.permute.xlu0 %1041  ;;  %1153 = vrot.lane.b32.xlu1 %v4803_v16, %s2315_s5  ;;  %v3361_v36 = vpop.permute.xlu2 %1057  ;;  %v4812_v16 = vld [vmem:[#allocation19_spill] sm:$0xff] }
 0x179   : > { %4802 = vst [vmem:[#allocation114_spill] sm:$0xff] %v3357_v45 }
 0x17a   : > { %4804 = vst [vmem:[#allocation115_spill] sm:$0xff] %v3361_v36  ;;  %v3363_v62 = vpop.permute.xlu1 %1043 }
 0x17b   : > { %4805 = vst [vmem:[#allocation116_spill] sm:$0xff] %v3363_v62  ;;  %v4813_v62 = vld [vmem:[#allocation23_spill] sm:$0xff] }
 0x17e   : > { %1151 = vrot.lane.b32.xlu0 %v4806_v63, %s2315_s5  ;;  %1161 = vrot.lane.b32.xlu2 %v4807_v11, %s2315_s5  ;;  %v4814_v63 = vld [vmem:[#allocation21_spill] sm:$0xff] }
 0x180   : > { %v3369_v43 = vpop.permute.xlu0 %1047  ;;  %1159 = vrot.lane.b32.xlu1 %v4809_v31, %s2315_s5  ;;  %v3373_v23 = vpop.permute.xlu2 %1063 }
 0x181   : > { %4808 = vst [vmem:[#allocation117_spill] sm:$0xff] %v3369_v43 }
 0x182   : > { %4810 = vst [vmem:[#allocation118_spill] sm:$0xff] %v3373_v23  ;;  %v3375_v45 = vpop.permute.xlu1 %1049 }
 0x183   : > { %4811 = vst [vmem:[#allocation119_spill] sm:$0xff] %v3375_v45  ;;  %v4817_v45 = vld [vmem:[#allocation26_spill] sm:$0xff] }
 0x186   : > { %1157 = vrot.lane.b32.xlu0 %v4812_v16, %s2315_s5  ;;  %1167 = vrot.lane.b32.xlu2 %v4813_v62, %s2315_s5 }
 0x188   : > { %v3381_v42 = vpop.permute.xlu0 %1053  ;;  %1165 = vrot.lane.b32.xlu1 %v4814_v63, %s2315_s5  ;;  %v3385_v11 = vpop.permute.xlu2 %1069  ;;  %v4820_v63 = vld [vmem:[#allocation25_spill] sm:$0xff] }
 0x189   : > { %4815 = vst [vmem:[#allocation19_spill] sm:$0xff] %v3385_v11  ;;  %v3405_v11 = vld [vmem:[#allocation2 + $0x190] sm:$0x3] }
 0x18a   : > { %v3387_v43 = vpop.permute.xlu1 %1055 }
 0x18e   : > { %1163 = vrot.lane.b32.xlu0 %v4816_v55, %s2315_s5  ;;  %1173 = vrot.lane.b32.xlu2 %v4817_v45, %s2315_s5 }
 0x190   : > { %v3393_v56 = vpop.permute.xlu0 %1059  ;;  %1171 = vrot.lane.b32.xlu1 %v4818_v39, %s2315_s5  ;;  %v3397_v62 = vpop.permute.xlu2 %1075  ;;  %v811_v39 = vrot.slane %v3277_v10, 1 }
 0x191   : > { %4819 = vst [vmem:[#allocation26_spill] sm:$0xff] %v3397_v62  ;;  %v813_v62 = vrot.slane %v3405_v11, 1 }
 0x192   : > { %v3399_v40 = vpop.permute.xlu1 %1061 }
 0x196   : > { %1169 = vrot.lane.b32.xlu0 %v4820_v63, %s2315_s5  ;;  %1179 = vrot.lane.b32.xlu2 %v2894_v49, %s2315_s5  ;;  %v3418_v63 = vsel %vm645_vm2, %v811_v39, %v813_v62  ;;  %v4824_v49 = vld [vmem:[#allocation28_spill] sm:$0xff] }
 0x197   : > { %4823 = vst [vmem:[#allocation122_spill] sm:$0xff] %v3418_v63 }
 0x198   : > { %v3407_v55 = vpop.permute.xlu0 %1065  ;;  %1177 = vrot.lane.b32.xlu1 %v2888_v51, %s2315_s5  ;;  %v3411_v19 = vpop.permute.xlu2 %1081  ;;  %v810_v51 = vrot.slane %v3279_v15, 1 }
 0x199   : > { %4821 = vst [vmem:[#allocation120_spill] sm:$0xff] %v3407_v55  ;;  %v374_v55 = vld [vmem:[%s4580_s2 + $0x98] sm:$0xf] }
 0x19a   : > { %4822 = vst [vmem:[#allocation121_spill] sm:$0xff] %v3411_v19  ;;  %v3415_v14 = vpop.permute.xlu1 %1067  ;;  %v3430_v62 = vsel %vm645_vm2, %v810_v51, %v811_v39 }
 0x19b   : > { %4826 = vst [vmem:[#allocation124_spill] sm:$0xff] %v3430_v62 }
 0x19e   : > { %1175 = vrot.lane.b32.xlu0 %v4824_v49, %s2315_s5  ;;  %1217 = vrot.lane.b32.xlu2 %v2910_v47, %s2316_s6 }
 0x1a0   : > { %1183 = vrot.lane.b32.xlu1 %v3418_v63, %s2315_s5  ;;  %v385_v19 = vpop.permute.xlu0 %384  ;;  %v3427_v29 = vpop.permute.xlu2 %1087 }
 0x1a1   : > { %4825 = vst [vmem:[#allocation123_spill] sm:$0xff] %v3427_v29  ;;  %v4842_v29 = vld [vmem:[#allocation44_spill] sm:$0xff] }
 0x1a2   : > { %2233 = vpush %v385_v19  ;;  %v415_v35 = vpop.permute.xlu1 %414 }
 0x1a6   : > { %1181 = vrot.lane.b32.xlu0 %v3430_v62, %s2315_s5  ;;  %1223 = vrot.lane.b32.xlu2 %v2929_v54, %s2316_s6 }
 0x1a8   : > { %1221 = vrot.lane.b32.xlu1 %v2923_v52, %s2316_s6  ;;  %v400_v47 = vpop.permute.xlu0 %399  ;;  %v3438_v38 = vpop.permute.xlu2 %1125 }
 0x1a9   : > { %4827 = vst [vmem:[#allocation125_spill] sm:$0xff] %v3438_v38  ;;  %v4837_v38 = vld [vmem:[#allocation39_spill] sm:$0xff] }
 0x1aa   : > { %2235 = vpush %v400_v47  ;;  %v3440_v63 = vpop.permute.xlu1 %1073  ;;  %v4831_v47 = vld [vmem:[#allocation35_spill] sm:$0xff] }
 0x1ab   : > { %2237 = vpush %v415_v35  ;;  %v4832_v35 = vld [vmem:[#allocation40_spill] sm:$0xff] }
 0x1ae   : > { %1219 = vrot.lane.b32.xlu0 %v2926_v59, %s2316_s6  ;;  %1229 = vrot.lane.b32.xlu2 %v2951_v30, %s2316_s6  ;;  %v4833_v59 = vld [vmem:[#allocation38_spill] sm:$0xff] }
 0x1b0   : > { %1227 = vrot.lane.b32.xlu1 %v2945_v2, %s2316_s6  ;;  %v3448_v51 = vpop.permute.xlu0 %1071  ;;  %v3450_v19 = vpop.permute.xlu2 %1131 }
 0x1b1   : > { %4828 = vst [vmem:[#allocation126_spill] sm:$0xff] %v3448_v51  ;;  %v368_v51 = vld [vmem:[%s4580_s2 + $0x68] sm:$0xff] }
 0x1b2   : > { %4829 = vst [vmem:[#allocation127_spill] sm:$0xff] %v3450_v19  ;;  %v3452_v39 = vpop.permute.xlu1 %1079  ;;  %v4838_v19 = vld [vmem:[#allocation43_spill] sm:$0xff] }
 0x1b3   : > { %4830 = vst [vmem:[#allocation128_spill] sm:$0xff] %v3452_v39 }
 0x1b6   : > { %1225 = vrot.lane.b32.xlu0 %v4831_v47, %s2316_s6  ;;  %1235 = vrot.lane.b32.xlu2 %v4832_v35, %s2316_s6 }
 0x1b8   : > { %1233 = vrot.lane.b32.xlu1 %v4833_v59, %s2316_s6  ;;  %v3460_v62 = vpop.permute.xlu0 %1077  ;;  %v3462_v30 = vpop.permute.xlu2 %1137 }
 0x1b9   : > { %4834 = vst [vmem:[#allocation129_spill] sm:$0xff] %v3460_v62 }
 0x1ba   : > { %4835 = vst [vmem:[#allocation130_spill] sm:$0xff] %v3462_v30  ;;  %v3464_v2 = vpop.permute.xlu1 %1085 }
 0x1bb   : > { %4836 = vst [vmem:[#allocation131_spill] sm:$0xff] %v3464_v2 }
 0x1be   : > { %1231 = vrot.lane.b32.xlu0 %v4837_v38, %s2316_s6  ;;  %1241 = vrot.lane.b32.xlu2 %v2996_v61, %s2316_s6 }
 0x1c0   : > { %1239 = vrot.lane.b32.xlu1 %v4838_v19, %s2316_s6  ;;  %v3472_v47 = vpop.permute.xlu0 %1083  ;;  %v3474_v35 = vpop.permute.xlu2 %1143 }
 0x1c1   : > { %4839 = vst [vmem:[#allocation132_spill] sm:$0xff] %v3472_v47  ;;  %v4845_v47 = vld [vmem:[#allocation50_spill] sm:$0xff] }
 0x1c2   : > { %4840 = vst [vmem:[#allocation133_spill] sm:$0xff] %v3474_v35  ;;  %v3476_v59 = vpop.permute.xlu1 %1123  ;;  %v4846_v35 = vld [vmem:[#allocation55_spill] sm:$0xff] }
 0x1c3   : > { %4841 = vst [vmem:[#allocation134_spill] sm:$0xff] %v3476_v59 }
 0x1c6   : > { %1237 = vrot.lane.b32.xlu0 %v4842_v29, %s2316_s6  ;;  %1247 = vrot.lane.b32.xlu2 %v3021_v5, %s2316_s6 }
 0x1c8   : > { %1245 = vrot.lane.b32.xlu1 %v3015_v41, %s2316_s6  ;;  %v3484_v38 = vpop.permute.xlu0 %1121  ;;  %v3486_v30 = vpop.permute.xlu2 %1149 }
 0x1c9   : > { %4843 = vst [vmem:[#allocation135_spill] sm:$0xff] %v3484_v38  ;;  %v364_v38 = vld [vmem:[%s4580_s2 + $0x48] sm:$0xf] }
 0x1ca   : > { %v3488_v61 = vpop.permute.xlu1 %1129 }
 0x1cb   : > { %4844 = vst [vmem:[#allocation136_spill] sm:$0xff] %v3488_v61 }
 0x1ce   : > { %1243 = vrot.lane.b32.xlu0 %v4845_v47, %s2316_s6  ;;  %1253 = vrot.lane.b32.xlu2 %v3047_v46, %s2316_s6  ;;  %v4850_v47 = vld [vmem:[#allocation56_spill] sm:$0xff] }
 0x1d0   : > { %1251 = vrot.lane.b32.xlu1 %v4846_v35, %s2316_s6  ;;  %v3496_v62 = vpop.permute.xlu0 %1127  ;;  %v3498_v5 = vpop.permute.xlu2 %1155  ;;  %v363_v35 = vld [vmem:[%s4580_s2 + $0x40] sm:$0xff] }
 0x1d1   : > { %4847 = vst [vmem:[#allocation137_spill] sm:$0xff] %v3496_v62  ;;  %v359_v62 = vld [vmem:[%s4580_s2 + $0x20] sm:$0xf] }
 0x1d2   : > { %4848 = vst [vmem:[#allocation138_spill] sm:$0xff] %v3498_v5  ;;  %v3500_v41 = vpop.permute.xlu1 %1135 }
 0x1d3   : > { %4849 = vst [vmem:[#allocation139_spill] sm:$0xff] %v3500_v41  ;;  %s2234_s8 = spop %2233  ;;  %v377_v41 = vstv %s2232_s7  ;;  %s2317_s7 = smov 24  }
 0x1d4   : > { %v387_v54 = vstv %s2234_s8  ;;  %v383_v23 = vmul.f32 %v377_v41, %v359_v62  ;;  %v380_v13 = vmul.f32 %v377_v41, %v356_v17  ;;  %s2319_s8 = smov 28  }
 0x1d5   : > { %v393_v59 = vmul.f32 %v387_v54, %v364_v38  ;;  %v392_v31 = vmul.f32 %v387_v54, %v363_v35  ;;  %v367_v38 = vld [vmem:[%s4580_s2 + $0x60] sm:$0xff]  ;;  %v361_v35 = vld [vmem:[%s4580_s2 + $0x30] sm:$0xff] }
 0x1d6   : > { %1249 = vrot.lane.b32.xlu0 %v4850_v47, %s2316_s6  ;;  %1259 = vrot.lane.b32.xlu2 %v3072_v57, %s2316_s6  ;;  %v358_v47 = vld [vmem:[%s4580_s2 + $0x18] sm:$0xff] }
 0x1d7   : > { %v362_v57 = vld [vmem:[%s4580_s2 + $0x38] sm:$0xff]  ;;  %v382_v49 = vmul.f32 %v377_v41, %v358_v47  ;;  %v360_v47 = vld [vmem:[%s4580_s2 + $0x28] sm:$0xff] }
 0x1d8   : > { %1257 = vrot.lane.b32.xlu1 %v3066_v0, %s2316_s6  ;;  %v3517_v61 = vpop.permute.xlu0 %1133  ;;  %v3519_v19 = vpop.permute.xlu2 %1161  ;;  %v357_v0 = vld [vmem:[%s4580_s2 + $0x10] sm:$0xff] }
 0x1d9   : > { %4851 = vst [vmem:[#allocation140_spill] sm:$0xff] %v3517_v61  ;;  %v369_v61 = vld [vmem:[%s4580_s2 + $0x70] sm:$0xf]  ;;  %v381_v33 = vmul.f32 %v377_v41, %v357_v0  ;;  %v397_v36 = vadd.f32 %v392_v31, %v382_v49  ;;  %v355_v49 = vld [vmem:[%s4580_s2] sm:$0xff] }
 0x1da   : > { %4852 = vst [vmem:[#allocation141_spill] sm:$0xff] %v3519_v19  ;;  %v3530_v6 = vpop.permute.xlu1 %1141  ;;  %v398_v19 = vadd.f32 %v393_v59, %v383_v23  ;;  %v4854_v23 = vld [vmem:[#allocation61_spill] sm:$0xff]  ;;  %v365_v31 = vld [vmem:[%s4580_s2 + $0x50] sm:$0xff] }
 0x1db   : > { %4853 = vst [vmem:[#allocation142_spill] sm:$0xff] %v3530_v6  ;;  %s2236_s26 = spop %2235  ;;  %v391_v6 = vmul.f32 %v387_v54, %v362_v57  ;;  %v366_v57 = vld [vmem:[%s4580_s2 + $0x58] sm:$0xff] }
 0x1dc   : > { %v402_v8 = vstv %s2236_s26  ;;  %s2238_s5 = spop %2237 }
 0x1dd   : > { %v407_v2 = vmul.f32 %v402_v8, %v368_v51  ;;  %v408_v4 = vmul.f32 %v402_v8, %v369_v61  ;;  %v417_v62 = vstv %s2238_s5  ;;  %v406_v61 = vmul.f32 %v402_v8, %v367_v38 }
 0x1de   : > { %1255 = vrot.lane.b32.xlu0 %v4854_v23, %s2316_s6  ;;  %v390_v51 = vmul.f32 %v387_v54, %v361_v35  ;;  %1265 = vrot.lane.b32.xlu2 %v3098_v34, %s2316_s6  ;;  %v396_v0 = vadd.f32 %v391_v6, %v381_v33  ;;  %v423_v23 = vmul.f32 %v417_v62, %v374_v55  ;;  %v372_v33 = vld [vmem:[%s4580_s2 + $0x88] sm:$0xff] }
 0x1df   : > { %v413_v59 = vadd.f32 %v408_v4, %v398_v19  ;;  %v412_v38 = vadd.f32 %v407_v2, %v397_v36  ;;  %v4855_v4 = vld [vmem:[#allocation66_spill] sm:$0xff]  ;;  %v389_v34 = vmul.f32 %v387_v54, %v360_v47  ;;  %v405_v52 = vmul.f32 %v402_v8, %v366_v57  ;;  %v4857_v57 = vld [vmem:[#allocation67_spill] sm:$0xff] }
 0x1e0   : > { %1263 = vrot.lane.b32.xlu1 %v4855_v4, %s2316_s6  ;;  %v3571_v19 = vpop.permute.xlu0 %1139  ;;  %v3573_v35 = vpop.permute.xlu2 %1167  ;;  %v411_v6 = vadd.f32 %v406_v61, %v396_v0  ;;  %v422_v39 = vmul.f32 %v417_v62, %v373_v58  ;;  %v379_v2 = vmul.f32 %v377_v41, %v355_v49  ;;  %v395_v55 = vadd.f32 %v390_v51, %v380_v13  ;;  %v371_v4 = vld [vmem:[%s4580_s2 + $0x80] sm:$0xff]  ;;  %v370_v41 = vld [vmem:[%s4580_s2 + $0x78] sm:$0xff] }
 0x1e1   : > { %4856 = vst [vmem:[#allocation143_spill] sm:$0xff] %v3571_v19  ;;  %v428_v36 = vadd.f32 %v423_v23, %v413_v59  ;;  %v404_v5 = vmul.f32 %v402_v8, %v365_v31  ;;  %v421_v19 = vmul.f32 %v417_v62, %v372_v33  ;;  %v420_v8 = vmul.f32 %v417_v62, %v371_v4 }
 0x1e2   : > { %v3578_v29 = vpop.permute.xlu1 %1147  ;;  %v427_v54 = vadd.f32 %v422_v39, %v412_v38  ;;  %v394_v17 = vadd.f32 %v389_v34, %v379_v2  ;;  %v410_v47 = vadd.f32 %v405_v52, %v395_v55  ;;  %v419_v39 = vmul.f32 %v417_v62, %v370_v41  ;;  %v3643_v55 = vld [vmem:[#allocation2 + $0x60] sm:$0xff] }
 0x1e3   : > { %2179 = vmatpush.msk.msrb.mxu0 %vm312_vm3, %v428_v36  ;;  %2216 = vmatpush.msk.msrb.mxu1 %vm312_vm3, %v428_v36  ;;  %v426_v13 = vadd.f32 %v421_v19, %v411_v6  ;;  %v816_v23 = vrot.slane %v3277_v10, 2  ;;  %v815_v51 = vrot.slane %v3279_v15, 2  ;;  %v818_v4 = vrot.slane %v3405_v11, 2  ;;  %v3624_v19 = vld [vmem:[#allocation2 + $0x38] sm:$0xff]  ;;  %v3630_v6 = vld [vmem:[#allocation2 + $0x30] sm:$0xff]  ;;  %4862 = vst [vmem:[#allocation148_spill] sm:$0xff] %v3643_v55 }
 0x1e4   : > { %2217 = vmatpush.msk.msra.mxu2 %vm312_vm3, %v428_v36  ;;  %2218 = vmatpush.msk.msra.mxu3 %vm312_vm3, %v428_v36  ;;  %v409_v58 = vadd.f32 %v404_v5, %v394_v17  ;;  %v425_v61 = vadd.f32 %v420_v8, %v410_v47  ;;  %4860 = vst [vmem:[#allocation146_spill] sm:$0xff] %v3624_v19  ;;  %v3649_v17 = vld [vmem:[#allocation2 + $0x50] sm:$0xff]  ;;  %v3653_v47 = vld [vmem:[#allocation2 + $0x48] sm:$0xff]  ;;  %vm1865_vm3 = vcmask 293888  }
 0x1e5   : > { %1977 = vmatpush.msrb.mxu0 %v427_v54  ;;  %2219 = vmatpush.msrb.mxu1 %v427_v54  ;;  %v3605_v62 = vsel %vm726_vm5, %v815_v51, %v816_v23  ;;  %v3635_v36 = vsel %vm726_vm5, %v816_v23, %v818_v4 }
 0x1e6   : > { %2220 = vmatpush.msra.mxu2 %v427_v54  ;;  %2221 = vmatpush.msra.mxu3 %v427_v54  ;;  %v424_v59 = vadd.f32 %v419_v39, %v409_v58  ;;  %4859 = vst [vmem:[#allocation145_spill] sm:$0xff] %v3605_v62  ;;  %v3661_v58 = vld [vmem:[#allocation2 + $0x80] sm:$0xff]  ;;  %v3667_v39 = vld [vmem:[#allocation2 + $0x78] sm:$0xff] }
 0x1e7   : > { %1261 = vrot.lane.b32.xlu0 %v4857_v57, %s2316_s6  ;;  %1978 = vmatpush.msrb.mxu0 %v426_v13  ;;  %4861 = vst [vmem:[#allocation147_spill] sm:$0xff] %v3635_v36  ;;  %v3697_v57 = vld [vmem:[#allocation2 + $0xc8] sm:$0xff] }
 0x1e8   : > { %v3592_v52 = vpop.permute.xlu0 %1145  ;;  %v3594_v34 = vpop.permute.xlu2 %1173  ;;  %2222 = vmatpush.msrb.mxu1 %v426_v13  ;;  %2223 = vmatpush.msra.mxu2 %v426_v13  ;;  %4864 = vst [vmem:[#allocation150_spill] sm:$0xff] %v3661_v58 }
 0x1e9   : > { %4858 = vst [vmem:[#allocation144_spill] sm:$0xff] %v3592_v52  ;;  %2224 = vmatpush.msra.mxu3 %v426_v13  ;;  %1271 = vrot.lane.b32.xlu2 %v3123_v12, %s2316_s6 }
 0x1ea   : > { %v3598_v5 = vpop.permute.xlu1 %1153  ;;  %1269 = vrot.lane.b32.xlu1 %v3117_v1, %s2316_s6  ;;  %1979 = vmatpush.msrb.mxu0 %v425_v61 }
 0x1eb   : > { %2225 = vmatpush.msrb.mxu1 %v425_v61  ;;  %2226 = vmatpush.msra.mxu2 %v425_v61 }
 0x1ec   : > { %2227 = vmatpush.msra.mxu3 %v425_v61  ;;  %1980 = vmatpush.msrb.mxu0 %v424_v59  ;;  %v3671_v61 = vld [vmem:[#allocation2 + $0x68] sm:$0xff] }
 0x1ed   : > { %2228 = vmatpush.msrb.mxu1 %v424_v59  ;;  %2229 = vmatpush.msra.mxu2 %v424_v59  ;;  %4865 = vst [vmem:[#allocation151_spill] sm:$0xff] %v3671_v61 }
 0x1ee   : > { %2230 = vmatpush.msra.mxu3 %v424_v59  ;;  %v3679_v59 = vld [vmem:[#allocation2 + $0xa8] sm:$0xff] }
 0x1ef   : > { %1267 = vrot.lane.b32.xlu0 %v3120_v20, %s2316_s6  ;;  %v3685_v20 = vld [vmem:[#allocation2 + $0x98] sm:$0xff] }
 0x1f0   : > { %v1152_v10 = vpop.permute.xlu0 %1151  ;;  %v3609_v49 = vpop.permute.xlu2 %1179 }
 0x1f1   : > { %1277 = vrot.lane.b32.xlu2 %v3605_v62, %s2316_s6 }
 0x1f2   : > { %v3613_v0 = vpop.permute.xlu1 %1159  ;;  %1275 = vrot.lane.b32.xlu1 %v3141_v32, %s2316_s6 }
 0x1f7   : > { %1273 = vrot.lane.b32.xlu0 %v3144_v60, %s2316_s6 }
 0x1f8   : > { %v3619_v31 = vpop.permute.xlu0 %1157  ;;  %v3621_v38 = vpop.permute.xlu2 %1217 }
 0x1f9   : > { %1315 = vrot.lane.b32.xlu2 %v3624_v19, %s2317_s7 }
 0x1fa   : > { %v3628_v33 = vpop.permute.xlu1 %1165  ;;  %1313 = vrot.lane.b32.xlu1 %v3630_v6, %s2317_s7 }
 0x1ff   : > { %1279 = vrot.lane.b32.xlu0 %v3635_v36, %s2316_s6  ;;  %v3689_v36 = vld [vmem:[#allocation2 + $0x90] sm:$0xff]  ;;  %s2318_s6 = smov 32  }
 0x200   : > { %v3639_v11 = vpop.permute.xlu0 %1163  ;;  %v3641_v2 = vpop.permute.xlu2 %1223  ;;  %4867 = vst [vmem:[#allocation153_spill] sm:$0xff] %v3689_v36 }
 0x201   : > { %1321 = vrot.lane.b32.xlu2 %v3643_v55, %s2317_s7  ;;  %v3703_v55 = vld [vmem:[#allocation2 + $0xc0] sm:$0xff] }
 0x202   : > { %v3647_v54 = vpop.permute.xlu1 %1171  ;;  %1319 = vrot.lane.b32.xlu1 %v3649_v17, %s2317_s7 }
 0x207   : > { %1317 = vrot.lane.b32.xlu0 %v3653_v47, %s2317_s7 }
 0x208   : > { %v3657_v41 = vpop.permute.xlu0 %1169  ;;  %v3659_v13 = vpop.permute.xlu2 %1229 }
 0x209   : > { %4863 = vst [vmem:[#allocation149_spill] sm:$0xff] %v3659_v13  ;;  %1327 = vrot.lane.b32.xlu2 %v3661_v58, %s2317_s7  ;;  %v2279_v58 = vld [vmem:[#allocation2 + $0xb0] sm:$0xff] }
 0x20a   : > { %v3665_v8 = vpop.permute.xlu1 %1177  ;;  %1325 = vrot.lane.b32.xlu1 %v3667_v39, %s2317_s7  ;;  %v1616_v52 = vsel %vm230_vm0, %v2279_v58, %v3107_v27  ;;  %v3720_v27 = vld [vmem:[#allocation2 + $0xf0] sm:$0xff] }
 0x20f   : > { %1323 = vrot.lane.b32.xlu0 %v3671_v61, %s2317_s7 }
 0x210   : > { %v3675_v23 = vpop.permute.xlu0 %1175  ;;  %v3677_v51 = vpop.permute.xlu2 %1235 }
 0x211   : > { %4866 = vst [vmem:[#allocation152_spill] sm:$0xff] %v3677_v51  ;;  %1333 = vrot.lane.b32.xlu2 %v3679_v59, %s2317_s7 }
 0x212   : > { %v3683_v4 = vpop.permute.xlu1 %1183  ;;  %1331 = vrot.lane.b32.xlu1 %v3685_v20, %s2317_s7 }
 0x217   : > { %1329 = vrot.lane.b32.xlu0 %v3689_v36, %s2317_s7 }
 0x218   : > { %v3693_v61 = vpop.permute.xlu0 %1181  ;;  %v3695_v51 = vpop.permute.xlu2 %1241 }
 0x219   : > { %4868 = vst [vmem:[#allocation154_spill] sm:$0xff] %v3695_v51  ;;  %1339 = vrot.lane.b32.xlu2 %v3697_v57, %s2317_s7  ;;  %v1649_v51 = vsel %vm1633_vm10, %v1616_v52, %v3231_v44 }
 0x21a   : > { %v3701_v62 = vpop.permute.xlu1 %1221  ;;  %1337 = vrot.lane.b32.xlu1 %v3703_v55, %s2317_s7  ;;  %v1682_v15 = vsel %vm1666_vm11, %v1649_v51, %v3387_v43  ;;  %v3726_v43 = vld [vmem:[#allocation2 + $0xe0] sm:$0xff] }
 0x21b   : > { %v1715_v36 = vsel %vm1699_vm12, %v1682_v15, %v1152_v10  ;;  %v2282_v15 = vld [vmem:[#allocation2 + $0xd8] sm:$0xff] }
 0x21c   : > { %v1619_v52 = vsel %vm230_vm0, %v2282_v15, %v3132_v50 }
 0x21d   : > { %v1652_v10 = vsel %vm1633_vm10, %v1619_v52, %v3243_v21  ;;  %v3750_v21 = vld [vmem:[#allocation2 + $0x108] sm:$0xff] }
 0x21f   : > { %1335 = vrot.lane.b32.xlu0 %v2279_v58, %s2317_s7 }
 0x220   : > { %v3715_v32 = vpop.permute.xlu0 %1219  ;;  %v1248_v19 = vpop.permute.xlu2 %1247 }
 0x221   : > { %v3718_v13 = vsel %vm1732_vm13, %v1715_v36, %v1248_v19  ;;  %1345 = vrot.lane.b32.xlu2 %v3720_v27, %s2317_s7  ;;  %v1685_v19 = vsel %vm1666_vm11, %v1652_v10, %v3399_v40  ;;  %v2285_v40 = vld [vmem:[#allocation2 + $0xf8] sm:$0xff] }
 0x222   : > { %4869 = vst [vmem:[#allocation155_spill] sm:$0xff] %v3718_v13  ;;  %v3724_v44 = vpop.permute.xlu1 %1227  ;;  %1343 = vrot.lane.b32.xlu1 %v3726_v43, %s2317_s7  ;;  %v1718_v36 = vsel %vm1699_vm12, %v1685_v19, %v3619_v31  ;;  %v1622_v31 = vsel %vm230_vm0, %v2285_v40, %v3150_v48 }
 0x223   : > { %4870 = vst [vmem:[#allocation156_spill] sm:$0xff] %v3724_v44  ;;  %v3744_v44 = vld [vmem:[#allocation2 + $0x150] sm:$0xff] }
 0x227   : > { %1341 = vrot.lane.b32.xlu0 %v2282_v15, %s2317_s7  ;;  %v1655_v15 = vsel %vm1633_vm10, %v1622_v31, %v3251_v28  ;;  %v3774_v28 = vld [vmem:[#allocation2 + $0x120] sm:$0xff] }
 0x228   : > { %v3739_v58 = vpop.permute.xlu0 %1225  ;;  %v1254_v51 = vpop.permute.xlu2 %1253  ;;  %v1688_v52 = vsel %vm1666_vm11, %v1655_v15, %v3415_v14  ;;  %v1625_v14 = vsel %vm230_vm0, %v3774_v28, %v3162_v24 }
 0x229   : > { %v3742_v13 = vsel %vm1732_vm13, %v1718_v36, %v1254_v51  ;;  %1361 = vrot.lane.b32.xlu2 %v3744_v44, %s2317_s7  ;;  %v1721_v19 = vsel %vm1699_vm12, %v1688_v52, %v3639_v11  ;;  %v4871_v11 = vld [vmem:[#allocation53_spill] sm:$0xff] }
 0x22a   : > { %v3748_v50 = vpop.permute.xlu1 %1233  ;;  %1349 = vrot.lane.b32.xlu1 %v3750_v21, %s2317_s7 }
 0x22f   : > { %1347 = vrot.lane.b32.xlu0 %v2285_v40, %s2317_s7  ;;  %v1615_v40 = vsel %vm230_vm0, %v3679_v59, %v4871_v11  ;;  %v3824_v11 = vld [vmem:[#allocation2 + $0x140] sm:$0xff] }
 0x230   : > { %v3761_v10 = vpop.permute.xlu0 %1231  ;;  %v1260_v36 = vpop.permute.xlu2 %1259  ;;  %v1648_v31 = vsel %vm1633_vm10, %v1615_v40, %v3253_v7 }
 0x231   : > { %1537 = vrot.lane.b32.xlu2 %v3047_v46, %s2318_s6  ;;  %v3768_v48 = vsel %vm1732_vm13, %v1721_v19, %v1260_v36  ;;  %v1658_v46 = vsel %vm1633_vm10, %v1625_v14, %v3261_v18  ;;  %v1681_v24 = vsel %vm1666_vm11, %v1648_v31, %v3381_v42  ;;  %v4872_v42 = vld [vmem:[#allocation65_spill] sm:$0xff]  ;;  %v4873_v19 = vld [vmem:[#allocation58_spill] sm:$0xff]  ;;  %v4876_v31 = vld [vmem:[#allocation128_spill] sm:$0xff] }
 0x232   : > { %v3770_v51 = vpop.permute.xlu1 %1239  ;;  %1457 = vrot.lane.b32.xlu1 %v4817_v45, %s2319_s8  ;;  %v1691_v15 = vsel %vm1666_vm11, %v1658_v46, %v3440_v63  ;;  %v1714_v18 = vsel %vm1699_vm12, %v1681_v24, %v3486_v30 }
 0x233   : > { %v1724_v59 = vsel %vm1699_vm12, %v1691_v15, %v3657_v41  ;;  %v1614_v41 = vsel %vm230_vm0, %v3685_v20, %v4872_v42 }
 0x234   : > { %v1647_v30 = vsel %vm1633_vm10, %v1614_v41, %v3249_v25  ;;  %v1628_v25 = vsel %vm230_vm0, %v3824_v11, %v3174_v53  ;;  %v4877_v53 = vld [vmem:[#allocation31_spill] sm:$0xff]  ;;  %v4880_v41 = vld [vmem:[#allocation64_spill] sm:$0xff] }
 0x235   : > { %v1680_v36 = vsel %vm1666_vm11, %v1647_v30, %v3349_v37  ;;  %v1621_v30 = vsel %vm230_vm0, %v3720_v27, %v4880_v41 }
 0x236   : > { %v1713_v14 = vsel %vm1699_vm12, %v1680_v36, %v3578_v29  ;;  %v4874_v29 = vld [vmem:[#allocation138_spill] sm:$0xff]  ;;  %v4882_v36 = vld [vmem:[#allocation96_spill] sm:$0xff] }
 0x237   : > { %1441 = vrot.lane.b32.xlu0 %v4812_v16, %s2319_s8 }
 0x238   : > { %v3790_v45 = vpop.permute.xlu0 %1237  ;;  %v1266_v52 = vpop.permute.xlu2 %1265 }
 0x239   : > { %1425 = vrot.lane.b32.xlu2 %v4792_v26, %s2319_s8  ;;  %v3801_v63 = vsel %vm1732_vm13, %v1724_v59, %v1266_v52  ;;  %v1618_v26 = vsel %vm230_vm0, %v3697_v57, %v4873_v19  ;;  %v4878_v59 = vld [vmem:[#allocation70_spill] sm:$0xff]  ;;  %v4881_v19 = vld [vmem:[#allocation115_spill] sm:$0xff] }
 0x23a   : > { %v1246_v7 = vpop.permute.xlu1 %1245  ;;  %1409 = vrot.lane.b32.xlu1 %v2602_v22, %s2319_s8  ;;  %v1651_v22 = vsel %vm1633_vm10, %v1618_v26, %v3263_v3  ;;  %v1661_v3 = vsel %vm1633_vm10, %v1628_v25, %v3273_v9  ;;  %v1617_v52 = vsel %vm230_vm0, %v3703_v55, %v4878_v59  ;;  %v3866_v55 = vld [vmem:[#allocation2 + $0x158] sm:$0xff]  ;;  %v4883_v25 = vld [vmem:[#allocation81_spill] sm:$0xff] }
 0x23b   : > { %v3806_v16 = vsel %vm1732_vm13, %v1714_v18, %v1246_v7  ;;  %v1684_v57 = vsel %vm1666_vm11, %v1651_v22, %v3393_v56  ;;  %v1694_v15 = vsel %vm1666_vm11, %v1661_v3, %v4876_v31  ;;  %v4879_v7 = vld [vmem:[#allocation94_spill] sm:$0xff]  ;;  %v4887_v31 = vld [vmem:[#allocation61_spill] sm:$0xff] }
 0x23c   : > { %v1717_v40 = vsel %vm1699_vm12, %v1684_v57, %v4874_v29  ;;  %v1727_v24 = vsel %vm1699_vm12, %v1694_v15, %v3675_v23  ;;  %v1650_v42 = vsel %vm1633_vm10, %v1617_v52, %v4879_v7  ;;  %v1654_v23 = vsel %vm1633_vm10, %v1621_v30, %v4882_v36  ;;  %v4884_v57 = vld [vmem:[#allocation120_spill] sm:$0xff]  ;;  %v3903_v36 = vld [vmem:[#allocation2 + $0x110] sm:$0xff] }
 0x23d   : > { %v1683_v26 = vsel %vm1666_vm11, %v1650_v42, %v4881_v19  ;;  %v1687_v3 = vsel %vm1666_vm11, %v1654_v23, %v4884_v57  ;;  %v4890_v42 = vld [vmem:[#allocation73_spill] sm:$0xff]  ;;  %v4891_v19 = vld [vmem:[#allocation95_spill] sm:$0xff] }
 0x23e   : > { %v1716_v22 = vsel %vm1699_vm12, %v1683_v26, %v3598_v5  ;;  %v1620_v41 = vsel %vm230_vm0, %v3726_v43, %v4890_v42  ;;  %v4892_v23 = vld [vmem:[#allocation69_spill] sm:$0xff]  ;;  %v4895_v43 = vld [vmem:[#allocation100_spill] sm:$0xff] }
 0x23f   : > { %1553 = vrot.lane.b32.xlu0 %v3117_v1, %s2318_s6  ;;  %v4875_v1 = vld [vmem:[#allocation44_spill] sm:$0xff]  ;;  %v1653_v26 = vsel %vm1633_vm10, %v1620_v41, %v4891_v19  ;;  %v4901_v41 = vld [vmem:[#allocation134_spill] sm:$0xff] }
 0x240   : > { %v1244_v20 = vpop.permute.xlu0 %1243 }
 0x241   : > { %v3832_v37 = vsel %vm1732_vm13, %v1713_v14, %v1244_v20  ;;  %1521 = vrot.lane.b32.xlu2 %v4875_v1, %s2318_s6  ;;  %v3870_v20 = vld [vmem:[#allocation2 + $0x168] sm:$0xff]  ;;  %v4886_v1 = vld [vmem:[#allocation141_spill] sm:$0xff] }
 0x242   : > { %v1252_v46 = vpop.permute.xlu1 %1251  ;;  %1505 = vrot.lane.b32.xlu1 %v4877_v53, %s2318_s6  ;;  %v1631_v27 = vsel %vm230_vm0, %v3870_v20, %v4883_v25  ;;  %v4888_v53 = vld [vmem:[#allocation131_spill] sm:$0xff]  ;;  %v2291_v25 = vld [vmem:[#allocation2 + $0x8] sm:$0xff] }
 0x243   : > { %v3845_v56 = vsel %vm1732_vm13, %v1717_v40, %v1252_v46  ;;  %v1272_v9 = vpop.permute.xlu2 %1271  ;;  %v4885_v40 = vld [vmem:[#allocation99_spill] sm:$0xff]  ;;  %v1720_v46 = vsel %vm1699_vm12, %v1687_v3, %v4886_v1 }
 0x244   : > { %v3853_v18 = vsel %vm1732_vm13, %v1727_v24, %v1272_v9  ;;  %v1664_v5 = vsel %vm1633_vm10, %v1631_v27, %v4885_v40  ;;  %v4889_v9 = vld [vmem:[#allocation28_spill] sm:$0xff]  ;;  %v4894_v27 = vld [vmem:[#allocation30_spill] sm:$0xff] }
 0x245   : > { %v1697_v24 = vsel %vm1666_vm11, %v1664_v5, %v4888_v53  ;;  %v1602_v57 = vsel %vm230_vm0, %v2291_v25, %v4894_v27  ;;  %v4896_v5 = vld [vmem:[#allocation18_spill] sm:$0xff]  ;;  %v4904_v27 = vld [vmem:[#allocation48_spill] sm:$0xff] }
 0x246   : > { %v1730_v52 = vsel %vm1699_vm12, %v1697_v24, %v3693_v61 }
 0x247   : > { %1363 = vrot.lane.b32.xlu0 %v3866_v55, %s2317_s7 }
 0x248   : > { %v1250_v14 = vpop.permute.xlu0 %1249 }
 0x249   : > { %v3878_v29 = vsel %vm1732_vm13, %v1716_v22, %v1250_v14  ;;  %1539 = vrot.lane.b32.xlu2 %v4887_v31, %s2318_s6  ;;  %v1624_v22 = vsel %vm230_vm0, %v3903_v36, %v4892_v23  ;;  %v4893_v14 = vld [vmem:[#allocation118_spill] sm:$0xff] }
 0x24a   : > { %v1258_v15 = vpop.permute.xlu1 %1257  ;;  %1459 = vrot.lane.b32.xlu1 %v4889_v9, %s2319_s8  ;;  %v1686_v61 = vsel %vm1666_vm11, %v1653_v26, %v4893_v14  ;;  %v1657_v3 = vsel %vm1633_vm10, %v1624_v22, %v4895_v43  ;;  %v4899_v9 = vld [vmem:[#allocation102_spill] sm:$0xff]  ;;  %v4902_v26 = vld [vmem:[#allocation4_spill] sm:$0xff] }
 0x24b   : > { %v3891_v59 = vsel %vm1732_vm13, %v1720_v46, %v1258_v15  ;;  %v1278_v7 = vpop.permute.xlu2 %1277  ;;  %v1719_v40 = vsel %vm1699_vm12, %v1686_v61, %v3613_v0  ;;  %v4897_v46 = vld [vmem:[#allocation84_spill] sm:$0xff]  ;;  %v4898_v15 = vld [vmem:[#allocation126_spill] sm:$0xff]  ;;  %v4900_v0 = vld [vmem:[#allocation11_spill] sm:$0xff] }
 0x24c   : > { %v3899_v30 = vsel %vm1732_vm13, %v1730_v52, %v1278_v7  ;;  %v1635_v31 = vsel %vm1633_vm10, %v1602_v57, %v4897_v46  ;;  %v1690_v53 = vsel %vm1666_vm11, %v1657_v3, %v4898_v15  ;;  %v4903_v61 = vld [vmem:[#allocation76_spill] sm:$0xff]  ;;  %v1605_v57 = vsel %vm230_vm0, %v3630_v6, %v4904_v27  ;;  %v4905_v43 = vld [vmem:[#allocation98_spill] sm:$0xff]  ;;  %v4909_v15 = vld [vmem:[#allocation105_spill] sm:$0xff] }
 0x24d   : > { %v1668_v52 = vsel %vm1666_vm11, %v1635_v31, %v4899_v9  ;;  %v1723_v7 = vsel %vm1699_vm12, %v1690_v53, %v3573_v35  ;;  %v1623_v25 = vsel %vm230_vm0, %v3750_v21, %v4903_v61  ;;  %v3957_v46 = vld [vmem:[#allocation2 + $0x138] sm:$0xff] }
 0x24e   : > { %v1701_v19 = vsel %vm1699_vm12, %v1668_v52, %v4901_v41  ;;  %v1656_v3 = vsel %vm1633_vm10, %v1623_v25, %v4905_v43  ;;  %v4908_v31 = vld [vmem:[#allocation72_spill] sm:$0xff]  ;;  %v4911_v52 = vld [vmem:[#allocation103_spill] sm:$0xff]  ;;  %v3989_v43 = vld [vmem:[#allocation2 + $0x128] sm:$0xff] }
 0x24f   : > { %1443 = vrot.lane.b32.xlu0 %v4896_v5, %s2319_s8  ;;  %v1734_v22 = vsel %vm1732_vm13, %v1701_v19, %v3715_v32  ;;  %v4907_v5 = vld [vmem:[#allocation19_spill] sm:$0xff]  ;;  %v1627_v21 = vsel %vm230_vm0, %v3957_v46, %v4908_v31  ;;  %v4913_v41 = vld [vmem:[#allocation32_spill] sm:$0xff] }
 0x250   : > { %v1256_v1 = vpop.permute.xlu0 %1255 }
 0x251   : > { %v3923_v24 = vsel %vm1732_vm13, %v1719_v40, %v1256_v1  ;;  %1427 = vrot.lane.b32.xlu2 %v4900_v0, %s2319_s8  ;;  %v4906_v40 = vld [vmem:[#allocation87_spill] sm:$0xff]  ;;  %v1689_v1 = vsel %vm1666_vm11, %v1656_v3, %v4907_v5  ;;  %v4912_v0 = vld [vmem:[#allocation136_spill] sm:$0xff]  ;;  %v4915_v3 = vld [vmem:[#allocation78_spill] sm:$0xff] }
 0x252   : > { %v1264_v42 = vpop.permute.xlu1 %1263  ;;  %1411 = vrot.lane.b32.xlu1 %v4902_v26, %s2319_s8  ;;  %v1638_v32 = vsel %vm1633_vm10, %v1605_v57, %v4906_v40  ;;  %v1722_v53 = vsel %vm1699_vm12, %v1689_v1, %v3628_v33  ;;  %v4914_v26 = vld [vmem:[#allocation129_spill] sm:$0xff]  ;;  %v1626_v40 = vsel %vm230_vm0, %v3989_v43, %v4915_v3  ;;  %v4918_v1 = vld [vmem:[#allocation90_spill] sm:$0xff] }
 0x253   : > { %v3936_v23 = vsel %vm1732_vm13, %v1723_v7, %v1264_v42  ;;  %v1316_v14 = vpop.permute.xlu2 %1315  ;;  %v1671_v6 = vsel %vm1666_vm11, %v1638_v32, %v4909_v15  ;;  %v1660_v7 = vsel %vm1633_vm10, %v1627_v21, %v4911_v52  ;;  %v4916_v32 = vld [vmem:[#allocation54_spill] sm:$0xff]  ;;  %v4917_v5 = vld [vmem:[#allocation101_spill] sm:$0xff]  ;;  %v4922_v52 = vld [vmem:[#allocation60_spill] sm:$0xff] }
 0x254   : > { %v3941_v35 = vsel %vm1765_vm14, %v1734_v22, %v1316_v14  ;;  %v1704_v42 = vsel %vm1699_vm12, %v1671_v6, %v4912_v0  ;;  %v1693_v22 = vsel %vm1666_vm11, %v1660_v7, %v4914_v26  ;;  %v4919_v21 = vld [vmem:[#allocation26_spill] sm:$0xff]  ;;  %v4920_v6 = vld [vmem:[#allocation75_spill] sm:$0xff] }
 0x255   : > { %v1737_v33 = vsel %vm1732_vm13, %v1704_v42, %v3739_v58  ;;  %v1726_v61 = vsel %vm1699_vm12, %v1693_v22, %v3594_v34  ;;  %v1608_v58 = vsel %vm230_vm0, %v3649_v17, %v4916_v32  ;;  %v1659_v34 = vsel %vm1633_vm10, %v1626_v40, %v4917_v5  ;;  %v4923_v7 = vld [vmem:[#allocation106_spill] sm:$0xff]  ;;  %v4924_v42 = vld [vmem:[#allocation139_spill] sm:$0xff]  ;;  %v4926_v22 = vld [vmem:[#allocation132_spill] sm:$0xff] }
 0x256   : > { %v1641_v31 = vsel %vm1633_vm10, %v1608_v58, %v4918_v1  ;;  %v1692_v15 = vsel %vm1666_vm11, %v1659_v34, %v4919_v21  ;;  %v4925_v26 = vld [vmem:[#allocation27_spill] sm:$0xff]  ;;  %v4927_v32 = vld [vmem:[#allocation80_spill] sm:$0xff]  ;;  %v4931_v21 = vld [vmem:[#allocation41_spill] sm:$0xff] }
 0x257   : > { %1555 = vrot.lane.b32.xlu0 %v3123_v12, %s2318_s6  ;;  %v4910_v12 = vld [vmem:[#allocation43_spill] sm:$0xff]  ;;  %v1725_v17 = vsel %vm1699_vm12, %v1692_v15, %v3647_v54  ;;  %v1629_v58 = vsel %vm230_vm0, %v3744_v44, %v4927_v32 }
 0x258   : > { %v4928_v5 = vld [vmem:[#allocation59_spill] sm:$0xff] }
 0x259   : > { %1523 = vrot.lane.b32.xlu2 %v4910_v12, %s2318_s6  ;;  %v1262_v9 = vpop.permute.xlu0 %1261  ;;  %v4921_v12 = vld [vmem:[#allocation108_spill] sm:$0xff]  ;;  %v1611_v34 = vsel %vm230_vm0, %v3667_v39, %v4928_v5  ;;  %v4935_v39 = vld [vmem:[#allocation9_spill] sm:$0xff] }
 0x25a   : > { %1507 = vrot.lane.b32.xlu1 %v4913_v41, %s2318_s6  ;;  %v3975_v19 = vsel %vm1732_vm13, %v1722_v53, %v1262_v9  ;;  %v1630_v53 = vsel %vm230_vm0, %v3866_v55, %v4920_v6  ;;  %v1674_v9 = vsel %vm1666_vm11, %v1641_v31, %v4921_v12  ;;  %v2294_v31 = vld [vmem:[#allocation2] sm:$0xff]  ;;  %v4932_v6 = vld [vmem:[#allocation92_spill] sm:$0xff] }
 0x25b   : > { %v1322_v14 = vpop.permute.xlu2 %1321  ;;  %v1663_v0 = vsel %vm1633_vm10, %v1630_v53, %v4923_v7  ;;  %v1707_v41 = vsel %vm1699_vm12, %v1674_v9, %v4924_v42  ;;  %v1601_v15 = vsel %vm230_vm0, %v2294_v31, %v4931_v21  ;;  %v1644_v53 = vsel %vm1633_vm10, %v1611_v34, %v4932_v6  ;;  %v4933_v12 = vld [vmem:[#allocation121_spill] sm:$0xff]  ;;  %v4942_v31 = vld [vmem:[#allocation107_spill] sm:$0xff] }
 0x25c   : > { %v3984_v25 = vsel %vm1765_vm14, %v1737_v33, %v1322_v14  ;;  %v1270_v27 = vpop.permute.xlu1 %1269  ;;  %v1696_v33 = vsel %vm1666_vm11, %v1663_v0, %v4926_v22  ;;  %v1740_v54 = vsel %vm1732_vm13, %v1707_v41, %v3761_v10  ;;  %v4929_v10 = vld [vmem:[#allocation104_spill] sm:$0xff]  ;;  %v4934_v9 = vld [vmem:[#allocation77_spill] sm:$0xff]  ;;  %v4944_v6 = vld [vmem:[#allocation123_spill] sm:$0xff] }
 0x25d   : > { %v3987_v57 = vsel %vm1732_vm13, %v1726_v61, %v1270_v27  ;;  %v1729_v61 = vsel %vm1699_vm12, %v1696_v33, %v3609_v49  ;;  %v1662_v1 = vsel %vm1633_vm10, %v1629_v58, %v4929_v10  ;;  %v4930_v49 = vld [vmem:[#allocation20_spill] sm:$0xff]  ;;  %v4936_v7 = vld [vmem:[#allocation13_spill] sm:$0xff]  ;;  %v4939_v33 = vld [vmem:[#allocation3_spill] sm:$0xff] }
 0x25e   : > { %v1695_v44 = vsel %vm1666_vm11, %v1662_v1, %v4933_v12  ;;  %v4937_v42 = vld [vmem:[#allocation109_spill] sm:$0xff]  ;;  %v2295_v10 = vld [vmem:[#allocation2 + $0x170] sm:$0xff] }
 0x25f   : > { %1365 = vrot.lane.b32.xlu0 %v3870_v20, %s2317_s7  ;;  %v4941_v1 = vld [vmem:[#allocation83_spill] sm:$0xff] }
 0x260   : > { %v4945_v12 = vld [vmem:[#allocation79_spill] sm:$0xff] }
 0x261   : > { %1541 = vrot.lane.b32.xlu2 %v4922_v52, %s2318_s6  ;;  %v1268_v20 = vpop.permute.xlu0 %1267  ;;  %v1677_v52 = vsel %vm1666_vm11, %v1644_v53, %v4935_v39 }
 0x262   : > { %1461 = vrot.lane.b32.xlu1 %v4925_v26, %s2319_s8  ;;  %v4021_v55 = vsel %vm1732_vm13, %v1725_v17, %v1268_v20  ;;  %v1634_v17 = vsel %vm1633_vm10, %v1601_v15, %v4934_v9  ;;  %v1728_v20 = vsel %vm1699_vm12, %v1695_v44, %v3665_v8  ;;  %v4938_v26 = vld [vmem:[#allocation142_spill] sm:$0xff] }
 0x263   : > { %v1328_v14 = vpop.permute.xlu2 %1327  ;;  %v1667_v41 = vsel %vm1666_vm11, %v1634_v17, %v4937_v42  ;;  %v1710_v22 = vsel %vm1699_vm12, %v1677_v52, %v4938_v26  ;;  %v4943_v15 = vld [vmem:[#allocation46_spill] sm:$0xff]  ;;  %v4946_v17 = vld [vmem:[#allocation35_spill] sm:$0xff] }
 0x264   : > { %v4030_v27 = vsel %vm1765_vm14, %v1740_v54, %v1328_v14  ;;  %v1276_v3 = vpop.permute.xlu1 %1275  ;;  %v4940_v14 = vld [vmem:[#allocation135_spill] sm:$0xff]  ;;  %v1743_v8 = vsel %vm1732_vm13, %v1710_v22, %v3790_v45  ;;  %v2296_v45 = vld [vmem:[#allocation2 + $0x20] sm:$0xff]  ;;  %v2297_v22 = vld [vmem:[#allocation2 + $0x18] sm:$0xff] }
 0x265   : > { %v4033_v40 = vsel %vm1732_vm13, %v1729_v61, %v1276_v3  ;;  %v1700_v61 = vsel %vm1699_vm12, %v1667_v41, %v4940_v14  ;;  %v4947_v52 = vld [vmem:[#allocation111_spill] sm:$0xff] }
 0x266   : > { %v1733_v32 = vsel %vm1732_vm13, %v1700_v61, %v3621_v38  ;;  %v1604_v38 = vsel %vm230_vm0, %v2296_v45, %v4943_v15  ;;  %v4955_v45 = vld [vmem:[#allocation29_spill] sm:$0xff] }
 0x267   : > { %1445 = vrot.lane.b32.xlu0 %v4930_v49, %s2319_s8  ;;  %v1632_v49 = vsel %vm230_vm0, %v2295_v10, %v4941_v1  ;;  %v1637_v44 = vsel %vm1633_vm10, %v1604_v38, %v4945_v12  ;;  %v4956_v38 = vld [vmem:[#allocation113_spill] sm:$0xff] }
 0x268   : > { %v1665_v21 = vsel %vm1633_vm10, %v1632_v49, %v4942_v31  ;;  %v4954_v49 = vld [vmem:[#allocation82_spill] sm:$0xff] }
 0x269   : > { %1429 = vrot.lane.b32.xlu2 %v4936_v7, %s2319_s8  ;;  %v1274_v0 = vpop.permute.xlu0 %1273  ;;  %v1698_v53 = vsel %vm1666_vm11, %v1665_v21, %v4944_v6  ;;  %v4948_v7 = vld [vmem:[#allocation137_spill] sm:$0xff]  ;;  %v4957_v6 = vld [vmem:[#allocation22_spill] sm:$0xff] }
 0x26a   : > { %1413 = vrot.lane.b32.xlu1 %v4939_v33, %s2319_s8  ;;  %v4066_v54 = vsel %vm1732_vm13, %v1728_v20, %v1274_v0  ;;  %v1731_v9 = vsel %vm1699_vm12, %v1698_v53, %v3683_v4  ;;  %v4949_v33 = vld [vmem:[#allocation33_spill] sm:$0xff]  ;;  %v4958_v53 = vld [vmem:[#allocation140_spill] sm:$0xff] }
 0x26b   : > { %v1334_v3 = vpop.permute.xlu2 %1333  ;;  %v1603_v14 = vsel %vm230_vm0, %v2297_v22, %v4949_v33  ;;  %v4964_v22 = vld [vmem:[#allocation45_spill] sm:$0xff]  ;;  %v4965_v33 = vld [vmem:[#allocation127_spill] sm:$0xff] }
 0x26c   : > { %v4075_v58 = vsel %vm1765_vm14, %v1743_v8, %v1334_v3  ;;  %v1314_v5 = vpop.permute.xlu1 %1313  ;;  %v4950_v8 = vld [vmem:[#allocation86_spill] sm:$0xff] }
 0x26d   : > { %v4078_v34 = vsel %vm1765_vm14, %v1733_v32, %v1314_v5  ;;  %v1636_v3 = vsel %vm1633_vm10, %v1603_v14, %v4950_v8  ;;  %v4951_v32 = vld [vmem:[#allocation110_spill] sm:$0xff]  ;;  %v4966_v8 = vld [vmem:[#allocation156_spill] sm:$0xff] }
 0x26e   : > { %v1669_v5 = vsel %vm1666_vm11, %v1636_v3, %v4951_v32  ;;  %v4967_v32 = vld [vmem:[#allocation5_spill] sm:$0xff] }
 0x26f   : > { %1557 = vrot.lane.b32.xlu0 %v3144_v60, %s2318_s6  ;;  %v1670_v60 = vsel %vm1666_vm11, %v1637_v44, %v4947_v52  ;;  %v4961_v52 = vld [vmem:[#allocation146_spill] sm:$0xff] }
 0x270   : > { %v1703_v0 = vsel %vm1699_vm12, %v1670_v60, %v4948_v7 }
 0x271   : > { %1509 = vrot.lane.b32.xlu2 %v4946_v17, %s2318_s6  ;;  %v1280_v39 = vpop.permute.xlu0 %1279  ;;  %v1736_v41 = vsel %vm1732_vm13, %v1703_v0, %v3641_v2  ;;  %v4952_v2 = vld [vmem:[#allocation52_spill] sm:$0xff]  ;;  %v4962_v0 = vld [vmem:[#allocation89_spill] sm:$0xff] }
 0x272   : > { %1367 = vrot.lane.b32.xlu1 %v2295_v10, %s2317_s7  ;;  %v4100_v20 = vsel %vm1732_vm13, %v1731_v9, %v1280_v39  ;;  %v4953_v10 = vld [vmem:[#allocation125_spill] sm:$0xff] }
 0x273   : > { %v1340_v42 = vpop.permute.xlu2 %1339  ;;  %v1702_v1 = vsel %vm1699_vm12, %v1669_v5, %v4953_v10  ;;  %v4959_v9 = vld [vmem:[#allocation149_spill] sm:$0xff] }
 0x274   : > { %v4108_v4 = vsel %vm1765_vm14, %v3832_v37, %v1340_v42  ;;  %v1320_v26 = vpop.permute.xlu1 %1319  ;;  %v1607_v37 = vsel %vm230_vm0, %v3653_v47, %v4952_v2  ;;  %v1735_v21 = vsel %vm1732_vm13, %v1702_v1, %v3701_v62  ;;  %v4960_v39 = vld [vmem:[#allocation37_spill] sm:$0xff]  ;;  %v4968_v2 = vld [vmem:[#allocation74_spill] sm:$0xff] }
 0x275   : > { %v4113_v61 = vsel %vm1765_vm14, %v1736_v41, %v1320_v26  ;;  %v1640_v31 = vsel %vm1633_vm10, %v1607_v37, %v4954_v49  ;;  %v1606_v60 = vsel %vm230_vm0, %v4961_v52, %v4960_v39  ;;  %v4963_v41 = vld [vmem:[#allocation112_spill] sm:$0xff]  ;;  %v4969_v49 = vld [vmem:[#allocation62_spill] sm:$0xff] }
 0x276   : > { %v1639_v42 = vsel %vm1633_vm10, %v1606_v60, %v4962_v0  ;;  %v4976_v39 = vld [vmem:[#allocation154_spill] sm:$0xff]  ;;  %v4977_v0 = vld [vmem:[#allocation47_spill] sm:$0xff] }
 0x277   : > { %1351 = vrot.lane.b32.xlu0 %v3903_v36, %s2317_s7  ;;  %v1673_v36 = vsel %vm1666_vm11, %v1640_v31, %v4956_v38  ;;  %v1672_v26 = vsel %vm1666_vm11, %v1639_v42, %v4963_v41  ;;  %v4970_v31 = vld [vmem:[#allocation63_spill] sm:$0xff]  ;;  %v4978_v42 = vld [vmem:[#allocation150_spill] sm:$0xff] }
 0x278   : > { %v1706_v12 = vsel %vm1699_vm12, %v1673_v36, %v4958_v53  ;;  %v1705_v14 = vsel %vm1699_vm12, %v1672_v26, %v4965_v33  ;;  %v4973_v36 = vld [vmem:[#allocation97_spill] sm:$0xff]  ;;  %v4974_v53 = vld [vmem:[#allocation119_spill] sm:$0xff]  ;;  %v1612_v41 = vsel %vm230_vm0, %v4978_v42, %v4977_v0  ;;  %v4991_v0 = vld [vmem:[#allocation130_spill] sm:$0xff] }
 0x279   : > { %1463 = vrot.lane.b32.xlu2 %v4955_v45, %s2319_s8  ;;  %v1318_v15 = vpop.permute.xlu0 %1317  ;;  %v1739_v62 = vsel %vm1732_vm13, %v1706_v12, %v4959_v9  ;;  %v1738_v3 = vsel %vm1732_vm13, %v1705_v14, %v4966_v8  ;;  %v4975_v9 = vld [vmem:[#allocation144_spill] sm:$0xff]  ;;  %v4980_v14 = vld [vmem:[#allocation117_spill] sm:$0xff] }
 0x27a   : > { %1447 = vrot.lane.b32.xlu1 %v4957_v6, %s2319_s8  ;;  %v4137_v47 = vsel %vm1765_vm14, %v1735_v21, %v1318_v15  ;;  %v4971_v21 = vld [vmem:[#allocation153_spill] sm:$0xff]  ;;  %v4972_v15 = vld [vmem:[#allocation88_spill] sm:$0xff] }
 0x27b   : > { %v4141_v44 = vpop.permute.xlu2 %1345  ;;  %v1613_v45 = vsel %vm230_vm0, %v4971_v21, %v4970_v31  ;;  %v4981_v8 = vld [vmem:[#allocation12_spill] sm:$0xff]  ;;  %v4984_v31 = vld [vmem:[#allocation50_spill] sm:$0xff] }
 0x27c   : > { %v1326_v17 = vpop.permute.xlu1 %1325  ;;  %v1646_v38 = vsel %vm1633_vm10, %v1613_v45, %v4972_v15 }
 0x27d   : > { %v4149_v7 = vsel %vm1765_vm14, %v1739_v62, %v1326_v17  ;;  %v1679_v12 = vsel %vm1666_vm11, %v1646_v38, %v4974_v53  ;;  %v4985_v38 = vld [vmem:[#allocation42_spill] sm:$0xff] }
 0x27e   : > { %v1712_v62 = vsel %vm1699_vm12, %v1679_v12, %v4975_v9  ;;  %v4987_v12 = vld [vmem:[#allocation155_spill] sm:$0xff] }
 0x27f   : > { %1525 = vrot.lane.b32.xlu0 %v4964_v22, %s2318_s6  ;;  %v1745_v52 = vsel %vm1732_vm13, %v1712_v62, %v4976_v39  ;;  %v4979_v22 = vld [vmem:[#allocation93_spill] sm:$0xff]  ;;  %v4989_v39 = vld [vmem:[#allocation114_spill] sm:$0xff] }
 0x280   : > { %v1645_v33 = vsel %vm1633_vm10, %v1612_v41, %v4979_v22  ;;  %v4992_v22 = vld [vmem:[#allocation145_spill] sm:$0xff] }
 0x281   : > { %1415 = vrot.lane.b32.xlu2 %v4967_v32, %s2319_s8  ;;  %v1324_v5 = vpop.permute.xlu0 %1323 }
 0x282   : > { %1559 = vrot.lane.b32.xlu1 %v4968_v2, %s2318_s6  ;;  %v4166_v37 = vsel %vm1765_vm14, %v1738_v3, %v1324_v5  ;;  %v4982_v3 = vld [vmem:[#allocation133_spill] sm:$0xff] }
 0x283   : > { %v4168_v10 = vpop.permute.xlu2 %1361  ;;  %v4983_v2 = vld [vmem:[#allocation21_spill] sm:$0xff] }
 0x284   : > { %v4170_v1 = vpop.permute.xlu1 %1331 }
 0x287   : > { %1543 = vrot.lane.b32.xlu0 %v4969_v49, %s2318_s6 }
 0x289   : > { %1369 = vrot.lane.b32.xlu2 %v4973_v36, %s2317_s7  ;;  %v1330_v6 = vpop.permute.xlu0 %1329  ;;  %v4986_v36 = vld [vmem:[#allocation148_spill] sm:$0xff] }
 0x28a   : > { %1353 = vrot.lane.b32.xlu1 %v3774_v28, %s2317_s7  ;;  %v1678_v28 = vsel %vm1666_vm11, %v1645_v33, %v4980_v14  ;;  %v1609_v53 = vsel %vm230_vm0, %v4986_v36, %v4985_v38  ;;  %v4997_v38 = vld [vmem:[#allocation49_spill] sm:$0xff] }
 0x28b   : > { %v1538_v17 = vpop.permute.xlu2 %1537  ;;  %v1711_v32 = vsel %vm1699_vm12, %v1678_v28, %v4982_v3  ;;  %v4993_v28 = vld [vmem:[#allocation67_spill] sm:$0xff] }
 0x28c   : > { %v1338_v60 = vpop.permute.xlu1 %1337  ;;  %v1744_v5 = vsel %vm1732_vm13, %v1711_v32, %v3770_v51  ;;  %v4988_v51 = vld [vmem:[#allocation91_spill] sm:$0xff] }
 0x28d   : > { %v4193_v26 = vsel %vm1765_vm14, %v1745_v52, %v1338_v60  ;;  %v1642_v62 = vsel %vm1633_vm10, %v1609_v53, %v4988_v51  ;;  %v4990_v60 = vld [vmem:[#allocation34_spill] sm:$0xff]  ;;  %v4998_v53 = vld [vmem:[#allocation36_spill] sm:$0xff] }
 0x28e   : > { %v1675_v52 = vsel %vm1666_vm11, %v1642_v62, %v4989_v39  ;;  %v4999_v39 = vld [vmem:[#allocation57_spill] sm:$0xff] }
 0x28f   : > { %1431 = vrot.lane.b32.xlu0 %v4981_v8, %s2319_s8  ;;  %v1708_v42 = vsel %vm1699_vm12, %v1675_v52, %v4991_v0  ;;  %v5000_v52 = vld [vmem:[#allocation151_spill] sm:$0xff]  ;;  %v5002_v0 = vld [vmem:[#allocation116_spill] sm:$0xff] }
 0x290   : > { %v1741_v41 = vsel %vm1732_vm13, %v1708_v42, %v3748_v50 }
 0x291   : > { %1449 = vrot.lane.b32.xlu2 %v4983_v2, %s2319_s8  ;;  %v1336_v49 = vpop.permute.xlu0 %1335  ;;  %v1774_v14 = vsel %vm1765_vm14, %v1741_v41, %v1330_v6  ;;  %v4994_v2 = vld [vmem:[#allocation124_spill] sm:$0xff]  ;;  %v2298_v41 = vld [vmem:[#allocation2 + $0x188] sm:$0xff] }
 0x292   : > { %1527 = vrot.lane.b32.xlu1 %v4984_v31, %s2318_s6  ;;  %v4210_v21 = vsel %vm1765_vm14, %v1744_v5, %v1336_v49 }
 0x293   : > { %v1426_v45 = vpop.permute.xlu2 %1425 }
 0x294   : > { %v1344_v15 = vpop.permute.xlu1 %1343  ;;  %v1807_v3 = vsel %vm1798_vm15, %v1774_v14, %v1426_v45  ;;  %v4996_v45 = vld [vmem:[#allocation7_spill] sm:$0xff]  ;;  %v5004_v14 = vld [vmem:[#allocation152_spill] sm:$0xff] }
 0x295   : > { %v4217_v9 = vsel %vm1765_vm14, %v4987_v12, %v1344_v15  ;;  %v1782_v15 = vsel %vm1765_vm14, %v3878_v29, %v4141_v44  ;;  %v5001_v29 = vld [vmem:[#allocation85_spill] sm:$0xff] }
 0x297   : > { %1511 = vrot.lane.b32.xlu0 %v4990_v60, %s2318_s6  ;;  %v1610_v60 = vsel %vm230_vm0, %v5000_v52, %v4999_v39  ;;  %v594_v39 = vld [vmem:[#allocation2 + $0x198] sm:$0xff]  ;;  %v4300_v52 = vld [vmem:[#allocation2 + $0x1a0] sm:$0xff] }
 0x298   : > { %v1643_v44 = vsel %vm1633_vm10, %v1610_v60, %v5001_v29  ;;  %v5011_v29 = vld [vmem:[#allocation39_spill] sm:$0xff] }
 0x299   : > { %1561 = vrot.lane.b32.xlu2 %v4992_v22, %s2318_s6  ;;  %v1342_v33 = vpop.permute.xlu0 %1341  ;;  %v1676_v42 = vsel %vm1666_vm11, %v1643_v44, %v5002_v0  ;;  %v5003_v22 = vld [vmem:[#allocation143_spill] sm:$0xff]  ;;  %v823_v0 = vrot.slane %v594_v39, 1 }
 0x29a   : > { %1545 = vrot.lane.b32.xlu1 %v4993_v28, %s2318_s6  ;;  %v4236_v8 = vsel %vm1765_vm14, %v3806_v16, %v1342_v33  ;;  %v4995_v16 = vld [vmem:[#allocation14_spill] sm:$0xff]  ;;  %v1709_v33 = vsel %vm1699_vm12, %v1676_v42, %v5003_v22 }
 0x29b   : > { %v1522_v32 = vpop.permute.xlu2 %1521  ;;  %v1742_v28 = vsel %vm1732_vm13, %v1709_v33, %v5004_v14 }
 0x29c   : > { %v1840_v50 = vsel %vm1831_vm1, %v1807_v3, %v1522_v32  ;;  %v4240_v5 = vpop.permute.xlu1 %1349  ;;  %v5005_v32 = vld [vmem:[#allocation66_spill] sm:$0xff] }
 0x29d   : > { %2188 = vmatmul.msk.f32.vlgmr.msrb.gmra.mxu1 %vm1865_vm3, %v1840_v50 }
 0x29f   : > { %1465 = vrot.lane.b32.xlu0 %v4994_v2, %s2319_s8  ;;  %v1775_v2 = vsel %vm1765_vm14, %v1742_v28, %v4170_v1  ;;  %v5007_v1 = vld [vmem:[#allocation23_spill] sm:$0xff] }
 0x2a1   : > { %1355 = vrot.lane.b32.xlu2 %v3989_v43, %s2317_s7  ;;  %v1348_v6 = vpop.permute.xlu0 %1347 }
 0x2a2   : > { %1433 = vrot.lane.b32.xlu1 %v4995_v16, %s2319_s8  ;;  %v5006_v16 = vld [vmem:[#allocation122_spill] sm:$0xff]  ;;  %v1783_v60 = vsel %vm1765_vm14, %v3845_v56, %v1348_v6 }
 0x2a3   : > { %v1540_v49 = vpop.permute.xlu2 %1539 }
 0x2a4   : > { %v1458_v31 = vpop.permute.xlu1 %1457 }
 0x2a7   : > { %1417 = vrot.lane.b32.xlu0 %v4996_v45, %s2319_s8 }
 0x2a9   : > { %1529 = vrot.lane.b32.xlu2 %v4997_v38, %s2318_s6  ;;  %v1442_v36 = vpop.permute.xlu0 %1441 }
 0x2aa   : > { %1513 = vrot.lane.b32.xlu1 %v4998_v53, %s2318_s6  ;;  %v1815_v43 = vsel %vm1798_vm15, %v1782_v15, %v1442_v36  ;;  %v5008_v53 = vld [vmem:[#allocation16_spill] sm:$0xff] }
 0x2ab   : > { %v1428_v12 = vpop.permute.xlu2 %1427  ;;  %v1848_v51 = vsel %vm1831_vm1, %v1815_v43, %v1538_v17  ;;  %v1790_v17 = vsel %vm1765_vm14, %v3801_v63, %v4168_v10 }
 0x2ac   : > { %v1410_v62 = vpop.permute.xlu1 %1409  ;;  %2196 = vmatmul.msk.f32.vlgmr.msra.gmra.mxu2 %vm1865_vm3, %v1848_v51  ;;  %v1823_v3 = vsel %vm1798_vm15, %v1790_v17, %v1458_v31  ;;  %v1808_v15 = vsel %vm1798_vm15, %v1775_v2, %v1428_v12  ;;  %v5009_v12 = vld [vmem:[#allocation6_spill] sm:$0xff] }
 0x2ad   : > { %v1799_v10 = vsel %vm1798_vm15, %v4078_v34, %v1410_v62  ;;  %v5010_v62 = vld [vmem:[#allocation147_spill] sm:$0xff] }
 0x2af   : > { %1371 = vrot.lane.b32.xlu0 %v2298_v41, %s2317_s7  ;;  %v824_v41 = vrot.slane %v4300_v52, 1 }
 0x2b1   : > { %1547 = vrot.lane.b32.xlu2 %v5005_v32, %s2318_s6  ;;  %v1554_v50 = vpop.permute.xlu0 %1553  ;;  %v825_v6 = vsel %vm645_vm2, %v823_v0, %v824_v41  ;;  %v828_v32 = vrot.slane %v594_v39, 2 }
 0x2b2   : > { %1467 = vrot.lane.b32.xlu1 %v5006_v16, %s2319_s8  ;;  %v1856_v45 = vsel %vm1831_vm1, %v1823_v3, %v1554_v50  ;;  %v5012_v3 = vld [vmem:[#allocation25_spill] sm:$0xff] }
 0x2b3   : > { %v1524_v63 = vpop.permute.xlu2 %1523  ;;  %2204 = vmatmul.msk.f32.vlgmr.msra.gmra.mxu3 %vm1865_vm3, %v1856_v45  ;;  %v5013_v45 = vld [vmem:[#allocation51_spill] sm:$0xff] }
 0x2b4   : > { %v1506_v31 = vpop.permute.xlu1 %1505  ;;  %v1841_v38 = vsel %vm1831_vm1, %v1808_v15, %v1524_v63  ;;  %v5014_v63 = vld [vmem:[#allocation8_spill] sm:$0xff] }
 0x2b5   : > { %v1832_v36 = vsel %vm1831_vm1, %v1799_v10, %v1506_v31  ;;  %2189 = vmatmul.msk.f32.gmra.mxu1 %vm1865_vm3, %v1841_v38 }
 0x2b6   : > { %2180 = vmatmul.msk.f32.vlgmr.msrb.gmra.mxu0 %vm1865_vm3, %v1832_v36  ;;  %v1784_v36 = vsel %vm1765_vm14, %v3742_v13, %v4240_v5 }
 0x2b7   : > { %1451 = vrot.lane.b32.xlu0 %v5007_v1, %s2319_s8 }
 0x2b9   : > { %1435 = vrot.lane.b32.xlu2 %v5008_v53, %s2319_s8  ;;  %v1364_v43 = vpop.permute.xlu0 %1363 }
 0x2ba   : > { %1419 = vrot.lane.b32.xlu1 %v5009_v12, %s2319_s8  ;;  %v1791_v56 = vsel %vm1765_vm14, %v4021_v55, %v1364_v43  ;;  %v829_v55 = vrot.slane %v4300_v52, 2 }
 0x2bb   : > { %v1542_v34 = vpop.permute.xlu2 %1541 }
 0x2bc   : > { %v1460_v51 = vpop.permute.xlu1 %1459  ;;  %v830_v15 = vsel %vm726_vm5, %v828_v32, %v829_v55 }
 0x2bd   : > { %v1824_v14 = vsel %vm1798_vm15, %v1791_v56, %v1460_v51 }
 0x2bf   : > { %1563 = vrot.lane.b32.xlu0 %v5010_v62, %s2318_s6 }
 0x2c1   : > { %1515 = vrot.lane.b32.xlu2 %v5011_v29, %s2318_s6  ;;  %v1444_v44 = vpop.permute.xlu0 %1443  ;;  %v596_v29 = vld [vmem:[#allocation2 + $0x1a8] sm:$0x3] }
 0x2c2   : > { %1373 = vrot.lane.b32.xlu1 %v594_v39, %s2317_s7  ;;  %v1816_v42 = vsel %vm1798_vm15, %v1783_v60, %v1444_v44  ;;  %v5018_v60 = vld [vmem:[#allocation56_spill] sm:$0xff]  ;;  %v831_v44 = vrot.slane %v596_v29, 2 }
 0x2c3   : > { %v1430_v22 = vpop.permute.xlu2 %1429  ;;  %v1849_v33 = vsel %vm1831_vm1, %v1816_v42, %v1540_v49  ;;  %v5019_v42 = vld [vmem:[#allocation38_spill] sm:$0xff] }
 0x2c4   : > { %v1412_v17 = vpop.permute.xlu1 %1411  ;;  %2197 = vmatmul.msk.f32.gmra.mxu2 %vm1865_vm3, %v1849_v33  ;;  %v826_v33 = vrot.slane %v596_v29, 1 }
 0x2c5   : > { %v1800_v2 = vsel %vm1798_vm15, %v3941_v35, %v1412_v17  ;;  %v5015_v35 = vld [vmem:[#allocation68_spill] sm:$0xff]  ;;  %v832_v17 = vsel %vm726_vm5, %v829_v55, %v831_v44 }
 0x2c6   : > { %v5021_v55 = vld [vmem:[#allocation40_spill] sm:$0xff] }
 0x2c7   : > { %1357 = vrot.lane.b32.xlu0 %v3957_v46, %s2317_s7 }
 0x2c9   : > { %1469 = vrot.lane.b32.xlu2 %v825_v6, %s2319_s8  ;;  %v1556_v28 = vpop.permute.xlu0 %1555  ;;  %v5020_v6 = vld [vmem:[#allocation71_spill] sm:$0xff] }
 0x2ca   : > { %1453 = vrot.lane.b32.xlu1 %v5012_v3, %s2319_s8  ;;  %v1857_v49 = vsel %vm1831_vm1, %v1824_v14, %v1556_v28  ;;  %v827_v28 = vsel %vm645_vm2, %v824_v41, %v826_v33  ;;  %v1809_v3 = vsel %vm1798_vm15, %v4075_v58, %v1430_v22  ;;  %v5023_v22 = vld [vmem:[#allocation10_spill] sm:$0xff] }
 0x2cb   : > { %v1510_v50 = vpop.permute.xlu2 %1509  ;;  %2205 = vmatmul.msk.f32.gmra.mxu3 %vm1865_vm3, %v1857_v49 }
 0x2cc   : > { %v1508_v46 = vpop.permute.xlu1 %1507 }
 0x2cd   : > { %v1833_v16 = vsel %vm1831_vm1, %v1800_v2, %v1508_v46  ;;  %v5022_v2 = vld [vmem:[#allocation17_spill] sm:$0xff] }
 0x2ce   : > { %2181 = vmatmul.msk.f32.gmra.mxu0 %vm1865_vm3, %v1833_v16 }
 0x2cf   : > { %1531 = vrot.lane.b32.xlu0 %v5013_v45, %s2318_s6 }
 0x2d1   : > { %1421 = vrot.lane.b32.xlu2 %v5014_v63, %s2319_s8  ;;  %v1366_v10 = vpop.permute.xlu0 %1365 }
 0x2d2   : > { %1565 = vrot.lane.b32.xlu1 %v830_v15, %s2318_s6  ;;  %v1792_v13 = vsel %vm1765_vm14, %v3987_v57, %v1366_v10 }
 0x2d3   : > { %v1464_v31 = vpop.permute.xlu2 %1463 }
 0x2d4   : > { %v1462_v38 = vpop.permute.xlu1 %1461 }
 0x2d5   : > { %v1825_v39 = vsel %vm1798_vm15, %v1792_v13, %v1462_v38 }
 0x2d7   : > { %1549 = vrot.lane.b32.xlu0 %v5015_v35, %s2318_s6 }
 0x2d9   : > { %1375 = vrot.lane.b32.xlu2 %v4300_v52, %s2317_s7  ;;  %v1446_v1 = vpop.permute.xlu0 %1445  ;;  %v5017_v52 = vld [vmem:[#allocation24_spill] sm:$0xff] }
 0x2da   : > { %1359 = vrot.lane.b32.xlu1 %v3824_v11, %s2317_s7  ;;  %v1817_v53 = vsel %vm1798_vm15, %v1784_v36, %v1446_v1  ;;  %v5016_v11 = vld [vmem:[#allocation15_spill] sm:$0xff] }
 0x2db   : > { %v1850_v43 = vsel %vm1831_vm1, %v1817_v53, %v1542_v34  ;;  %v1416_v51 = vpop.permute.xlu2 %1415 }
 0x2dc   : > { %v1414_v12 = vpop.permute.xlu1 %1413  ;;  %2198 = vmatmul.msk.f32.gmra.mxu2 %vm1865_vm3, %v1850_v43  ;;  %v1802_v43 = vsel %vm1798_vm15, %v4113_v61, %v1416_v51 }
 0x2dd   : > { %v1801_v62 = vsel %vm1798_vm15, %v4137_v47, %v1414_v12 }
 0x2de   : > { %v1834_v5 = vsel %vm1831_vm1, %v1801_v62, %v1510_v50 }
 0x2df   : > { %2182 = vmatmul.msk.f32.gmra.mxu0 %vm1865_vm3, %v1834_v5  ;;  %1437 = vrot.lane.b32.xlu0 %v5016_v11, %s2319_s8 }
 0x2e1   : > { %v1558_v34 = vpop.permute.xlu0 %1557  ;;  %1455 = vrot.lane.b32.xlu2 %v5017_v52, %s2319_s8 }
 0x2e2   : > { %1533 = vrot.lane.b32.xlu1 %v5018_v60, %s2318_s6  ;;  %v1858_v47 = vsel %vm1831_vm1, %v1825_v39, %v1558_v34  ;;  %v452_v34 = vpop.f32.mrf.mxu1 }
 0x2e3   : > { %2206 = vmatmul.msk.f32.gmra.mxu3 %vm1865_vm3, %v1858_v47  ;;  %v1370_v0 = vpop.permute.xlu2 %1369  ;;  %v4412_v29 = vperm.slane %v452_v34, 0 }
 0x2e4   : > { %v1368_v57 = vpop.permute.xlu1 %1367  ;;  %v1794_v61 = vsel %vm1765_vm14, %v4066_v54, %v1370_v0 }
 0x2e5   : > { %v1793_v49 = vsel %vm1765_vm14, %v3853_v18, %v1368_v57 }
 0x2e6   : > { %v1826_v16 = vsel %vm1798_vm15, %v1793_v49, %v1464_v31  ;;  %v5024_v31 = vld [vmem:[#allocation55_spill] sm:$0xff] }
 0x2e7   : > { %1517 = vrot.lane.b32.xlu0 %v5019_v42, %s2318_s6 }
 0x2e9   : > { %v1352_v56 = vpop.permute.xlu0 %1351  ;;  %1567 = vrot.lane.b32.xlu2 %v832_v17, %s2318_s6 }
 0x2ea   : > { %1551 = vrot.lane.b32.xlu1 %v5020_v6, %s2318_s6  ;;  %v1785_v18 = vsel %vm1765_vm14, %v3923_v24, %v1352_v56 }
 0x2eb   : > { %v1450_v32 = vpop.permute.xlu2 %1449 }
 0x2ec   : > { %v1448_v14 = vpop.permute.xlu1 %1447 }
 0x2ed   : > { %v1818_v45 = vsel %vm1798_vm15, %v1785_v18, %v1448_v14 }
 0x2ef   : > { %1471 = vrot.lane.b32.xlu0 %v827_v28, %s2319_s8 }
 0x2f1   : > { %v1526_v50 = vpop.permute.xlu0 %1525  ;;  %1519 = vrot.lane.b32.xlu2 %v5021_v55, %s2318_s6 }
 0x2f2   : > { %1439 = vrot.lane.b32.xlu1 %v5022_v2, %s2319_s8  ;;  %v1842_v46 = vsel %vm1831_vm1, %v1809_v3, %v1526_v50 }
 0x2f3   : > { %2190 = vmatmul.msk.f32.gmra.mxu1 %vm1865_vm3, %v1842_v46  ;;  %v1562_v10 = vpop.permute.xlu2 %1561 }
 0x2f4   : > { %v1560_v41 = vpop.permute.xlu1 %1559 }
 0x2f5   : > { %v1859_v58 = vsel %vm1831_vm1, %v1826_v16, %v1560_v41 }
 0x2f6   : > { %2207 = vmatmul.msk.f32.gmra.mxu3 %vm1865_vm3, %v1859_v58 }
 0x2f7   : > { %1423 = vrot.lane.b32.xlu0 %v5023_v22, %s2319_s8 }
 0x2f9   : > { %v1544_v15 = vpop.permute.xlu0 %1543 }
 0x2fa   : > { %v1851_v63 = vsel %vm1831_vm1, %v1818_v45, %v1544_v15 }
 0x2fb   : > { %2199 = vmatmul.msk.f32.gmra.mxu2 %vm1865_vm3, %v1851_v63  ;;  %v1356_v1 = vpop.permute.xlu2 %1355 }
 0x2fc   : > { %v1354_v38 = vpop.permute.xlu1 %1353  ;;  %v1787_v14 = vsel %vm1765_vm14, %v3768_v48, %v1356_v1 }
 0x2fd   : > { %v1786_v12 = vsel %vm1765_vm14, %v3891_v59, %v1354_v38 }
 0x2ff   : > { %1535 = vrot.lane.b32.xlu0 %v5024_v31, %s2318_s6 }
 0x301   : > { %v1432_v35 = vpop.permute.xlu0 %1431 }
 0x302   : > { %v1810_v24 = vsel %vm1798_vm15, %v4210_v21, %v1432_v35  ;;  %v1819_v21 = vsel %vm1798_vm15, %v1786_v12, %v1450_v32 }
 0x303   : > { %v1530_v39 = vpop.permute.xlu2 %1529 }
 0x304   : > { %v1528_v36 = vpop.permute.xlu1 %1527 }
 0x305   : > { %v1843_v53 = vsel %vm1831_vm1, %v1810_v24, %v1528_v36 }
 0x306   : > { %2191 = vmatmul.msk.f32.gmra.mxu1 %vm1865_vm3, %v1843_v53 }
 0x309   : > { %v1512_v62 = vpop.permute.xlu0 %1511 }
 0x30a   : > { %v1835_v13 = vsel %vm1831_vm1, %v1802_v43, %v1512_v62 }
 0x30b   : > { %2183 = vmatmul.msk.f32.gmra.mxu0 %vm1865_vm3, %v1835_v13  ;;  %v1548_v44 = vpop.permute.xlu2 %1547 }
 0x30c   : > { %v1546_v5 = vpop.permute.xlu1 %1545 }
 0x30d   : > { %v1852_v11 = vsel %vm1831_vm1, %v1819_v21, %v1546_v5 }
 0x30e   : > { %2200 = vmatmul.msk.f32.gmra.mxu2 %vm1865_vm3, %v1852_v11 }
 0x311   : > { %v1466_v51 = vpop.permute.xlu0 %1465 }
 0x312   : > { %v1827_v59 = vsel %vm1798_vm15, %v1794_v61, %v1466_v51 }
 0x313   : > { %v1860_v52 = vsel %vm1831_vm1, %v1827_v59, %v1562_v10  ;;  %v1436_v6 = vpop.permute.xlu2 %1435 }
 0x314   : > { %v1434_v60 = vpop.permute.xlu1 %1433  ;;  %2208 = vmatmul.msk.f32.gmra.mxu3 %vm1865_vm3, %v1860_v52  ;;  %v1812_v24 = vsel %vm1798_vm15, %v4108_v4, %v1436_v6 }
 0x315   : > { %v1811_v47 = vsel %vm1798_vm15, %v4193_v26, %v1434_v60 }
 0x316   : > { %v1844_v57 = vsel %vm1831_vm1, %v1811_v47, %v1530_v39 }
 0x317   : > { %2192 = vmatmul.msk.f32.gmra.mxu1 %vm1865_vm3, %v1844_v57 }
 0x319   : > { %v1418_v54 = vpop.permute.xlu0 %1417 }
 0x31a   : > { %v1803_v0 = vsel %vm1798_vm15, %v3984_v25, %v1418_v54  ;;  %v2006_v42 = vpop.f32.mrf.mxu1 }
 0x31b   : > { %v2007_v26 = vadd.f32 %v2006_v42, %v4412_v29  ;;  %v1516_v50 = vpop.permute.xlu2 %1515 }
 0x31c   : > { %v1514_v33 = vpop.permute.xlu1 %1513 }
 0x31d   : > { %2086 = vst.msk [vmem:[%s4421_s11 + $0x40] sm:$0xff] %vm1633_vm10, %v2007_v26  ;;  %v1836_v17 = vsel %vm1831_vm1, %v1803_v0, %v1514_v33 }
 0x31e   : > { %2184 = vmatmul.msk.f32.gmra.mxu0 %vm1865_vm3, %v1836_v17 }
 0x321   : > { %v1372_v56 = vpop.permute.xlu0 %1371 }
 0x322   : > { %v1795_v2 = vsel %vm1765_vm14, %v4033_v40, %v1372_v56 }
 0x323   : > { %v1470_v31 = vpop.permute.xlu2 %1469 }
 0x324   : > { %v1468_v25 = vpop.permute.xlu1 %1467 }
 0x325   : > { %v1828_v16 = vsel %vm1798_vm15, %v1795_v2, %v1468_v25 }
 0x329   : > { %v1452_v28 = vpop.permute.xlu0 %1451 }
 0x32a   : > { %v1820_v3 = vsel %vm1798_vm15, %v1787_v14, %v1452_v28 }
 0x32b   : > { %v1853_v49 = vsel %vm1831_vm1, %v1820_v3, %v1548_v44  ;;  %v1422_v43 = vpop.permute.xlu2 %1421 }
 0x32c   : > { %v1420_v32 = vpop.permute.xlu1 %1419  ;;  %2201 = vmatmul.msk.f32.gmra.mxu2 %vm1865_vm3, %v1853_v49  ;;  %v1805_v0 = vsel %vm1798_vm15, %v4149_v7, %v1422_v43 }
 0x32d   : > { %v1804_v55 = vsel %vm1798_vm15, %v4166_v37, %v1420_v32 }
 0x32e   : > { %v1837_v46 = vsel %vm1831_vm1, %v1804_v55, %v1516_v50 }
 0x32f   : > { %2185 = vmatmul.msk.f32.gmra.mxu0 %vm1865_vm3, %v1837_v46  ;;  %v2030_v48 = vpop.f32.mrf.mxu2 }
 0x330   : > { %v2031_v41 = vadd.f32 %v2030_v48, %v4412_v29 }
 0x331   : > { %v1564_v58 = vpop.permute.xlu0 %1563 }
 0x332   : > { %2094 = vst.msk [vmem:[%s4421_s11 + $0x80] sm:$0xff] %vm1633_vm10, %v2031_v41  ;;  %v2009_v18 = vpop.f32.mrf.mxu1  ;;  %v1861_v37 = vsel %vm1831_vm1, %v1828_v16, %v1564_v58 }
 0x333   : > { %v1982_v22 = vpop.f32.mrf.mxu0  ;;  %v2010_v40 = vadd.f32 %v2009_v18, %v4412_v29  ;;  %2209 = vmatmul.msk.f32.gmra.mxu3 %vm1865_vm3, %v1861_v37 }
 0x334   : > { %v1983_v45 = vadd.f32 %v1982_v22, %v4412_v29  ;;  %v1374_v15 = vpop.permute.xlu1 %1373 }
 0x335   : > { %2087 = vst.msk [vmem:[%s4421_s11 + $0x48] sm:$0xff] %vm1633_vm10, %v2010_v40  ;;  %v1796_v36 = vsel %vm1765_vm14, %v3899_v30, %v1374_v15 }
 0x336   : > { %2078 = vst.msk [vmem:[%s4421_s11] sm:$0xff] %vm1633_vm10, %v1983_v45  ;;  %v2054_v63 = vpop.f32.mrf.mxu3  ;;  %v1829_v62 = vsel %vm1798_vm15, %v1796_v36, %v1470_v31 }
 0x337   : > { %v2055_v10 = vadd.f32 %v2054_v63, %v4412_v29 }
 0x339   : > { %2102 = vst.msk [vmem:[%s4421_s11 + $0xc0] sm:$0xff] %vm1633_vm10, %v2055_v10  ;;  %v1358_v38 = vpop.permute.xlu0 %1357 }
 0x33a   : > { %v1788_v5 = vsel %vm1765_vm14, %v3975_v19, %v1358_v38  ;;  %v1376_v19 = vpop.permute.xlu2 %1375 }
 0x33b   : > { %v1797_v28 = vsel %vm1765_vm14, %v4100_v20, %v1376_v19 }
 0x33c   : > { %v1454_v35 = vpop.permute.xlu1 %1453 }
 0x33d   : > { %v1821_v21 = vsel %vm1798_vm15, %v1788_v5, %v1454_v35 }
 0x341   : > { %v1532_v1 = vpop.permute.xlu0 %1531 }
 0x342   : > { %v1845_v53 = vsel %vm1831_vm1, %v1812_v24, %v1532_v1  ;;  %v1456_v54 = vpop.permute.xlu2 %1455 }
 0x343   : > { %2193 = vmatmul.msk.f32.gmra.mxu1 %vm1865_vm3, %v1845_v53 }
 0x344   : > { %v1566_v12 = vpop.permute.xlu1 %1565 }
 0x345   : > { %v1862_v13 = vsel %vm1831_vm1, %v1829_v62, %v1566_v12 }
 0x346   : > { %2210 = vmatmul.msk.f32.gmra.mxu3 %vm1865_vm3, %v1862_v13 }
 0x347   : > { %v2033_v4 = vpop.f32.mrf.mxu2 }
 0x348   : > { %v2034_v30 = vadd.f32 %v2033_v4, %v4412_v29 }
 0x349   : > { %v1550_v11 = vpop.permute.xlu0 %1549 }
 0x34a   : > { %2095 = vst.msk [vmem:[%s4421_s11 + $0x88] sm:$0xff] %vm1633_vm10, %v2034_v30  ;;  %v1854_v39 = vsel %vm1831_vm1, %v1821_v21, %v1550_v11  ;;  %v1568_v7 = vpop.permute.xlu2 %1567 }
 0x34b   : > { %v1985_v61 = vpop.f32.mrf.mxu0  ;;  %2202 = vmatmul.msk.f32.gmra.mxu2 %vm1865_vm3, %v1854_v39 }
 0x34c   : > { %v1986_v51 = vadd.f32 %v1985_v61, %v4412_v29  ;;  %v1360_v34 = vpop.permute.xlu1 %1359 }
 0x34d   : > { %v1789_v42 = vsel %vm1765_vm14, %v3936_v23, %v1360_v34 }
 0x34e   : > { %2079 = vst.msk [vmem:[%s4421_s11 + $0x8] sm:$0xff] %vm1633_vm10, %v1986_v51  ;;  %v2057_v59 = vpop.f32.mrf.mxu3 }
 0x34f   : > { %v2058_v52 = vadd.f32 %v2057_v59, %v4412_v29 }
 0x351   : > { %2103 = vst.msk [vmem:[%s4421_s11 + $0xc8] sm:$0xff] %vm1633_vm10, %v2058_v52  ;;  %v1438_v60 = vpop.permute.xlu0 %1437 }
 0x352   : > { %v1813_v47 = vsel %vm1798_vm15, %v4236_v8, %v1438_v60  ;;  %v1822_v8 = vsel %vm1798_vm15, %v1789_v42, %v1456_v54  ;;  %v1520_v2 = vpop.permute.xlu2 %1519 }
 0x354   : > { %v1534_v57 = vpop.permute.xlu1 %1533 }
 0x355   : > { %v1846_v44 = vsel %vm1831_vm1, %v1813_v47, %v1534_v57 }
 0x356   : > { %2194 = vmatmul.msk.f32.gmra.mxu1 %vm1865_vm3, %v1846_v44 }
 0x359   : > { %v1518_v26 = vpop.permute.xlu0 %1517 }
 0x35a   : > { %v1838_v33 = vsel %vm1831_vm1, %v1805_v0, %v1518_v26 }
 0x35b   : > { %2186 = vmatmul.msk.f32.gmra.mxu0 %vm1865_vm3, %v1838_v33 }
 0x35c   : > { %v1552_v17 = vpop.permute.xlu1 %1551  ;;  %v1988_v56 = vpop.f32.mrf.mxu0 }
 0x35d   : > { %v1989_v6 = vadd.f32 %v1988_v56, %v4412_v29  ;;  %v1855_v25 = vsel %vm1831_vm1, %v1822_v8, %v1552_v17 }
 0x35e   : > { %2203 = vmatmul.msk.f32.gmra.mxu2 %vm1865_vm3, %v1855_v25 }
 0x35f   : > { %2080 = vst.msk [vmem:[%s4421_s11 + $0x10] sm:$0xff] %vm1633_vm10, %v1989_v6  ;;  %v2036_v23 = vpop.f32.mrf.mxu2 }
 0x360   : > { %v2037_v14 = vadd.f32 %v2036_v23, %v4412_v29 }
 0x361   : > { %v1472_v3 = vpop.permute.xlu0 %1471 }
 0x362   : > { %2096 = vst.msk [vmem:[%s4421_s11 + $0x90] sm:$0xff] %vm1633_vm10, %v2037_v14  ;;  %v1830_v49 = vsel %vm1798_vm15, %v1797_v28, %v1472_v3 }
 0x363   : > { %v1863_v32 = vsel %vm1831_vm1, %v1830_v49, %v1568_v7 }
 0x364   : > { %2211 = vmatmul.msk.f32.gmra.mxu3 %vm1865_vm3, %v1863_v32  ;;  %v1440_v41 = vpop.permute.xlu1 %1439 }
 0x365   : > { %v1814_v58 = vsel %vm1798_vm15, %v4217_v9, %v1440_v41 }
 0x366   : > { %v2060_v50 = vpop.f32.mrf.mxu3 }
 0x367   : > { %v2061_v55 = vadd.f32 %v2060_v50, %v4412_v29 }
 0x369   : > { %2104 = vst.msk [vmem:[%s4421_s11 + $0xd0] sm:$0xff] %vm1633_vm10, %v2061_v55  ;;  %v1424_v46 = vpop.permute.xlu0 %1423 }
 0x36a   : > { %v1806_v20 = vsel %vm1798_vm15, %v4030_v27, %v1424_v46 }
 0x36b   : > { %v1839_v48 = vsel %vm1831_vm1, %v1806_v20, %v1520_v2 }
 0x36c   : > { %2187 = vmatmul.msk.f32.gmra.mxu0 %vm1865_vm3, %v1839_v48 }
 0x370   : > { %v2012_v16 = vpop.f32.mrf.mxu1 }
 0x371   : > { %v2013_v18 = vadd.f32 %v2012_v16, %v4412_v29  ;;  %v1536_v37 = vpop.permute.xlu0 %1535 }
 0x372   : > { %v1847_v22 = vsel %vm1831_vm1, %v1814_v58, %v1536_v37 }
 0x373   : > { %2088 = vst.msk [vmem:[%s4421_s11 + $0x50] sm:$0xff] %vm1633_vm10, %v2013_v18  ;;  %2195 = vmatmul.msk.f32.gmra.mxu1 %vm1865_vm3, %v1847_v22 }
 0x379   : > { %v2063_v27 = vpop.f32.mrf.mxu3 }
 0x37a   : > { %v2064_v40 = vadd.f32 %v2063_v27, %v4412_v29 }
 0x37c   : > { %2105 = vst.msk [vmem:[%s4421_s11 + $0xd8] sm:$0xff] %vm1633_vm10, %v2064_v40 }
 0x37e   : > { %v2039_v45 = vpop.f32.mrf.mxu2 }
 0x37f   : > { %v2040_v9 = vadd.f32 %v2039_v45, %v4412_v29 }
 0x381   : > { %2097 = vst.msk [vmem:[%s4421_s11 + $0x98] sm:$0xff] %vm1633_vm10, %v2040_v9 }
 0x383   : > { %v2015_v15 = vpop.f32.mrf.mxu1 }
 0x384   : > { %v2016_v63 = vadd.f32 %v2015_v15, %v4412_v29 }
 0x386   : > { %2089 = vst.msk [vmem:[%s4421_s11 + $0x58] sm:$0xff] %vm1633_vm10, %v2016_v63 }
 0x388   : > { %v1991_v10 = vpop.f32.mrf.mxu0 }
 0x389   : > { %v1992_v38 = vadd.f32 %v1991_v10, %v4412_v29 }
 0x38b   : > { %2081 = vst.msk [vmem:[%s4421_s11 + $0x18] sm:$0xff] %vm1633_vm10, %v1992_v38 }
 0x391   : > { %v2042_v31 = vpop.f32.mrf.mxu2 }
 0x392   : > { %v2043_v35 = vadd.f32 %v2042_v31, %v4412_v29 }
 0x394   : > { %2098 = vst.msk [vmem:[%s4421_s11 + $0xa0] sm:$0xff] %vm1633_vm10, %v2043_v35  ;;  %v2018_v24 = vpop.f32.mrf.mxu1 }
 0x395   : > { %v2019_v36 = vadd.f32 %v2018_v24, %v4412_v29 }
 0x397   : > { %2090 = vst.msk [vmem:[%s4421_s11 + $0x60] sm:$0xff] %vm1633_vm10, %v2019_v36  ;;  %v2066_v1 = vpop.f32.mrf.mxu3 }
 0x398   : > { %v2067_v53 = vadd.f32 %v2066_v1, %v4412_v29 }
 0x39a   : > { %2106 = vst.msk [vmem:[%s4421_s11 + $0xe0] sm:$0xff] %vm1633_vm10, %v2067_v53 }
 0x39b   : > { %v1994_v43 = vpop.f32.mrf.mxu0 }
 0x39c   : > { %v1995_v12 = vadd.f32 %v1994_v43, %v4412_v29 }
 0x39e   : > { %2082 = vst.msk [vmem:[%s4421_s11 + $0x20] sm:$0xff] %vm1633_vm10, %v1995_v12 }
 0x3ac   : > { %v1997_v62 = vpop.f32.mrf.mxu0 }
 0x3ad   : > { %v1998_v13 = vadd.f32 %v1997_v62, %v4412_v29 }
 0x3af   : > { %2083 = vst.msk [vmem:[%s4421_s11 + $0x28] sm:$0xff] %vm1633_vm10, %v1998_v13  ;;  %v2045_v5 = vpop.f32.mrf.mxu2 }
 0x3b0   : > { %v2046_v4 = vadd.f32 %v2045_v5, %v4412_v29 }
 0x3b2   : > { %2099 = vst.msk [vmem:[%s4421_s11 + $0xa8] sm:$0xff] %vm1633_vm10, %v2046_v4 }
 0x3b6   : > { %v2069_v30 = vpop.f32.mrf.mxu3 }
 0x3b7   : > { %v2070_v21 = vadd.f32 %v2069_v30, %v4412_v29 }
 0x3b9   : > { %2107 = vst.msk [vmem:[%s4421_s11 + $0xe8] sm:$0xff] %vm1633_vm10, %v2070_v21 }
 0x3c0   : > { %v2021_v11 = vpop.f32.mrf.mxu1 }
 0x3c1   : > { %v2022_v39 = vadd.f32 %v2021_v11, %v4412_v29 }
 0x3c3   : > { %2091 = vst.msk [vmem:[%s4421_s11 + $0x68] sm:$0xff] %vm1633_vm10, %v2022_v39 }
 0x3c9   : > { %v2072_v61 = vpop.f32.mrf.mxu3 }
 0x3ca   : > { %v2073_v51 = vadd.f32 %v2072_v61, %v4412_v29 }
 0x3cc   : > { %2108 = vst.msk [vmem:[%s4421_s11 + $0xf0] sm:$0xff] %vm1633_vm10, %v2073_v51 }
 0x3ce   : > { %v2048_v34 = vpop.f32.mrf.mxu2 }
 0x3cf   : > { %v2049_v19 = vadd.f32 %v2048_v34, %v4412_v29 }
 0x3d1   : > { %2100 = vst.msk [vmem:[%s4421_s11 + $0xb0] sm:$0xff] %vm1633_vm10, %v2049_v19 }
 0x3d3   : > { %v2024_v59 = vpop.f32.mrf.mxu1 }
 0x3d4   : > { %v2025_v52 = vadd.f32 %v2024_v59, %v4412_v29 }
 0x3d6   : > { %2092 = vst.msk [vmem:[%s4421_s11 + $0x70] sm:$0xff] %vm1633_vm10, %v2025_v52 }
 0x3d8   : > { %v2000_v60 = vpop.f32.mrf.mxu0 }
 0x3d9   : > { %v2001_v47 = vadd.f32 %v2000_v60, %v4412_v29 }
 0x3db   : > { %2084 = vst.msk [vmem:[%s4421_s11 + $0x30] sm:$0xff] %vm1633_vm10, %v2001_v47 }
 0x3e1   : > { %v2051_v57 = vpop.f32.mrf.mxu2 }
 0x3e2   : > { %v2052_v44 = vadd.f32 %v2051_v57, %v4412_v29 }
 0x3e4   : > { %2101 = vst.msk [vmem:[%s4421_s11 + $0xb8] sm:$0xff] %vm1633_vm10, %v2052_v44 }
 0x3e7   : > { %v2075_v54 = vpop.f32.mrf.mxu3 }
 0x3e8   : > { %v2076_v0 = vadd.f32 %v2075_v54, %v4412_v29 }
 0x3e9   : > { %v2003_v42 = vpop.f32.mrf.mxu0 }
 0x3ea   : > { %2109 = vst.msk [vmem:[%s4421_s11 + $0xf8] sm:$0xff] %vm1633_vm10, %v2076_v0  ;;  %v2004_v26 = vadd.f32 %v2003_v42, %v4412_v29 }
 0x3ec   : > { %2085 = vst.msk [vmem:[%s4421_s11 + $0x38] sm:$0xff] %vm1633_vm10, %v2004_v26 }
 0x3f0   : > { %v2027_v33 = vpop.f32.mrf.mxu1 }
 0x3f1   : > { %v2028_v8 = vadd.f32 %v2027_v33, %v4412_v29 }
 0x3f3   : > { %2093 = vst.msk [vmem:[%s4421_s11 + $0x78] sm:$0xff] %vm1633_vm10, %v2028_v8 }
 0x3f4 PF: > { %s14_s15 = sadd.s32 1, %s2305_s15  }
 0x3f5   : > { %p11_p4 = scmp.ge.s32.totalorder %s14_s15, 4  }
 0x3f7   :  { %13 = sbr.rel (!%p11_p4) target bundleno = 1 (0x1), region = 67 }

</bundles_post_ra>
